<compile_context>
chip_gen: v7x
topology: tpu7x:2x2x1
jax: 0.10.0
libtpu: 0.0.40
codegen_flags: <defaults>
</compile_context>

<pallas_src>
import functools

import numpy as np
import jax
import jax.numpy as jnp
from jax.experimental import pallas as pl
from jax.experimental.pallas import tpu as pltpu

# Spatial geometry implied by the reference forward: x.view(B, 1, 10, 6).
_H1, _W1 = 10, 6            # conv1 / conv2 spatial
_H2, _W2 = 5, 3             # after first 2x2 maxpool
_OUT_FEATS = 32 * 2 * 1     # final NCHW flatten -> 64

# Lane-aligned (padded) widths used inside the kernel.
_N1 = 16 * _H1 * _W1        # 960  (conv1/conv2 feature width, unpadded)
_P2 = 256                   # pooled layer-2 output, padded 240 -> 256
_N3 = 32 * _H2 * _W2        # 480  (conv3/conv4 feature width, unpadded)
_P4 = 128                   # pooled layer-4 output, padded 64 -> 128


# ----------------------------- Pallas kernel --------------------------------

def _ann_o_fused_kernel(x_ref, w1_ref, s1_ref, w2_ref, s2_ref,
                        w3_ref, s3_ref, w4_ref, s4_ref, o_ref):
    """Whole ANN_O.features forward for one batch tile, entirely in VMEM."""

    def dense_relu(h_bf16, w, s):
        # Native-bf16 MXU matmul, f32 accumulate; BN shift + ReLU on the VPU.
        acc = jnp.dot(h_bf16, w, preferred_element_type=jnp.float32)
        return jnp.maximum(acc + s, 0.0)

    def dense_relu_pool(h_bf16, w_ref, s_ref):
        # conv+BN+ReLU fused with the following 2x2 maxpool: the pool's one-hot
        # column selection has been folded into 4 per-corner weight matrices,
        # so the pool is an elementwise max of 4 matmul epilogues.  ReLU is
        # hoisted out of the max (max_k relu(a_k) == relu(max_k a_k)).
        acc = jnp.dot(h_bf16, w_ref[0],
                      preferred_element_type=jnp.float32) + s_ref[0]
        for k in range(1, 4):
            acc = jnp.maximum(
                acc,
                jnp.dot(h_bf16, w_ref[k],
                        preferred_element_type=jnp.float32) + s_ref[k])
        return jnp.maximum(acc, 0.0)

    h = x_ref[...].astype(jnp.bfloat16)                               # (TB, 60)
    h = dense_relu(h, w1_ref[...], s1_ref[...]).astype(jnp.bfloat16)  # (TB, 960)
    h = dense_relu_pool(h, w2_ref, s2_ref).astype(jnp.bfloat16)       # (TB, 256)
    h = dense_relu(h, w3_ref[...], s3_ref[...]).astype(jnp.bfloat16)  # (TB, 480)
    o_ref[...] = dense_relu_pool(h, w4_ref, s4_ref)                   # (TB, 128)


def _round_up(n, m):
    return ((n + m - 1) // m) * m


def _choose_tile(B, tile_b):
    """Balanced batch tiling: bounds padding waste to <=7 rows and keeps the
    grid >= 2 whenever possible so v7x megacore shards the 'parallel' axis."""
    n_tiles = max(1, -(-B // tile_b))            # cdiv(B, tile_b)
    if B > 8:
        n_tiles = max(n_tiles, 2)                # >= 2 grid steps for 2 TCs
    tb = _round_up(-(-B // n_tiles), 8)          # rows per step, multiple of 8
    return tb, n_tiles * tb


@functools.partial(jax.jit, static_argnames=("tile_b",))
def ann_o_forward(x, params, tile_b=1024):
    """x: (B, 60) float32 -> (B, 64) conv features (matches PyTorch forward)."""
    B = x.shape[0]
    TB, Bp = _choose_tile(B, tile_b)
    if Bp != B:
        x = jnp.pad(x, ((0, Bp - B), (0, 0)))

    batch2 = lambda shape: pl.BlockSpec(shape, lambda i: (i, 0))
    full2 = lambda a: pl.BlockSpec(a.shape, lambda i: (0, 0))      # resident
    full3 = lambda a: pl.BlockSpec(a.shape, lambda i: (0, 0, 0))   # resident

    # Advisory cost hint for XLA scheduling around the custom call.
    flops = 2 * Bp * (60 * _N1 + 4 * _N1 * _P2 + _P2 * _N3 + 4 * _N3 * _P4)
    w_bytes = sum(int(v.size) * v.dtype.itemsize for v in params.values())
    bytes_accessed = Bp * (60 + _P4) * 4 + w_bytes

    out = pl.pallas_call(
        _ann_o_fused_kernel,
        out_shape=jax.ShapeDtypeStruct((Bp, _P4), jnp.float32),
        grid=(Bp // TB,),
        in_specs=[
            batch2((TB, _H1 * _W1)),
            full2(params["w1"]), full2(params["s1"]),
            full3(params["w2"]), full3(params["s2"]),
            full2(params["w3"]), full2(params["s3"]),
            full3(params["w4"]), full3(params["s4"]),
        ],
        out_specs=batch2((TB, _P4)),
        compiler_params=pltpu.CompilerParams(
            dimension_semantics=("parallel",),        # megacore on v7x
            vmem_limit_bytes=48 * 1024 * 1024),
        cost_estimate=pl.CostEstimate(
            flops=int(flops), transcendentals=0,
            bytes_accessed=int(bytes_accessed)),
    )(x, params["w1"], params["s1"], params["w2"], params["s2"],
      params["w3"], params["s3"], params["w4"], params["s4"])
    return out[:B, :_OUT_FEATS]


# ------------------- parameter construction (host side) ---------------------

def _conv3x3_as_dense(w, H, W):
    """(Cout, Cin, 3, 3) conv kernel -> dense (H*W*Cin, H*W*Cout) matrix acting
    on HWC-flattened images (stride 1, zero padding 1)."""
    w = np.asarray(w, np.float32)
    cout, cin = w.shape[0], w.shape[1]
    m = np.zeros((H * W * cin, H * W * cout), np.float32)
    for ho in range(H):
        for wo in range(W):
            dst = (ho * W + wo) * cout
            for kh in range(3):
                for kw in range(3):
                    hi, wi = ho + kh - 1, wo + kw - 1
                    if 0 <= hi < H and 0 <= wi < W:
                        src = (hi * W + wi) * cin
                        m[src:src + cin, dst:dst + cout] = w[:, :, kh, kw].T
    return m


def _maxpool2x2_selectors(H, W, C, nchw_output=False):
    """Four (H*W*C, Ho*Wo*C) one-hot column-selection matrices (one per window
    corner) for MaxPool2d(2, 2), floor mode, on HWC-flattened feature maps."""
    Ho, Wo = H // 2, W // 2
    sel = np.zeros((4, H * W * C, Ho * Wo * C), np.float32)
    for k, (dh, dw) in enumerate(((0, 0), (0, 1), (1, 0), (1, 1))):
        for ho in range(Ho):
            for wo in range(Wo):
                h, w = 2 * ho + dh, 2 * wo + dw
                for c in range(C):
                    src = (h * W + w) * C + c
                    dst = (c * Ho * Wo + ho * Wo + wo) if nchw_output \
                        else ((ho * Wo + wo) * C + c)
                    sel[k, src, dst] = 1.0
    return sel


def _fold_bn(gamma, beta, mean, var, bias, eps=1e-5):
    scale = np.asarray(gamma, np.float32) / np.sqrt(np.asarray(var, np.float32) + eps)
    shift = np.asarray(beta, np.float32) + scale * (np.asarray(bias, np.float32)
                                                    - np.asarray(mean, np.float32))
    return scale, shift


def build_fused_params(raw):
    """Convert PyTorch-layout conv/BN tensors into the dense, BN-folded,
    pool-fused, lane-padded weight set consumed by the Pallas kernel.
    Weights are stored bf16 (native MXU); shifts stay f32 (f32 epilogue)."""
    def dense_layer(layer, H, W):
        scale, shift = _fold_bn(layer["gamma"], layer["beta"], layer["mean"],
                                layer["var"], layer["b"])
        m = _conv3x3_as_dense(layer["w"], H, W)
        m = m * np.tile(scale, H * W)[None, :]       # fold BN scale into weights
        s = np.tile(shift, H * W)                    # per-feature additive shift
        return m.astype(np.float32), s.astype(np.float32)

    m1, s1 = dense_layer(raw["l1"], _H1, _W1)        # (60, 960)
    m2, s2 = dense_layer(raw["l2"], _H1, _W1)        # (960, 960)
    m3, s3 = dense_layer(raw["l3"], _H2, _W2)        # (240, 480)
    m4, s4 = dense_layer(raw["l4"], _H2, _W2)        # (480, 480)

    sel1 = _maxpool2x2_selectors(_H1, _W1, 16)                     # (4, 960, 240)
    sel2 = _maxpool2x2_selectors(_H2, _W2, 32, nchw_output=True)   # (4, 480, 64)

    # Fold each maxpool into the preceding conv: ReLU/+shift commute exactly
    # with one-hot column selection, so W_k = M @ sel_k is an exact rewrite.
    w2 = np.einsum("ij,kjo->kio", m2, sel1)          # (4, 960, 240)
    b2 = np.einsum("j,kjo->ko", s2, sel1)[:, None, :]
    w4 = np.einsum("ij,kjo->kio", m4, sel2)          # (4, 480, 64), NCHW order
    b4 = np.einsum("j,kjo->ko", s4, sel2)[:, None, :]

    # Lane-align the pool-fused outputs (exact: zero columns + zero shifts give
    # relu(0)=0, and the consumer's extra K rows are zero).
    w2p = np.zeros((4, _N1, _P2), np.float32); w2p[..., :240] = w2
    b2p = np.zeros((4, 1, _P2), np.float32);   b2p[..., :240] = b2
    m3p = np.zeros((_P2, _N3), np.float32);    m3p[:240, :] = m3
    w4p = np.zeros((4, _N3, _P4), np.float32); w4p[..., :_OUT_FEATS] = w4
    b4p = np.zeros((4, 1, _P4), np.float32);   b4p[..., :_OUT_FEATS] = b4

    wdev = lambda a: jnp.asarray(a, jnp.bfloat16)    # MXU-native weights
    sdev = lambda a: jnp.asarray(a, jnp.float32)     # f32 epilogue shifts
    return {"w1": wdev(m1), "s1": sdev(s1[None, :]),
            "w2": wdev(w2p), "s2": sdev(b2p),
            "w3": wdev(m3p), "s3": sdev(s3[None, :]),
            "w4": wdev(w4p), "s4": sdev(b4p)}


def make_raw_params(key, N=1):
    keys = iter(jax.random.split(key, 24))

    def conv_layer(cin, cout):
        return {
            "w": 0.1 * jax.random.normal(next(keys), (cout, cin, 3, 3), jnp.float32),
            "b": 0.1 * jax.random.normal(next(keys), (cout,), jnp.float32),
            "gamma": 1.0 + 0.1 * jax.random.normal(next(keys), (cout,), jnp.float32),
            "beta": 0.1 * jax.random.normal(next(keys), (cout,), jnp.float32),
            "mean": 0.1 * jax.random.normal(next(keys), (cout,), jnp.float32),
            "var": 0.5 + jax.random.uniform(next(keys), (cout,), jnp.float32),
        }

    return {"l1": conv_layer(N, 16), "l2": conv_layer(16, 16),
            "l3": conv_layer(16, 32), "l4": conv_layer(32, 32)}


# --------------------- pure-JAX reference (for checking) --------------------

def ann_o_reference(x, raw):
    def conv_bn_relu(h, p):
        y = jax.lax.conv_general_dilated(
            h, p["w"], window_strides=(1, 1), padding=((1, 1), (1, 1)),
            dimension_numbers=("NCHW", "OIHW", "NCHW"),
            precision=jax.lax.Precision.HIGHEST)
        y = y + p["b"][None, :, None, None]
        scale = p["gamma"] / jnp.sqrt(p["var"] + 1e-5)
        y = (y - p["mean"][None, :, None, None]) * scale[None, :, None, None] \
            + p["beta"][None, :, None, None]
        return jnp.maximum(y, 0.0)

    def pool(h):
        return jax.lax.reduce_window(h, -jnp.inf, jax.lax.max,
                                     (1, 1, 2, 2), (1, 1, 2, 2), "VALID")

    B = x.shape[0]
    h = x.reshape(B, 1, _H1, _W1)
    h = conv_bn_relu(h, raw["l1"])
    h = conv_bn_relu(h, raw["l2"])
    h = pool(h)
    h = conv_bn_relu(h, raw["l3"])
    h = conv_bn_relu(h, raw["l4"])
    h = pool(h)
    return h.reshape(B, -1)            # NCHW flatten -> (B, 64)


# --------------------------------- main --------------------------------------

if __name__ == "__main__":
    key = jax.random.PRNGKey(0)
    k_param, k_x = jax.random.split(key)
    B = 2
    raw = make_raw_params(k_param, N=1)
    params = build_fused_params(raw)
    x = jax.random.normal(k_x, (B, _H1 * _W1), jnp.float32)   # (B, 60)

    out = ann_o_forward(x, params)
    out = jax.block_until_ready(out)

    assert out.shape == (B, _OUT_FEATS), out.shape
    assert out.dtype == jnp.float32
    assert bool(jnp.all(jnp.isfinite(out)))

    ref = ann_o_reference(x, raw)
    assert bool(jnp.allclose(out, ref, rtol=5e-2, atol=5e-2)), \
        float(jnp.max(jnp.abs(out - ref)))

    print("KERNEL_OK")
</pallas_src>

<mosaic_0001>
module attributes {stable_mosaic.version = 11 : i64} {
  func.func @_ann_o_fused_kernel(%arg0: i32, %arg1: memref<8x60xf32, #tpu.memory_space<vmem>>, %arg2: memref<60x960xbf16, #tpu.memory_space<vmem>>, %arg3: memref<1x960xf32, #tpu.memory_space<vmem>>, %arg4: memref<4x960x256xbf16, #tpu.memory_space<vmem>>, %arg5: memref<4x1x256xf32, #tpu.memory_space<vmem>>, %arg6: memref<256x480xbf16, #tpu.memory_space<vmem>>, %arg7: memref<1x480xf32, #tpu.memory_space<vmem>>, %arg8: memref<4x480x128xbf16, #tpu.memory_space<vmem>>, %arg9: memref<4x1x128xf32, #tpu.memory_space<vmem>>, %arg10: memref<8x128xf32, #tpu.memory_space<vmem>>) attributes {dimension_semantics = [#tpu.dimension_semantics<parallel>], iteration_bounds = array<i64: 1>, scalar_prefetch = 0 : i64, scratch_operands = 0 : i64, tpu.core_type = #tpu.core_type<tc>, window_params = [{transform_indices = @transform_0, window_bounds = array<i64: 8, 60>}, {pipeline_mode = #tpu.pipeline_mode<synchronous>, transform_indices = @transform_1, window_bounds = array<i64: 60, 960>}, {pipeline_mode = #tpu.pipeline_mode<synchronous>, transform_indices = @transform_2, window_bounds = array<i64: 1, 960>}, {pipeline_mode = #tpu.pipeline_mode<synchronous>, transform_indices = @transform_3, window_bounds = array<i64: 4, 960, 256>}, {pipeline_mode = #tpu.pipeline_mode<synchronous>, transform_indices = @transform_4, window_bounds = array<i64: 4, 1, 256>}, {pipeline_mode = #tpu.pipeline_mode<synchronous>, transform_indices = @transform_5, window_bounds = array<i64: 256, 480>}, {pipeline_mode = #tpu.pipeline_mode<synchronous>, transform_indices = @transform_6, window_bounds = array<i64: 1, 480>}, {pipeline_mode = #tpu.pipeline_mode<synchronous>, transform_indices = @transform_7, window_bounds = array<i64: 4, 480, 128>}, {pipeline_mode = #tpu.pipeline_mode<synchronous>, transform_indices = @transform_8, window_bounds = array<i64: 4, 1, 128>}, {transform_indices = @transform_9, window_bounds = array<i64: 8, 128>}]} {
    %c0 = arith.constant 0 : index
    %c0_0 = arith.constant 0 : index
    %0 = vector.load %arg1[%c0, %c0_0] : memref<8x60xf32, #tpu.memory_space<vmem>>, vector<8x60xf32>
    %1 = arith.truncf %0 : vector<8x60xf32> to vector<8x60xbf16>
    %c0_1 = arith.constant 0 : index
    %c0_2 = arith.constant 0 : index
    %2 = vector.load %arg2[%c0_1, %c0_2] : memref<60x960xbf16, #tpu.memory_space<vmem>>, vector<60x960xbf16>
    %c0_3 = arith.constant 0 : index
    %c0_4 = arith.constant 0 : index
    %3 = vector.load %arg3[%c0_3, %c0_4] : memref<1x960xf32, #tpu.memory_space<vmem>>, vector<1x960xf32>
    %cst = arith.constant dense<0.000000e+00> : vector<8x960xf32>
    %4 = tpu.matmul %1, %2, %cst {dimension_numbers = #tpu.dot_dimension_numbers<[1], [0], [0], [1], [0, 0, 1, 1], [], []>} : vector<8x60xbf16>, vector<60x960xbf16>, vector<8x960xf32> -> vector<8x960xf32>
    %5 = vector.broadcast %3 : vector<1x960xf32> to vector<8x960xf32>
    %6 = arith.addf %4, %5 : vector<8x960xf32>
    %cst_5 = arith.constant 0.000000e+00 : f32
    %7 = vector.broadcast %cst_5 : f32 to vector<8x960xf32>
    %8 = arith.maximumf %6, %7 : vector<8x960xf32>
    %9 = arith.truncf %8 : vector<8x960xf32> to vector<8x960xbf16>
    %c0_6 = arith.constant 0 : index
    %c0_7 = arith.constant 0 : index
    %c0_8 = arith.constant 0 : index
    %10 = vector.load %arg4[%c0_6, %c0_7, %c0_8] : memref<4x960x256xbf16, #tpu.memory_space<vmem>>, vector<1x960x256xbf16>
    %11 = vector.shape_cast %10 : vector<1x960x256xbf16> to vector<960x256xbf16>
    %cst_9 = arith.constant dense<0.000000e+00> : vector<8x256xf32>
    %12 = tpu.matmul %9, %11, %cst_9 {dimension_numbers = #tpu.dot_dimension_numbers<[1], [0], [0], [1], [0, 0, 1, 1], [], []>} : vector<8x960xbf16>, vector<960x256xbf16>, vector<8x256xf32> -> vector<8x256xf32>
    %c0_10 = arith.constant 0 : index
    %c0_11 = arith.constant 0 : index
    %c0_12 = arith.constant 0 : index
    %13 = vector.load %arg5[%c0_10, %c0_11, %c0_12] : memref<4x1x256xf32, #tpu.memory_space<vmem>>, vector<1x1x256xf32>
    %14 = vector.shape_cast %13 : vector<1x1x256xf32> to vector<1x256xf32>
    %15 = vector.broadcast %14 : vector<1x256xf32> to vector<8x256xf32>
    %16 = arith.addf %12, %15 : vector<8x256xf32>
    %c1 = arith.constant 1 : index
    %c0_13 = arith.constant 0 : index
    %c0_14 = arith.constant 0 : index
    %17 = vector.load %arg4[%c1, %c0_13, %c0_14] : memref<4x960x256xbf16, #tpu.memory_space<vmem>>, vector<1x960x256xbf16>
    %18 = vector.shape_cast %17 : vector<1x960x256xbf16> to vector<960x256xbf16>
    %cst_15 = arith.constant dense<0.000000e+00> : vector<8x256xf32>
    %19 = tpu.matmul %9, %18, %cst_15 {dimension_numbers = #tpu.dot_dimension_numbers<[1], [0], [0], [1], [0, 0, 1, 1], [], []>} : vector<8x960xbf16>, vector<960x256xbf16>, vector<8x256xf32> -> vector<8x256xf32>
    %c1_16 = arith.constant 1 : index
    %c0_17 = arith.constant 0 : index
    %c0_18 = arith.constant 0 : index
    %20 = vector.load %arg5[%c1_16, %c0_17, %c0_18] : memref<4x1x256xf32, #tpu.memory_space<vmem>>, vector<1x1x256xf32>
    %21 = vector.shape_cast %20 : vector<1x1x256xf32> to vector<1x256xf32>
    %22 = vector.broadcast %21 : vector<1x256xf32> to vector<8x256xf32>
    %23 = arith.addf %19, %22 : vector<8x256xf32>
    %24 = arith.maximumf %16, %23 : vector<8x256xf32>
    %c2 = arith.constant 2 : index
    %c0_19 = arith.constant 0 : index
    %c0_20 = arith.constant 0 : index
    %25 = vector.load %arg4[%c2, %c0_19, %c0_20] : memref<4x960x256xbf16, #tpu.memory_space<vmem>>, vector<1x960x256xbf16>
    %26 = vector.shape_cast %25 : vector<1x960x256xbf16> to vector<960x256xbf16>
    %cst_21 = arith.constant dense<0.000000e+00> : vector<8x256xf32>
    %27 = tpu.matmul %9, %26, %cst_21 {dimension_numbers = #tpu.dot_dimension_numbers<[1], [0], [0], [1], [0, 0, 1, 1], [], []>} : vector<8x960xbf16>, vector<960x256xbf16>, vector<8x256xf32> -> vector<8x256xf32>
    %c2_22 = arith.constant 2 : index
    %c0_23 = arith.constant 0 : index
    %c0_24 = arith.constant 0 : index
    %28 = vector.load %arg5[%c2_22, %c0_23, %c0_24] : memref<4x1x256xf32, #tpu.memory_space<vmem>>, vector<1x1x256xf32>
    %29 = vector.shape_cast %28 : vector<1x1x256xf32> to vector<1x256xf32>
    %30 = vector.broadcast %29 : vector<1x256xf32> to vector<8x256xf32>
    %31 = arith.addf %27, %30 : vector<8x256xf32>
    %32 = arith.maximumf %24, %31 : vector<8x256xf32>
    %c3 = arith.constant 3 : index
    %c0_25 = arith.constant 0 : index
    %c0_26 = arith.constant 0 : index
    %33 = vector.load %arg4[%c3, %c0_25, %c0_26] : memref<4x960x256xbf16, #tpu.memory_space<vmem>>, vector<1x960x256xbf16>
    %34 = vector.shape_cast %33 : vector<1x960x256xbf16> to vector<960x256xbf16>
    %cst_27 = arith.constant dense<0.000000e+00> : vector<8x256xf32>
    %35 = tpu.matmul %9, %34, %cst_27 {dimension_numbers = #tpu.dot_dimension_numbers<[1], [0], [0], [1], [0, 0, 1, 1], [], []>} : vector<8x960xbf16>, vector<960x256xbf16>, vector<8x256xf32> -> vector<8x256xf32>
    %c3_28 = arith.constant 3 : index
    %c0_29 = arith.constant 0 : index
    %c0_30 = arith.constant 0 : index
    %36 = vector.load %arg5[%c3_28, %c0_29, %c0_30] : memref<4x1x256xf32, #tpu.memory_space<vmem>>, vector<1x1x256xf32>
    %37 = vector.shape_cast %36 : vector<1x1x256xf32> to vector<1x256xf32>
    %38 = vector.broadcast %37 : vector<1x256xf32> to vector<8x256xf32>
    %39 = arith.addf %35, %38 : vector<8x256xf32>
    %40 = arith.maximumf %32, %39 : vector<8x256xf32>
    %cst_31 = arith.constant 0.000000e+00 : f32
    %41 = vector.broadcast %cst_31 : f32 to vector<8x256xf32>
    %42 = arith.maximumf %40, %41 : vector<8x256xf32>
    %43 = arith.truncf %42 : vector<8x256xf32> to vector<8x256xbf16>
    %c0_32 = arith.constant 0 : index
    %c0_33 = arith.constant 0 : index
    %44 = vector.load %arg6[%c0_32, %c0_33] : memref<256x480xbf16, #tpu.memory_space<vmem>>, vector<256x480xbf16>
    %c0_34 = arith.constant 0 : index
    %c0_35 = arith.constant 0 : index
    %45 = vector.load %arg7[%c0_34, %c0_35] : memref<1x480xf32, #tpu.memory_space<vmem>>, vector<1x480xf32>
    %cst_36 = arith.constant dense<0.000000e+00> : vector<8x480xf32>
    %46 = tpu.matmul %43, %44, %cst_36 {dimension_numbers = #tpu.dot_dimension_numbers<[1], [0], [0], [1], [0, 0, 1, 1], [], []>} : vector<8x256xbf16>, vector<256x480xbf16>, vector<8x480xf32> -> vector<8x480xf32>
    %47 = vector.broadcast %45 : vector<1x480xf32> to vector<8x480xf32>
    %48 = arith.addf %46, %47 : vector<8x480xf32>
    %cst_37 = arith.constant 0.000000e+00 : f32
    %49 = vector.broadcast %cst_37 : f32 to vector<8x480xf32>
    %50 = arith.maximumf %48, %49 : vector<8x480xf32>
    %51 = arith.truncf %50 : vector<8x480xf32> to vector<8x480xbf16>
    %c0_38 = arith.constant 0 : index
    %c0_39 = arith.constant 0 : index
    %c0_40 = arith.constant 0 : index
    %52 = vector.load %arg8[%c0_38, %c0_39, %c0_40] : memref<4x480x128xbf16, #tpu.memory_space<vmem>>, vector<1x480x128xbf16>
    %53 = vector.shape_cast %52 : vector<1x480x128xbf16> to vector<480x128xbf16>
    %cst_41 = arith.constant dense<0.000000e+00> : vector<8x128xf32>
    %54 = tpu.matmul %51, %53, %cst_41 {dimension_numbers = #tpu.dot_dimension_numbers<[1], [0], [0], [1], [0, 0, 1, 1], [], []>} : vector<8x480xbf16>, vector<480x128xbf16>, vector<8x128xf32> -> vector<8x128xf32>
    %c0_42 = arith.constant 0 : index
    %c0_43 = arith.constant 0 : index
    %c0_44 = arith.constant 0 : index
    %55 = vector.load %arg9[%c0_42, %c0_43, %c0_44] : memref<4x1x128xf32, #tpu.memory_space<vmem>>, vector<1x1x128xf32>
    %56 = vector.shape_cast %55 : vector<1x1x128xf32> to vector<1x128xf32>
    %57 = vector.broadcast %56 : vector<1x128xf32> to vector<8x128xf32>
    %58 = arith.addf %54, %57 : vector<8x128xf32>
    %c1_45 = arith.constant 1 : index
    %c0_46 = arith.constant 0 : index
    %c0_47 = arith.constant 0 : index
    %59 = vector.load %arg8[%c1_45, %c0_46, %c0_47] : memref<4x480x128xbf16, #tpu.memory_space<vmem>>, vector<1x480x128xbf16>
    %60 = vector.shape_cast %59 : vector<1x480x128xbf16> to vector<480x128xbf16>
    %cst_48 = arith.constant dense<0.000000e+00> : vector<8x128xf32>
    %61 = tpu.matmul %51, %60, %cst_48 {dimension_numbers = #tpu.dot_dimension_numbers<[1], [0], [0], [1], [0, 0, 1, 1], [], []>} : vector<8x480xbf16>, vector<480x128xbf16>, vector<8x128xf32> -> vector<8x128xf32>
    %c1_49 = arith.constant 1 : index
    %c0_50 = arith.constant 0 : index
    %c0_51 = arith.constant 0 : index
    %62 = vector.load %arg9[%c1_49, %c0_50, %c0_51] : memref<4x1x128xf32, #tpu.memory_space<vmem>>, vector<1x1x128xf32>
    %63 = vector.shape_cast %62 : vector<1x1x128xf32> to vector<1x128xf32>
    %64 = vector.broadcast %63 : vector<1x128xf32> to vector<8x128xf32>
    %65 = arith.addf %61, %64 : vector<8x128xf32>
    %66 = arith.maximumf %58, %65 : vector<8x128xf32>
    %c2_52 = arith.constant 2 : index
    %c0_53 = arith.constant 0 : index
    %c0_54 = arith.constant 0 : index
    %67 = vector.load %arg8[%c2_52, %c0_53, %c0_54] : memref<4x480x128xbf16, #tpu.memory_space<vmem>>, vector<1x480x128xbf16>
    %68 = vector.shape_cast %67 : vector<1x480x128xbf16> to vector<480x128xbf16>
    %cst_55 = arith.constant dense<0.000000e+00> : vector<8x128xf32>
    %69 = tpu.matmul %51, %68, %cst_55 {dimension_numbers = #tpu.dot_dimension_numbers<[1], [0], [0], [1], [0, 0, 1, 1], [], []>} : vector<8x480xbf16>, vector<480x128xbf16>, vector<8x128xf32> -> vector<8x128xf32>
    %c2_56 = arith.constant 2 : index
    %c0_57 = arith.constant 0 : index
    %c0_58 = arith.constant 0 : index
    %70 = vector.load %arg9[%c2_56, %c0_57, %c0_58] : memref<4x1x128xf32, #tpu.memory_space<vmem>>, vector<1x1x128xf32>
    %71 = vector.shape_cast %70 : vector<1x1x128xf32> to vector<1x128xf32>
    %72 = vector.broadcast %71 : vector<1x128xf32> to vector<8x128xf32>
    %73 = arith.addf %69, %72 : vector<8x128xf32>
    %74 = arith.maximumf %66, %73 : vector<8x128xf32>
    %c3_59 = arith.constant 3 : index
    %c0_60 = arith.constant 0 : index
    %c0_61 = arith.constant 0 : index
    %75 = vector.load %arg8[%c3_59, %c0_60, %c0_61] : memref<4x480x128xbf16, #tpu.memory_space<vmem>>, vector<1x480x128xbf16>
    %76 = vector.shape_cast %75 : vector<1x480x128xbf16> to vector<480x128xbf16>
    %cst_62 = arith.constant dense<0.000000e+00> : vector<8x128xf32>
    %77 = tpu.matmul %51, %76, %cst_62 {dimension_numbers = #tpu.dot_dimension_numbers<[1], [0], [0], [1], [0, 0, 1, 1], [], []>} : vector<8x480xbf16>, vector<480x128xbf16>, vector<8x128xf32> -> vector<8x128xf32>
    %c3_63 = arith.constant 3 : index
    %c0_64 = arith.constant 0 : index
    %c0_65 = arith.constant 0 : index
    %78 = vector.load %arg9[%c3_63, %c0_64, %c0_65] : memref<4x1x128xf32, #tpu.memory_space<vmem>>, vector<1x1x128xf32>
    %79 = vector.shape_cast %78 : vector<1x1x128xf32> to vector<1x128xf32>
    %80 = vector.broadcast %79 : vector<1x128xf32> to vector<8x128xf32>
    %81 = arith.addf %77, %80 : vector<8x128xf32>
    %82 = arith.maximumf %74, %81 : vector<8x128xf32>
    %cst_66 = arith.constant 0.000000e+00 : f32
    %83 = vector.broadcast %cst_66 : f32 to vector<8x128xf32>
    %84 = arith.maximumf %82, %83 : vector<8x128xf32>
    %c0_67 = arith.constant 0 : index
    %c0_68 = arith.constant 0 : index
    %85 = vector.load %arg10[%c0_67, %c0_68] : memref<8x128xf32, #tpu.memory_space<vmem>>, vector<8x128xf32>
    tpu.vector_store %arg10[%c0_67, %c0_68], %84 {strides = array<i32>} : memref<8x128xf32, #tpu.memory_space<vmem>>, vector<8x128xf32>,
    return
  }
  func.func @transform_0(%arg0: i32) -> (i32, i32) {
    %c0_i32 = arith.constant 0 : i32
    %c0_i32_0 = arith.constant 0 : i32
    return %arg0, %c0_i32 : i32, i32
  }
  func.func @transform_1(%arg0: i32) -> (i32, i32) {
    %c0_i32 = arith.constant 0 : i32
    %c0_i32_0 = arith.constant 0 : i32
    %c0_i32_1 = arith.constant 0 : i32
    return %c0_i32, %c0_i32_0 : i32, i32
  }
  func.func @transform_2(%arg0: i32) -> (i32, i32) {
    %c0_i32 = arith.constant 0 : i32
    %c0_i32_0 = arith.constant 0 : i32
    %c0_i32_1 = arith.constant 0 : i32
    return %c0_i32, %c0_i32_0 : i32, i32
  }
  func.func @transform_3(%arg0: i32) -> (i32, i32, i32) {
    %c0_i32 = arith.constant 0 : i32
    %c0_i32_0 = arith.constant 0 : i32
    %c0_i32_1 = arith.constant 0 : i32
    %c0_i32_2 = arith.constant 0 : i32
    return %c0_i32, %c0_i32_0, %c0_i32_1 : i32, i32, i32
  }
  func.func @transform_4(%arg0: i32) -> (i32, i32, i32) {
    %c0_i32 = arith.constant 0 : i32
    %c0_i32_0 = arith.constant 0 : i32
    %c0_i32_1 = arith.constant 0 : i32
    %c0_i32_2 = arith.constant 0 : i32
    return %c0_i32, %c0_i32_0, %c0_i32_1 : i32, i32, i32
  }
  func.func @transform_5(%arg0: i32) -> (i32, i32) {
    %c0_i32 = arith.constant 0 : i32
    %c0_i32_0 = arith.constant 0 : i32
    %c0_i32_1 = arith.constant 0 : i32
    return %c0_i32, %c0_i32_0 : i32, i32
  }
  func.func @transform_6(%arg0: i32) -> (i32, i32) {
    %c0_i32 = arith.constant 0 : i32
    %c0_i32_0 = arith.constant 0 : i32
    %c0_i32_1 = arith.constant 0 : i32
    return %c0_i32, %c0_i32_0 : i32, i32
  }
  func.func @transform_7(%arg0: i32) -> (i32, i32, i32) {
    %c0_i32 = arith.constant 0 : i32
    %c0_i32_0 = arith.constant 0 : i32
    %c0_i32_1 = arith.constant 0 : i32
    %c0_i32_2 = arith.constant 0 : i32
    return %c0_i32, %c0_i32_0, %c0_i32_1 : i32, i32, i32
  }
  func.func @transform_8(%arg0: i32) -> (i32, i32, i32) {
    %c0_i32 = arith.constant 0 : i32
    %c0_i32_0 = arith.constant 0 : i32
    %c0_i32_1 = arith.constant 0 : i32
    %c0_i32_2 = arith.constant 0 : i32
    return %c0_i32, %c0_i32_0, %c0_i32_1 : i32, i32, i32
  }
  func.func @transform_9(%arg0: i32) -> (i32, i32) {
    %c0_i32 = arith.constant 0 : i32
    %c0_i32_0 = arith.constant 0 : i32
    return %arg0, %c0_i32 : i32, i32
  }
}

</mosaic_0001>

<bundles_post_ra>
// kernel: ann_o_forward.1
= control target key start
LH: loop header
LB: loop body
LE: loop exit
PB: predicated region body
PF: predicated region fallthrough
CT: control target
= control target key end

     0   :  { %14 = vsyncpa [#allocation3], 0  ;;  %s8564_s0 = inlined_call_operand.vmem [shape: f32[8,60], index: 0, kind: input, shape index: {}]   ;;  %s8565_s1 = inlined_call_operand.hbm [shape: bf16[60,960], index: 1, kind: input, shape index: {}]   ;;  %s8566_s2 = inlined_call_operand.hbm [shape: f32[1,960], index: 2, kind: input, shape index: {}]   ;;  %s8567_s3 = inlined_call_operand.hbm [shape: bf16[4,960,256], index: 3, kind: input, shape index: {}]   ;;  %s8568_s4 = inlined_call_operand.hbm [shape: f32[4,1,256], index: 4, kind: input, shape index: {}]   ;;  %s8569_s5 = inlined_call_operand.vmem [shape: bf16[256,480], index: 5, kind: input, shape index: {}]   ;;  %s8570_s6 = inlined_call_operand.hbm [shape: f32[1,480], index: 6, kind: input, shape index: {}]   ;;  %s8571_s7 = inlined_call_operand.hbm [shape: bf16[4,480,128], index: 7, kind: input, shape index: {}]   ;;  %s8572_s8 = inlined_call_operand.hbm [shape: f32[4,1,128], index: 8, kind: input, shape index: {}]   ;;  %s8573_s9 = inlined_call_operand.vmem [shape: f32[8,128], index: 9, kind: output, shape index: {}]  }
   0x1   :  { %15 = vsyncpa [#allocation5], 0 }
   0x2   :  { %16 = vsyncpa [#allocation8], 0 }
   0x3   :  { %17 = vsyncpa [#allocation11], 0  ;;  %s7968_s30 = smov [#allocation4]   ;;  %s7969_s11 = smov [#allocation7]  }
   0x4   :  { %s38_s10 = sshll.u32 %s7968_s30, 4  ;;  %s59_s12 = sshll.u32 %s7969_s11, 4  ;;  %s39_s10 = int_to_ptr.vmem [resolvable:$true] %s38_s10  ;;  %s60_s12 = int_to_ptr.vmem [resolvable:$true] %s59_s12 }
   0x5   :  { %s7806_s15 = scalar_lea.hbm %s8566_s2, 128 }
   0x6   :  { %p7807_p0 = scmp.ne.s32.totalorder %s8566_s2, %s7806_s15  ;;  %p7810_p1 = scmp.lt.u32.totalorder %s7806_s15, %s8566_s2 }
   0x8   :  { %p7812_p2 = pnand %p7810_p1, %p7807_p0 }
   0xa   :  { %7815 = shalt.err (!%p7812_p2)
}
   0xb   :  { %s7816_s20 = scalar_lea.vmem %s39_s10, 128  ;;  %p7821_p4 = scmp.lt.s32.totalorder %s39_s10, %s39_s10 }
   0xc   :  { %p7817_p3 = scmp.ne.s32.totalorder %s39_s10, %s7816_s20  ;;  %p7822_p5 = scmp.lt.s32.totalorder %s7816_s20, %s7816_s20 }
   0xe   :  { %p7823_p6 = por %p7822_p5, %p7821_p4 }
  0x10   :  { %p7824_p7 = pnand %p7823_p6, %p7817_p3 }
  0x12   :  { %7827 = shalt.err (!%p7824_p7)
}
  0x13   :  { %41 = dma.hbm_to_vmem [thread:$0]  %s8566_s2, 128, %s39_s10, [#allocation5]  }
  0x14   :  { %s7828_s25 = scalar_lea.hbm %s8568_s4, 128 }
  0x15   :  { %p7829_p8 = scmp.ne.s32.totalorder %s8568_s4, %s7828_s25  ;;  %p7832_p9 = scmp.lt.u32.totalorder %s7828_s25, %s8568_s4 }
  0x17   :  { %p7834_p10 = pnand %p7832_p9, %p7829_p8 }
  0x19   :  { %7837 = shalt.err (!%p7834_p10)
}
  0x1a   :  { %s7838_s30 = scalar_lea.vmem %s60_s12, 128  ;;  %p7843_p12 = scmp.lt.s32.totalorder %s60_s12, %s60_s12 }
  0x1b   :  { %p7839_p11 = scmp.ne.s32.totalorder %s60_s12, %s7838_s30  ;;  %p7844_p13 = scmp.lt.s32.totalorder %s7838_s30, %s7838_s30 }
  0x1d   :  { %p7845_p0 = por %p7844_p13, %p7843_p12 }
  0x1f   :  { %p7846_p1 = pnand %p7845_p0, %p7839_p11 }
  0x21   :  { %7849 = shalt.err (!%p7846_p1)
}
  0x22   :  { %s7970_s2 = smov 32   ;;  %s7971_s10 = smov 2  }
  0x23   :  { %65 = dma.hbm_to_vmem [thread:$0]  %s8568_s4, 128, %s60_s12, [#allocation8], %s7970_s2, %s7970_s2, %s7971_s10  }
  0x24   :  { %s7972_s14 = smov [#allocation10]   ;;  %s7850_s18 = scalar_lea.hbm %s8571_s7, 15360 }
  0x25   :  { %s83_s15 = sshll.u32 %s7972_s14, 4  ;;  %p7851_p2 = scmp.ne.s32.totalorder %s8571_s7, %s7850_s18  ;;  %s84_s15 = int_to_ptr.vmem [resolvable:$true] %s83_s15 }
  0x26   :  { %p7854_p3 = scmp.lt.u32.totalorder %s7850_s18, %s8571_s7 }
  0x28   :  { %p7856_p4 = pnand %p7854_p3, %p7851_p2 }
  0x2a   :  { %7859 = shalt.err (!%p7856_p4)
}
  0x2b   :  { %s7860_s23 = scalar_lea.vmem %s84_s15, 15360  ;;  %p7865_p6 = scmp.lt.s32.totalorder %s84_s15, %s84_s15 }
  0x2c   :  { %p7861_p5 = scmp.ne.s32.totalorder %s84_s15, %s7860_s23  ;;  %p7866_p7 = scmp.lt.s32.totalorder %s7860_s23, %s7860_s23 }
  0x2e   :  { %p7867_p8 = por %p7866_p7, %p7865_p6 }
  0x30   :  { %p7868_p9 = pnand %p7867_p8, %p7861_p5 }
  0x32   :  { %7871 = shalt.err (!%p7868_p9)
}
  0x33   :  { %s7973_s4 = smov 64   ;;  %s7974_s12 = smov 4  }
  0x34   :  { %89 = dma.hbm_to_vmem [thread:$0]  %s8571_s7, 15360, %s84_s15, [#allocation11], %s7973_s4, %s7973_s4, %s7974_s12  }
  0x35   :  { %s7975_s26 = smov [#allocation2]   ;;  %s7872_s30 = scalar_lea.hbm %s8565_s1, 4096 }
  0x36   :  { %s25_s27 = sshll.u32 %s7975_s26, 4  ;;  %p7873_p10 = scmp.ne.s32.totalorder %s8565_s1, %s7872_s30  ;;  %s26_s27 = int_to_ptr.vmem [resolvable:$true] %s25_s27 }
  0x37   :  { %p7876_p11 = scmp.lt.u32.totalorder %s7872_s30, %s8565_s1 }
  0x39   :  { %p7878_p12 = pnand %p7876_p11, %p7873_p10 }
  0x3b   :  { %7881 = shalt.err (!%p7878_p12)
}
  0x3c   :  { %s7882_s16 = scalar_lea.vmem %s26_s27, 4096  ;;  %p7887_p0 = scmp.lt.s32.totalorder %s26_s27, %s26_s27 }
  0x3d   :  { %p7883_p13 = scmp.ne.s32.totalorder %s26_s27, %s7882_s16  ;;  %p7888_p1 = scmp.lt.s32.totalorder %s7882_s16, %s7882_s16 }
  0x3f   :  { %p7889_p2 = por %p7888_p1, %p7887_p0 }
  0x41   :  { %p7890_p3 = pnand %p7889_p2, %p7883_p13 }
  0x43   :  { %7893 = shalt.err (!%p7890_p3)
}
  0x44   :  { %s7976_s7 = smov 512   ;;  %s7977_s18 = smov [#allocation6]  }
  0x45   :  { %31 = dma.hbm_to_vmem [thread:$0]  %s8565_s1, 4096, %s26_s27, [#allocation3], %s7976_s7, %s7976_s7, %s7970_s2  }
  0x46   :  { %s47_s19 = sshll.u32 %s7977_s18, 4  ;;  %s7894_s22 = scalar_lea.hbm %s8567_s3, 61440  ;;  %s48_s19 = int_to_ptr.vmem [resolvable:$true] %s47_s19 }
  0x47   :  { %p7895_p4 = scmp.ne.s32.totalorder %s8567_s3, %s7894_s22  ;;  %p7898_p5 = scmp.lt.u32.totalorder %s7894_s22, %s8567_s3 }
  0x49   :  { %p7900_p6 = pnand %p7898_p5, %p7895_p4 }
  0x4b   :  { %7903 = shalt.err (!%p7900_p6)
}
  0x4c   :  { %s7904_s25 = scalar_lea.vmem %s48_s19, 61440  ;;  %p7909_p8 = scmp.lt.s32.totalorder %s48_s19, %s48_s19 }
  0x4d   :  { %p7905_p7 = scmp.ne.s32.totalorder %s48_s19, %s7904_s25  ;;  %p7910_p9 = scmp.lt.s32.totalorder %s7904_s25, %s7904_s25 }
  0x4f   :  { %p7911_p10 = por %p7910_p9, %p7909_p8 }
  0x51   :  { %p7912_p11 = pnand %p7911_p10, %p7905_p7 }
  0x53   :  { %7915 = shalt.err (!%p7912_p11)
}
  0x54   :  { %s7978_s1 = smov 128   ;;  %s7979_s2 = smov 8  }
  0x55   :  { %53 = dma.hbm_to_vmem [thread:$0]  %s8567_s3, 61440, %s48_s19, [#allocation5], %s7978_s1, %s7978_s1, %s7979_s2  }
  0x56   :  { %s7980_s28 = smov [#allocation9]   ;;  %s7981_s30 = smov [#allocation12]  }
  0x57   :  { %s74_s29 = sshll.u32 %s7980_s28, 4  ;;  %s95_s10 = sshll.u32 %s7981_s30, 4  ;;  %s75_s29 = int_to_ptr.vmem [resolvable:$true] %s74_s29  ;;  %s8098_s10 = int_to_ptr.vmem [resolvable:$true] %s95_s10 }
  0x58   :  { %s7916_s14 = scalar_lea.hbm %s8570_s6, 64 }
  0x59   :  { %p7917_p12 = scmp.ne.s32.totalorder %s8570_s6, %s7916_s14  ;;  %p7920_p13 = scmp.lt.u32.totalorder %s7916_s14, %s8570_s6 }
  0x5b   :  { %p7922_p0 = pnand %p7920_p13, %p7917_p12 }
  0x5d   :  { %7925 = shalt.err (!%p7922_p0)
}
  0x5e   :  { %s7926_s3 = scalar_lea.vmem %s75_s29, 64  ;;  %p7931_p2 = scmp.lt.s32.totalorder %s75_s29, %s75_s29 }
  0x5f   :  { %p7927_p1 = scmp.ne.s32.totalorder %s75_s29, %s7926_s3  ;;  %p7932_p3 = scmp.lt.s32.totalorder %s7926_s3, %s7926_s3 }
  0x61   :  { %p7933_p4 = por %p7932_p3, %p7931_p2 }
  0x63   :  { %p7934_p5 = pnand %p7933_p4, %p7927_p1 }
  0x65   :  { %7937 = shalt.err (!%p7934_p5)
}
  0x66   :  { %77 = dma.hbm_to_vmem [thread:$0]  %s8570_s6, 64, %s75_s29, [#allocation8]  }
  0x67   :  { %s7938_s22 = scalar_lea.hbm %s8572_s8, 64 }
  0x68   :  { %p7939_p6 = scmp.ne.s32.totalorder %s8572_s8, %s7938_s22  ;;  %p7942_p7 = scmp.lt.u32.totalorder %s7938_s22, %s8572_s8 }
  0x6a   :  { %p7944_p8 = pnand %p7942_p7, %p7939_p6 }
  0x6c   :  { %7947 = shalt.err (!%p7944_p8)
}
  0x6d   :  { %s7948_s25 = scalar_lea.vmem %s8098_s10, 64  ;;  %p7953_p10 = scmp.lt.s32.totalorder %s8098_s10, %s8098_s10 }
  0x6e   :  { %p7949_p9 = scmp.ne.s32.totalorder %s8098_s10, %s7948_s25  ;;  %p7954_p11 = scmp.lt.s32.totalorder %s7948_s25, %s7948_s25 }
  0x70   :  { %p7955_p12 = por %p7954_p11, %p7953_p10 }
  0x72   :  { %p7956_p13 = pnand %p7955_p12, %p7949_p9 }
  0x74   :  { %7959 = shalt.err (!%p7956_p13)
}
  0x75   :  { %s7982_s6 = smov 16   ;;  %s7983_s1 = smov 1  }
  0x76   :  { %101 = dma.hbm_to_vmem [thread:$0]  %s8572_s8, 64, %s8098_s10, [#allocation11], %s7982_s6, %s7982_s6, %s7983_s1  }
  0x77   :  { %7960 = dma.done.wait [#allocation3], 4096  }
  0x78   :  { %7961 = vsyncadd [#allocation3], 4294963200 }
  0x79   :  { %7962 = dma.done.wait [#allocation5], 61568  }
  0x7a   :  { %7963 = vsyncadd [#allocation5], 4294905728 }
  0x7b   :  { %7964 = dma.done.wait [#allocation8], 192  }
  0x7c   :  { %7965 = vsyncadd [#allocation8], 4294967104 }
  0x7d   :  { %7966 = dma.done.wait [#allocation11], 15424  }
  0x7e   :  { %7967 = vsyncadd [#allocation11], 4294951872  ;;  %v7984_v0 = vmov 0   ;;  %v126_v1 = vld [vmem:[#allocation2] sm:$0xff]  ;;  %v129_v15 = vld [vmem:[#allocation2 + $0x18] sm:$0xff]  ;;  %vm356_vm0 = vcmask 1045504  }
  0x7f   :  { %413 = vmatprep.mubr.bf16.mxu0 %v7984_v0  ;;  %536 = vmatprep.mubr.bf16.mxu1 %v7984_v0  ;;  %v130_v2 = vld [vmem:[#allocation2 + $0x20] sm:$0xff]  ;;  %v133_v16 = vld [vmem:[#allocation2 + $0x38] sm:$0xff]  ;;  %v127_v19 = vld [vmem:[#allocation2 + $0x8] sm:$0xff]  ;;  %vm352_vm1 = vcmask 490496   ;;  %vm1293_vm2 = vcmask 523264   ;;  %vm4908_vm3 = vcmask 785408  }
  0x80   :  { %v134_v3 = vld [vmem:[#allocation2 + $0x40] sm:$0xff]  ;;  %v5993_v4 = vcombine.high %v126_v1, %v130_v2  ;;  %v5992_v5 = vcombine.low %v126_v1, %v130_v2  ;;  %v5999_v20 = vcombine.high %v129_v15, %v133_v16  ;;  %v5998_v21 = vcombine.low %v129_v15, %v133_v16  ;;  %v137_v22 = vld [vmem:[#allocation2 + $0x58] sm:$0xff]  ;;  %v131_v24 = vld [vmem:[#allocation2 + $0x28] sm:$0xff] }
  0x81   :  { %v138_v6 = vld [vmem:[#allocation2 + $0x60] sm:$0xff]  ;;  %v141_v23 = vld [vmem:[#allocation2 + $0x78] sm:$0xff]  ;;  %v5995_v31 = vcombine.high %v127_v19, %v131_v24  ;;  %v135_v32 = vld [vmem:[#allocation2 + $0x48] sm:$0xff]  ;;  %v5994_v38 = vcombine.low %v127_v19, %v131_v24 }
  0x82   :  { %v6001_v7 = vcombine.high %v134_v3, %v138_v6  ;;  %v142_v8 = vld [vmem:[#allocation2 + $0x80] sm:$0xff]  ;;  %381 = vmatprep.subr.bf16.mxu0 %v5993_v4  ;;  %v6000_v10 = vcombine.low %v134_v3, %v138_v6  ;;  %v6007_v25 = vcombine.high %v137_v22, %v141_v23  ;;  %v145_v26 = vld [vmem:[#allocation2 + $0x98] sm:$0xff]  ;;  %504 = vmatprep.subr.bf16.mxu1 %v5999_v20  ;;  %v139_v34 = vld [vmem:[#allocation2 + $0x68] sm:$0xff] }
  0x83   :  { %v146_v9 = vld [vmem:[#allocation2 + $0xa0] sm:$0xff]  ;;  %382 = vmatpush1.bf16.msra.mxu0 %v5992_v5  ;;  %v149_v27 = vld [vmem:[#allocation2 + $0xb8] sm:$0xff]  ;;  %505 = vmatpush1.bf16.msra.mxu1 %v5998_v21  ;;  %v6006_v29 = vcombine.low %v137_v22, %v141_v23  ;;  %v6003_v39 = vcombine.high %v135_v32, %v139_v34  ;;  %v143_v41 = vld [vmem:[#allocation2 + $0x88] sm:$0xff]  ;;  %v6002_v45 = vcombine.low %v135_v32, %v139_v34 }
  0x84   :  { %383 = vmatprep.subr.bf16.mxu0 %v6001_v7  ;;  %v6009_v11 = vcombine.high %v142_v8, %v146_v9  ;;  %v150_v12 = vld [vmem:[#allocation2 + $0xc0] sm:$0xff]  ;;  %v6008_v14 = vcombine.low %v142_v8, %v146_v9  ;;  %506 = vmatprep.subr.bf16.mxu1 %v6007_v25  ;;  %v6015_v33 = vcombine.high %v145_v26, %v149_v27  ;;  %v153_v35 = vld [vmem:[#allocation2 + $0xd8] sm:$0xff]  ;;  %v147_v42 = vld [vmem:[#allocation2 + $0xa8] sm:$0xff] }
  0x85   :  { %v154_v13 = vld [vmem:[#allocation2 + $0xe0] sm:$0x33]  ;;  %v157_v37 = vld [vmem:[#allocation2 + $0xf8] sm:$0x33]  ;;  %v6014_v40 = vcombine.low %v145_v26, %v149_v27  ;;  %v6011_v46 = vcombine.high %v143_v41, %v147_v42  ;;  %v151_v47 = vld [vmem:[#allocation2 + $0xc8] sm:$0xff]  ;;  %v6010_v51 = vcombine.low %v143_v41, %v147_v42 }
  0x86   :  { %v6017_v17 = vcombine.high %v150_v12, %v154_v13  ;;  %v6016_v18 = vcombine.low %v150_v12, %v154_v13  ;;  %v124_v28 = vld [vmem:[%s8564_s0] sm:$0xff]  ;;  %v6023_v43 = vcombine.high %v153_v35, %v157_v37  ;;  %v6022_v44 = vcombine.low %v153_v35, %v157_v37  ;;  %v155_v48 = vld [vmem:[#allocation2 + $0xe8] sm:$0x33]  ;;  %v128_v54 = vld [vmem:[#allocation2 + $0x10] sm:$0xff] }
  0x87   :  { %384 = vmatpush1.bf16.msra.mxu0 %v6000_v10  ;;  %v8136_v36 = vpack.c.bf16 %v124_v28, %v124_v28  ;;  %507 = vmatpush1.bf16.msra.mxu1 %v6006_v29  ;;  %v6874_v50 = vld [vmem:[#allocation6 + $0x3c4] ss:$8 sps:$4 sm:$0xff]   ;;  %v6019_v52 = vcombine.high %v151_v47, %v155_v48  ;;  %v6018_v53 = vcombine.low %v151_v47, %v155_v48  ;;  %v6872_v55 = vld [vmem:[#allocation6 + $0x3c0] ss:$8 sps:$4 sm:$0xff]   ;;  %v6880_v57 = vld [vmem:[#allocation6 + $0x3d4] ss:$8 sps:$4 sm:$0xff]  }
  0x88   :  { %385 = vmatprep.subr.bf16.mxu0 %v6009_v11  ;;  %v358_v30 = vsel %vm356_vm0, %v6016_v18, 0  ;;  %508 = vmatprep.subr.bf16.mxu1 %v6015_v33  ;;  %v376_v49 = vsel %vm356_vm0, %v6022_v44, 0  ;;  %v132_v56 = vld [vmem:[#allocation2 + $0x30] sm:$0xff]  ;;  %v6878_v61 = vld [vmem:[#allocation6 + $0x3d0] ss:$8 sps:$4 sm:$0xff]  }
  0x89   :  { %v364_v58 = vsel %vm356_vm0, %v6018_v53, 0  ;;  %v5997_v59 = vcombine.high %v128_v54, %v132_v56  ;;  %v136_v60 = vld [vmem:[#allocation2 + $0x50] sm:$0xff]  ;;  %v5996_v1 = vcombine.low %v128_v54, %v132_v56  ;;  %v6892_v6 = vld [vmem:[#allocation6 + $0x3f4] ss:$8 sps:$4 sm:$0xff]   ;;  %v6890_v10 = vld [vmem:[#allocation6 + $0x3f0] ss:$8 sps:$4 sm:$0xff]  }
  0x8a   :  { %v140_v62 = vld [vmem:[#allocation2 + $0x70] sm:$0xff]  ;;  %v6902_v20 = vld [vmem:[#allocation6 + $0x410] ss:$8 sps:$4 sm:$0xff]   ;;  %v6877_v23 = vld [vmem:[#allocation6 + $0x14] ss:$8 sps:$4 sm:$0xff]  }
  0x8b   :  { %386 = vmatpush1.bf16.msra.mxu0 %v6008_v14  ;;  %509 = vmatpush1.bf16.msra.mxu1 %v6014_v40  ;;  %v6886_v63 = vld [vmem:[#allocation6 + $0x3e4] ss:$8 sps:$4 sm:$0xff]   ;;  %v6005_v2 = vcombine.high %v136_v60, %v140_v62  ;;  %v6884_v4 = vld [vmem:[#allocation6 + $0x3e0] ss:$8 sps:$4 sm:$0xff]   ;;  %v6004_v7 = vcombine.low %v136_v60, %v140_v62  ;;  %v6916_v25 = vld [vmem:[#allocation6 + $0x434] ss:$8 sps:$4 sm:$0xff]  }
  0x8c   :  { %6024 = vmatprep.subr.msk.bf16.mxu0 %vm356_vm0, %v6017_v17  ;;  %6030 = vmatprep.subr.msk.bf16.mxu1 %vm356_vm0, %v6023_v43  ;;  %v144_v3 = vld [vmem:[#allocation2 + $0x90] sm:$0xff]  ;;  %v6904_v17 = vld [vmem:[#allocation6 + $0x414] ss:$8 sps:$4 sm:$0xff]   ;;  %v6875_v26 = vld [vmem:[#allocation6 + $0x10] ss:$8 sps:$4 sm:$0xff]  }
  0x8d   :  { %v148_v5 = vld [vmem:[#allocation2 + $0xb0] sm:$0xff]  ;;  %v6914_v28 = vld [vmem:[#allocation6 + $0x430] ss:$8 sps:$4 sm:$0xff]   ;;  %v6928_v33 = vld [vmem:[#allocation6 + $0x454] ss:$8 sps:$4 sm:$0xff]  }
  0x8e   :  { %v6013_v8 = vcombine.high %v144_v3, %v148_v5  ;;  %v152_v9 = vld [vmem:[#allocation2 + $0xd0] sm:$0xff]  ;;  %v6012_v13 = vcombine.low %v144_v3, %v148_v5  ;;  %v6887_v34 = vld [vmem:[#allocation6 + $0x30] ss:$8 sps:$4 sm:$0xff]   ;;  %v6940_v41 = vld [vmem:[#allocation6 + $0x474] ss:$8 sps:$4 sm:$0xff]  }
  0x8f   :  { %388 = vmatpush1.bf16.msra.mxu0 %v358_v30  ;;  %511 = vmatpush1.bf16.msra.mxu1 %v376_v49  ;;  %v156_v11 = vld [vmem:[#allocation2 + $0xf0] sm:$0x33]  ;;  %v6926_v37 = vld [vmem:[#allocation6 + $0x450] ss:$8 sps:$4 sm:$0xff]   ;;  %v6913_v47 = vld [vmem:[#allocation6 + $0x74] ss:$8 sps:$4 sm:$0xff]  }
  0x90   :  { %422 = vmatprep.subr.bf16.mxu0 %v5995_v31  ;;  %2195 = vmatprep.subr.bf16.mxu1 %v6874_v50  ;;  %v6898_v12 = vld [vmem:[#allocation6 + $0x404] ss:$8 sps:$4 sm:$0xff]   ;;  %v6021_v14 = vcombine.high %v152_v9, %v156_v11  ;;  %v6020_v15 = vcombine.low %v152_v9, %v156_v11  ;;  %v6896_v16 = vld [vmem:[#allocation6 + $0x400] ss:$8 sps:$4 sm:$0xff]   ;;  %v6889_v31 = vld [vmem:[#allocation6 + $0x34] ss:$8 sps:$4 sm:$0xff]   ;;  %v160_v11 = vlaneseq }
  0x91   :  { %v6871_v19 = vld [vmem:[#allocation6 + $0x4] ss:$8 sps:$4 sm:$0xff]   ;;  %v6869_v21 = vld [vmem:[#allocation6] ss:$8 sps:$4 sm:$0xff]   ;;  %v6899_v42 = vld [vmem:[#allocation6 + $0x50] ss:$8 sps:$4 sm:$0xff]  }
  0x92   :  { %6025 = vmatmul.mubr.msk.bf16.vlgmr.msra.gmra.mrb[0].mxu0 %vm352_vm1, %v8136_v36  ;;  %6031 = vmatmul.mubr.msk.bf16.vlgmr.msra.gmra.mrb[0].mxu1 %vm352_vm1, %v8136_v36  ;;  %v370_v18 = vsel %vm356_vm0, %v6020_v15, 0  ;;  %v6910_v22 = vld [vmem:[#allocation6 + $0x424] ss:$8 sps:$4 sm:$0xff]   ;;  %v6908_v24 = vld [vmem:[#allocation6 + $0x420] ss:$8 sps:$4 sm:$0xff]  }
  0x93   :  { %423 = vmatpush1.bf16.msra.mxu0 %v5994_v38  ;;  %454 = vmatprep.mubr.bf16.mxu0 %v7984_v0  ;;  %v6883_v27 = vld [vmem:[#allocation6 + $0x24] ss:$8 sps:$4 sm:$0xff]   ;;  %v6881_v30 = vld [vmem:[#allocation6 + $0x20] ss:$8 sps:$4 sm:$0xff]   ;;  %v6938_v44 = vld [vmem:[#allocation6 + $0x470] ss:$8 sps:$4 sm:$0xff]  }
  0x94   :  { %424 = vmatprep.subr.bf16.mxu0 %v6003_v39  ;;  %2196 = vmatpush1.bf16.msra.mxu1 %v6872_v55  ;;  %v6922_v29 = vld [vmem:[#allocation6 + $0x444] ss:$8 sps:$4 sm:$0xff]   ;;  %v6920_v32 = vld [vmem:[#allocation6 + $0x440] ss:$8 sps:$4 sm:$0xff]   ;;  %v6901_v39 = vld [vmem:[#allocation6 + $0x54] ss:$8 sps:$4 sm:$0xff]  }
  0x95   :  { %2197 = vmatprep.subr.bf16.mxu1 %v6880_v57  ;;  %v6895_v35 = vld [vmem:[#allocation6 + $0x44] ss:$8 sps:$4 sm:$0xff]   ;;  %v6893_v38 = vld [vmem:[#allocation6 + $0x40] ss:$8 sps:$4 sm:$0xff]   ;;  %v6952_v49 = vld [vmem:[#allocation6 + $0x494] ss:$8 sps:$4 sm:$0xff]  }
  0x96   :  { %v6932_v40 = vld [vmem:[#allocation6 + $0x460] ss:$8 sps:$4 sm:$0xff]   ;;  %v6907_v43 = vld [vmem:[#allocation6 + $0x64] ss:$8 sps:$4 sm:$0xff]   ;;  %v6911_v50 = vld [vmem:[#allocation6 + $0x70] ss:$8 sps:$4 sm:$0xff]  }
  0x97   :  { %425 = vmatpush1.bf16.msra.mxu0 %v6002_v45  ;;  %v6946_v45 = vld [vmem:[#allocation6 + $0x484] ss:$8 sps:$4 sm:$0xff]   ;;  %v6944_v48 = vld [vmem:[#allocation6 + $0x480] ss:$8 sps:$4 sm:$0xff]   ;;  %v6925_v54 = vld [vmem:[#allocation6 + $0x94] ss:$8 sps:$4 sm:$0xff]  }
  0x98   :  { %426 = vmatprep.subr.bf16.mxu0 %v6011_v46  ;;  %2198 = vmatpush1.bf16.msra.mxu1 %v6878_v61  ;;  %v6905_v46 = vld [vmem:[#allocation6 + $0x60] ss:$8 sps:$4 sm:$0xff]   ;;  %v6923_v55 = vld [vmem:[#allocation6 + $0x90] ss:$8 sps:$4 sm:$0xff]   ;;  %v6931_v56 = vld [vmem:[#allocation6 + $0xa4] ss:$8 sps:$4 sm:$0xff]  }
  0x99   :  { %2199 = vmatprep.subr.bf16.mxu1 %v6886_v63  ;;  %v6917_v53 = vld [vmem:[#allocation6 + $0x80] ss:$8 sps:$4 sm:$0xff]   ;;  %v6943_v60 = vld [vmem:[#allocation6 + $0xc4] ss:$8 sps:$4 sm:$0xff]   ;;  %v6949_v62 = vld [vmem:[#allocation6 + $0xd4] ss:$8 sps:$4 sm:$0xff]  }
  0x9a   :  { %v6929_v57 = vld [vmem:[#allocation6 + $0xa0] ss:$8 sps:$4 sm:$0xff]   ;;  %v6947_v63 = vld [vmem:[#allocation6 + $0xd0] ss:$8 sps:$4 sm:$0xff]   ;;  %v6964_v5 = vld [vmem:[#allocation6 + $0x4b4] ss:$8 sps:$4 sm:$0xff]  }
  0x9b   :  { %427 = vmatpush1.bf16.msra.mxu0 %v6010_v51  ;;  %v6919_v51 = vld [vmem:[#allocation6 + $0x84] ss:$8 sps:$4 sm:$0xff]   ;;  %v6941_v61 = vld [vmem:[#allocation6 + $0xc0] ss:$8 sps:$4 sm:$0xff]  }
  0x9c   :  { %6026 = vmatprep.subr.msk.bf16.mxu0 %vm356_vm0, %v6019_v52  ;;  %2200 = vmatpush1.bf16.msra.mxu1 %v6884_v4  ;;  %v6950_v52 = vld [vmem:[#allocation6 + $0x490] ss:$8 sps:$4 sm:$0xff]   ;;  %v6956_v3 = vld [vmem:[#allocation6 + $0x4a0] ss:$8 sps:$4 sm:$0xff]   ;;  %v6970_v9 = vld [vmem:[#allocation6 + $0x4c4] ss:$8 sps:$4 sm:$0xff]  }
  0x9d   :  { %2201 = vmatprep.subr.bf16.mxu1 %v6892_v6  ;;  %v6953_v4 = vld [vmem:[#allocation6 + $0xe0] ss:$8 sps:$4 sm:$0xff]   ;;  %v6961_v6 = vld [vmem:[#allocation6 + $0xf4] ss:$8 sps:$4 sm:$0xff]  }
  0x9f   :  { %429 = vmatpush1.bf16.msra.mxu0 %v364_v58  ;;  %v6937_v58 = vld [vmem:[#allocation6 + $0xb4] ss:$8 sps:$4 sm:$0xff]  }
  0xa0   :  { %463 = vmatprep.subr.bf16.mxu0 %v5997_v59  ;;  %2202 = vmatpush1.bf16.msra.mxu1 %v6890_v10  ;;  %v6935_v59 = vld [vmem:[#allocation6 + $0xb0] ss:$8 sps:$4 sm:$0xff]   ;;  %v6967_v10 = vld [vmem:[#allocation6 + $0x104] ss:$8 sps:$4 sm:$0xff]  }
  0xa1   :  { %2203 = vmatprep.subr.bf16.mxu1 %v6898_v12  ;;  %v8154_v12 = vshrl.u32 %v160_v11, 7  ;;  %v7015_v11 = vld [vmem:[#allocation6 + $0x184] ss:$8 sps:$4 sm:$0xff]  }
  0xa2   :  { %6027 = vmatmul.mubr.msk.bf16.vlgmr.msra.gmra.mrb[4].mxu0 %vm352_vm1, %v8136_v36 }
  0xa3   :  { %464 = vmatpush1.bf16.msra.mxu0 %v5996_v1  ;;  %495 = vmatprep.mubr.bf16.mxu0 %v7984_v0  ;;  %v6958_v1 = vld [vmem:[#allocation6 + $0x4a4] ss:$8 sps:$4 sm:$0xff]   ;;  %v8162_v15 = vsub.s32 1, %v8154_v12 }
  0xa4   :  { %465 = vmatprep.subr.bf16.mxu0 %v6005_v2  ;;  %2204 = vmatpush1.bf16.msra.mxu1 %v6896_v16  ;;  %v6955_v2 = vld [vmem:[#allocation6 + $0xe4] ss:$8 sps:$4 sm:$0xff]  }
  0xa5   :  { %2205 = vmatprep.subr.bf16.mxu1 %v6904_v17 }
  0xa7   :  { %466 = vmatpush1.bf16.msra.mxu0 %v6004_v7  ;;  %v6962_v7 = vld [vmem:[#allocation6 + $0x4b0] ss:$8 sps:$4 sm:$0xff]  }
  0xa8   :  { %467 = vmatprep.subr.bf16.mxu0 %v6013_v8  ;;  %2206 = vmatpush1.bf16.msra.mxu1 %v6902_v20  ;;  %v6959_v8 = vld [vmem:[#allocation6 + $0xf0] ss:$8 sps:$4 sm:$0xff]  }
  0xa9   :  { %2207 = vmatprep.subr.bf16.mxu1 %v6910_v22 }
  0xab   :  { %468 = vmatpush1.bf16.msra.mxu0 %v6012_v13  ;;  %v8157_v13 = vsub.s32 0, %v8154_v12 }
  0xac   :  { %6028 = vmatprep.subr.msk.bf16.mxu0 %vm356_vm0, %v6021_v14  ;;  %2208 = vmatpush1.bf16.msra.mxu1 %v6908_v24  ;;  %v8159_v14 = vld [vmem:[#allocation4] sm:$0xff] }
  0xad   :  { %2209 = vmatprep.subr.bf16.mxu1 %v6916_v25  ;;  %v163_v16 = vrot.slane %v8159_v14, %v8157_v13  ;;  %v167_v17 = vrot.slane %v8159_v14, %v8162_v15 }
  0xaf   :  { %470 = vmatpush1.bf16.msra.mxu0 %v370_v18 }
  0xb0   :  { %1297 = vmatprep.subr.bf16.mxu0 %v6871_v19  ;;  %2210 = vmatpush1.bf16.msra.mxu1 %v6914_v28 }
  0xb1   :  { %2211 = vmatprep.subr.bf16.mxu1 %v6922_v29 }
  0xb2   :  { %6029 = vmatmul.mubr.msk.bf16.vlgmr.msra.gmra.mrb[8].mxu0 %vm352_vm1, %v8136_v36  ;;  %v6934_v36 = vld [vmem:[#allocation6 + $0x464] ss:$8 sps:$4 sm:$0xff]  }
  0xb3   :  { %1298 = vmatpush1.bf16.msra.mxu0 %v6869_v21 }
  0xb4   :  { %1299 = vmatprep.subr.bf16.mxu0 %v6877_v23  ;;  %2212 = vmatpush1.bf16.msra.mxu1 %v6920_v32  ;;  %v6971_v32 = vld [vmem:[#allocation6 + $0x110] ss:$8 sps:$4 sm:$0xff]  }
  0xb5   :  { %2213 = vmatprep.subr.bf16.mxu1 %v6928_v33  ;;  %v6974_v33 = vld [vmem:[#allocation6 + $0x4d0] ss:$8 sps:$4 sm:$0xff]  }
  0xb7   :  { %1300 = vmatpush1.bf16.msra.mxu0 %v6875_v26  ;;  %v6965_v26 = vld [vmem:[#allocation6 + $0x100] ss:$8 sps:$4 sm:$0xff]  }
  0xb8   :  { %1301 = vmatprep.subr.bf16.mxu0 %v6883_v27  ;;  %2214 = vmatpush1.bf16.msra.mxu1 %v6926_v37  ;;  %v6968_v27 = vld [vmem:[#allocation6 + $0x4c0] ss:$8 sps:$4 sm:$0xff]   ;;  %v6982_v37 = vld [vmem:[#allocation6 + $0x4e4] ss:$8 sps:$4 sm:$0xff]  }
  0xb9   :  { %2215 = vmatprep.subr.bf16.mxu1 %v6934_v36  ;;  %v6977_v36 = vld [vmem:[#allocation6 + $0x120] ss:$8 sps:$4 sm:$0xff]  }
  0xbb   :  { %1302 = vmatpush1.bf16.msra.mxu0 %v6881_v30  ;;  %v6973_v30 = vld [vmem:[#allocation6 + $0x114] ss:$8 sps:$4 sm:$0xff]  }
  0xbc   :  { %1303 = vmatprep.subr.bf16.mxu0 %v6889_v31  ;;  %2216 = vmatpush1.bf16.msra.mxu1 %v6932_v40  ;;  %v6976_v31 = vld [vmem:[#allocation6 + $0x4d4] ss:$8 sps:$4 sm:$0xff]  }
  0xbd   :  { %2217 = vmatprep.subr.bf16.mxu1 %v6940_v41  ;;  %v6985_v40 = vld [vmem:[#allocation6 + $0x134] ss:$8 sps:$4 sm:$0xff]  }
  0xbe   :  { %v6988_v41 = vld [vmem:[#allocation6 + $0x4f4] ss:$8 sps:$4 sm:$0xff]  }
  0xbf   :  { %1304 = vmatpush1.bf16.msra.mxu0 %v6887_v34  ;;  %v174_v34 = vsub.s32 3, %v8154_v12 }
  0xc0   :  { %1305 = vmatprep.subr.bf16.mxu0 %v6895_v35  ;;  %2218 = vmatpush1.bf16.msra.mxu1 %v6938_v44  ;;  %v6979_v35 = vld [vmem:[#allocation6 + $0x124] ss:$8 sps:$4 sm:$0xff]   ;;  %v6983_v44 = vld [vmem:[#allocation6 + $0x130] ss:$8 sps:$4 sm:$0xff]  }
  0xc1   :  { %2219 = vmatprep.subr.bf16.mxu1 %v6946_v45  ;;  %v6986_v45 = vld [vmem:[#allocation6 + $0x4f0] ss:$8 sps:$4 sm:$0xff]  }
  0xc3   :  { %1306 = vmatpush1.bf16.msra.mxu0 %v6893_v38  ;;  %v6980_v38 = vld [vmem:[#allocation6 + $0x4e0] ss:$8 sps:$4 sm:$0xff]  }
  0xc4   :  { %1307 = vmatprep.subr.bf16.mxu0 %v6901_v39  ;;  %2220 = vmatpush1.bf16.msra.mxu1 %v6944_v48  ;;  %v175_v39 = vrot.slane %v8159_v14, %v174_v34  ;;  %v6991_v48 = vld [vmem:[#allocation6 + $0x144] ss:$8 sps:$4 sm:$0xff]  }
  0xc5   :  { %2221 = vmatprep.subr.bf16.mxu1 %v6952_v49  ;;  %v6994_v49 = vld [vmem:[#allocation6 + $0x504] ss:$8 sps:$4 sm:$0xff]  }
  0xc7   :  { %1308 = vmatpush1.bf16.msra.mxu0 %v6899_v42 }
  0xc8   :  { %1309 = vmatprep.subr.bf16.mxu0 %v6907_v43  ;;  %2222 = vmatpush1.bf16.msra.mxu1 %v6950_v52  ;;  %v6989_v52 = vld [vmem:[#allocation6 + $0x140] ss:$8 sps:$4 sm:$0xff]  }
  0xc9   :  { %2223 = vmatprep.subr.bf16.mxu1 %v6958_v1 }
  0xcb   :  { %1310 = vmatpush1.bf16.msra.mxu0 %v6905_v46 }
  0xcc   :  { %1311 = vmatprep.subr.bf16.mxu0 %v6913_v47  ;;  %2224 = vmatpush1.bf16.msra.mxu1 %v6956_v3  ;;  %v7004_v3 = vld [vmem:[#allocation6 + $0x520] ss:$8 sps:$4 sm:$0xff]  }
  0xcd   :  { %2225 = vmatprep.subr.bf16.mxu1 %v6964_v5  ;;  %v7012_v5 = vld [vmem:[#allocation6 + $0x534] ss:$8 sps:$4 sm:$0xff]  }
  0xcf   :  { %1312 = vmatpush1.bf16.msra.mxu0 %v6911_v50 }
  0xd0   :  { %1313 = vmatprep.subr.bf16.mxu0 %v6919_v51  ;;  %2226 = vmatpush1.bf16.msra.mxu1 %v6962_v7 }
  0xd1   :  { %2236 = vmatprep.subr.bf16.mxu1 %v6970_v9  ;;  %v7010_v9 = vld [vmem:[#allocation6 + $0x530] ss:$8 sps:$4 sm:$0xff]  }
  0xd3   :  { %1314 = vmatpush1.bf16.msra.mxu0 %v6917_v53  ;;  %v6992_v53 = vld [vmem:[#allocation6 + $0x500] ss:$8 sps:$4 sm:$0xff]  }
  0xd4   :  { %1315 = vmatprep.subr.bf16.mxu0 %v6925_v54 }
  0xd7   :  { %1316 = vmatpush1.bf16.msra.mxu0 %v6923_v55  ;;  %v6997_v55 = vld [vmem:[#allocation6 + $0x154] ss:$8 sps:$4 sm:$0xff]  }
  0xd8   :  { %1317 = vmatprep.subr.bf16.mxu0 %v6931_v56  ;;  %v7000_v56 = vld [vmem:[#allocation6 + $0x514] ss:$8 sps:$4 sm:$0xff]  }
  0xdb   :  { %1318 = vmatpush1.bf16.msra.mxu0 %v6929_v57  ;;  %v6995_v57 = vld [vmem:[#allocation6 + $0x150] ss:$8 sps:$4 sm:$0xff]  }
  0xdc   :  { %1319 = vmatprep.subr.bf16.mxu0 %v6937_v58  ;;  %v6998_v58 = vld [vmem:[#allocation6 + $0x510] ss:$8 sps:$4 sm:$0xff]  }
  0xdf   :  { %1320 = vmatpush1.bf16.msra.mxu0 %v6935_v59 }
  0xe0   :  { %1321 = vmatprep.subr.bf16.mxu0 %v6943_v60  ;;  %v7003_v60 = vld [vmem:[#allocation6 + $0x164] ss:$8 sps:$4 sm:$0xff]  }
  0xe3   :  { %1322 = vmatpush1.bf16.msra.mxu0 %v6941_v61  ;;  %v7006_v61 = vld [vmem:[#allocation6 + $0x524] ss:$8 sps:$4 sm:$0xff]  }
  0xe4   :  { %1323 = vmatprep.subr.bf16.mxu0 %v6949_v62 }
  0xe7   :  { %1324 = vmatpush1.bf16.msra.mxu0 %v6947_v63 }
  0xe8   :  { %1325 = vmatprep.subr.bf16.mxu0 %v6955_v2  ;;  %v7001_v2 = vld [vmem:[#allocation6 + $0x160] ss:$8 sps:$4 sm:$0xff]  }
  0xeb   :  { %1326 = vmatpush1.bf16.msra.mxu0 %v6953_v4  ;;  %v7009_v4 = vld [vmem:[#allocation6 + $0x174] ss:$8 sps:$4 sm:$0xff]  }
  0xec   :  { %1327 = vmatprep.subr.bf16.mxu0 %v6961_v6 }
  0xef   :  { %1328 = vmatpush1.bf16.msra.mxu0 %v6959_v8  ;;  %v7007_v8 = vld [vmem:[#allocation6 + $0x170] ss:$8 sps:$4 sm:$0xff]  }
  0xf0   :  { %1338 = vmatprep.subr.bf16.mxu0 %v6967_v10 }
 0x165   :  { %v415_v18 = vpop.f32.mrb[0].mxu0  ;;  %v8186_v59 = vpop.f32.mrb[0].mxu1 }
 0x166   :  { %v416_v19 = vadd.f32 %v415_v18, %v163_v16  ;;  %v417_v20 = vpop.f32.mrb[1].mxu0  ;;  %v8188_v62 = vpop.f32.mrb[1].mxu1  ;;  %v7018_v16 = vld [vmem:[#allocation6 + $0x544] ss:$8 sps:$4 sm:$0xff]   ;;  %v7013_v18 = vld [vmem:[#allocation6 + $0x180] ss:$8 sps:$4 sm:$0xff]  }
 0x167   :  { %v418_v21 = vadd.f32 %v417_v20, %v167_v17  ;;  %v419_v22 = vpop.f32.mrb[2].mxu0  ;;  %v542_v63 = vpop.f32.mrb[2].mxu1  ;;  %v7021_v20 = vld [vmem:[#allocation6 + $0x194] ss:$8 sps:$4 sm:$0xff]  }
 0x168   :  { %v545_v23 = vmax.f32 %v416_v19, 0.0  ;;  %v420_v24 = vpop.f32.mrb[3].mxu0  ;;  %v543_v1 = vpop.f32.mrb[3].mxu1  ;;  %v7016_v19 = vld [vmem:[#allocation6 + $0x540] ss:$8 sps:$4 sm:$0xff]  }
 0x169   :  { %v546_v25 = vmax.f32 %v418_v21, 0.0  ;;  %v7024_v21 = vld [vmem:[#allocation6 + $0x554] ss:$8 sps:$4 sm:$0xff]   ;;  %v7019_v22 = vld [vmem:[#allocation6 + $0x190] ss:$8 sps:$4 sm:$0xff]  }
 0x16a   :  { %v8170_v29 = vpack.c.bf16 %v545_v23, %v545_v23  ;;  %v7022_v23 = vld [vmem:[#allocation6 + $0x550] ss:$8 sps:$4 sm:$0xff]   ;;  %v7027_v24 = vld [vmem:[#allocation6 + $0x1a4] ss:$8 sps:$4 sm:$0xff]   ;;  %v7061_v63 = vld [vmem:[#allocation6 + $0x200] ss:$8 sps:$4 sm:$0xff]  }
 0x16b   :  { %v8168_v28 = vpack.c.bf16 %v546_v25, %v546_v25  ;;  %v7030_v25 = vld [vmem:[#allocation6 + $0x564] ss:$8 sps:$4 sm:$0xff]   ;;  %v7064_v1 = vld [vmem:[#allocation6 + $0x5c0] ss:$8 sps:$4 sm:$0xff]  }
 0x16d   :  { %1329 = vmatprep.mubr.bf16.mxu0 %v8168_v28  ;;  %2227 = vmatprep.mubr.bf16.mxu1 %v8168_v28 }
 0x16e   :  { %1330 = vmatmul.mubr.bf16.vlgmr.msra.gmra.mrb[12].mxu0 %v8170_v29  ;;  %2228 = vmatmul.mubr.bf16.vlgmr.msra.gmra.mrb[4].mxu1 %v8170_v29 }
 0x16f   :  { %1339 = vmatpush1.bf16.msra.mxu0 %v6965_v26  ;;  %2237 = vmatpush1.bf16.msra.mxu1 %v6968_v27  ;;  %v7025_v26 = vld [vmem:[#allocation6 + $0x1a0] ss:$8 sps:$4 sm:$0xff]  }
 0x170   :  { %1340 = vmatprep.subr.bf16.mxu0 %v6973_v30  ;;  %2238 = vmatprep.subr.bf16.mxu1 %v6976_v31  ;;  %v7028_v27 = vld [vmem:[#allocation6 + $0x560] ss:$8 sps:$4 sm:$0xff]   ;;  %v7033_v30 = vld [vmem:[#allocation6 + $0x1b4] ss:$8 sps:$4 sm:$0xff]  }
 0x171   :  { %v7036_v31 = vld [vmem:[#allocation6 + $0x574] ss:$8 sps:$4 sm:$0xff]  }
 0x173   :  { %1341 = vmatpush1.bf16.msra.mxu0 %v6971_v32  ;;  %2239 = vmatpush1.bf16.msra.mxu1 %v6974_v33  ;;  %v7031_v32 = vld [vmem:[#allocation6 + $0x1b0] ss:$8 sps:$4 sm:$0xff]  }
 0x174   :  { %1342 = vmatprep.subr.bf16.mxu0 %v6979_v35  ;;  %2240 = vmatprep.subr.bf16.mxu1 %v6982_v37  ;;  %v7034_v33 = vld [vmem:[#allocation6 + $0x570] ss:$8 sps:$4 sm:$0xff]   ;;  %v7039_v35 = vld [vmem:[#allocation6 + $0x1c4] ss:$8 sps:$4 sm:$0xff]  }
 0x175   :  { %v8180_v42 = vpop.f32.mrb[4].mxu0  ;;  %v7042_v37 = vld [vmem:[#allocation6 + $0x584] ss:$8 sps:$4 sm:$0xff]  }
 0x176   :  { %v458_v43 = vpop.f32.mrb[5].mxu0 }
 0x177   :  { %1343 = vmatpush1.bf16.msra.mxu0 %v6977_v36  ;;  %2241 = vmatpush1.bf16.msra.mxu1 %v6980_v38  ;;  %v459_v46 = vadd.f32 %v458_v43, %v175_v39  ;;  %v460_v47 = vpop.f32.mrb[6].mxu0  ;;  %v170_v36 = vsub.s32 2, %v8154_v12  ;;  %v7037_v38 = vld [vmem:[#allocation6 + $0x1c0] ss:$8 sps:$4 sm:$0xff]   ;;  %v7043_v43 = vld [vmem:[#allocation6 + $0x1d0] ss:$8 sps:$4 sm:$0xff]  }
 0x178   :  { %1344 = vmatprep.subr.bf16.mxu0 %v6985_v40  ;;  %2242 = vmatprep.subr.bf16.mxu1 %v6988_v41  ;;  %v461_v50 = vpop.f32.mrb[7].mxu0  ;;  %v7040_v39 = vld [vmem:[#allocation6 + $0x580] ss:$8 sps:$4 sm:$0xff]   ;;  %v7045_v40 = vld [vmem:[#allocation6 + $0x1d4] ss:$8 sps:$4 sm:$0xff]  }
 0x179   :  { %v548_v51 = vmax.f32 %v459_v46, 0.0  ;;  %v7048_v41 = vld [vmem:[#allocation6 + $0x594] ss:$8 sps:$4 sm:$0xff]   ;;  %v182_v46 = vsub.s32 5, %v8154_v12  ;;  %v7051_v47 = vld [vmem:[#allocation6 + $0x1e4] ss:$8 sps:$4 sm:$0xff]  }
 0x17a   :  { %v7049_v50 = vld [vmem:[#allocation6 + $0x1e0] ss:$8 sps:$4 sm:$0xff]  }
 0x17b   :  { %1345 = vmatpush1.bf16.msra.mxu0 %v6983_v44  ;;  %2243 = vmatpush1.bf16.msra.mxu1 %v6986_v45  ;;  %v8182_v54 = vpack.c.bf16 %v548_v51, %v548_v51  ;;  %v7046_v44 = vld [vmem:[#allocation6 + $0x590] ss:$8 sps:$4 sm:$0xff]   ;;  %v171_v45 = vrot.slane %v8159_v14, %v170_v36  ;;  %v7052_v51 = vld [vmem:[#allocation6 + $0x5a0] ss:$8 sps:$4 sm:$0xff]  }
 0x17c   :  { %1346 = vmatprep.subr.bf16.mxu0 %v6991_v48  ;;  %2244 = vmatprep.subr.bf16.mxu1 %v6994_v49  ;;  %v7054_v48 = vld [vmem:[#allocation6 + $0x5a4] ss:$8 sps:$4 sm:$0xff]  }
 0x17d   :  { %1370 = vmatprep.mubr.bf16.mxu0 %v8182_v54  ;;  %2268 = vmatprep.mubr.bf16.mxu1 %v8182_v54  ;;  %v457_v49 = vadd.f32 %v8180_v42, %v171_v45  ;;  %v7063_v42 = vld [vmem:[#allocation6 + $0x204] ss:$8 sps:$4 sm:$0xff]   ;;  %v7112_v45 = vld [vmem:[#allocation6 + $0x640] ss:$8 sps:$4 sm:$0xff]  }
 0x17f   :  { %1347 = vmatpush1.bf16.msra.mxu0 %v6989_v52  ;;  %2245 = vmatpush1.bf16.msra.mxu1 %v6992_v53  ;;  %v183_v52 = vrot.slane %v8159_v14, %v182_v46  ;;  %v7057_v53 = vld [vmem:[#allocation6 + $0x1f4] ss:$8 sps:$4 sm:$0xff]  }
 0x180   :  { %1348 = vmatprep.subr.bf16.mxu0 %v6997_v55  ;;  %2246 = vmatprep.subr.bf16.mxu1 %v7000_v56  ;;  %v7060_v55 = vld [vmem:[#allocation6 + $0x5b4] ss:$8 sps:$4 sm:$0xff]   ;;  %v547_v56 = vmax.f32 %v457_v49, 0.0  ;;  %v7118_v49 = vld [vmem:[#allocation6 + $0x650] ss:$8 sps:$4 sm:$0xff]  }
 0x181   :  { %v7117_v46 = vld [vmem:[#allocation6 + $0x294] ss:$8 sps:$4 sm:$0xff]  }
 0x183   :  { %1349 = vmatpush1.bf16.msra.mxu0 %v6995_v57  ;;  %2247 = vmatpush1.bf16.msra.mxu1 %v6998_v58  ;;  %v7055_v57 = vld [vmem:[#allocation6 + $0x1f0] ss:$8 sps:$4 sm:$0xff]  }
 0x184   :  { %1350 = vmatprep.subr.bf16.mxu0 %v7003_v60  ;;  %2248 = vmatprep.subr.bf16.mxu1 %v7006_v61  ;;  %v7058_v58 = vld [vmem:[#allocation6 + $0x5b0] ss:$8 sps:$4 sm:$0xff]   ;;  %v7066_v61 = vld [vmem:[#allocation6 + $0x5c4] ss:$8 sps:$4 sm:$0xff]  }
 0x185   :  { %v8190_v6 = vpop.f32.mrb[8].mxu0 }
 0x186   :  { %v8192_v7 = vpop.f32.mrb[9].mxu0 }
 0x187   :  { %1351 = vmatpush1.bf16.msra.mxu0 %v7001_v2  ;;  %2249 = vmatpush1.bf16.msra.mxu1 %v7004_v3  ;;  %v501_v10 = vpop.f32.mrb[10].mxu0  ;;  %v500_v60 = vadd.f32 %v8192_v7, %v183_v52  ;;  %v8202_v2 = vpack.c.bf16 %v547_v56, %v547_v56  ;;  %v7069_v3 = vld [vmem:[#allocation6 + $0x214] ss:$8 sps:$4 sm:$0xff]   ;;  %v7121_v52 = vld [vmem:[#allocation6 + $0x2a0] ss:$8 sps:$4 sm:$0xff]  }
 0x188   :  { %1352 = vmatprep.subr.bf16.mxu0 %v7009_v4  ;;  %2250 = vmatprep.subr.bf16.mxu1 %v7012_v5  ;;  %v502_v17 = vpop.f32.mrb[11].mxu0  ;;  %v7072_v4 = vld [vmem:[#allocation6 + $0x5d4] ss:$8 sps:$4 sm:$0xff]   ;;  %v7067_v5 = vld [vmem:[#allocation6 + $0x210] ss:$8 sps:$4 sm:$0xff]  }
 0x189   :  { %v550_v14 = vmax.f32 %v500_v60, 0.0  ;;  %v7078_v10 = vld [vmem:[#allocation6 + $0x5e4] ss:$8 sps:$4 sm:$0xff]   ;;  %v7081_v17 = vld [vmem:[#allocation6 + $0x234] ss:$8 sps:$4 sm:$0xff]  }
 0x18a   :  { %v7132_v56 = vld [vmem:[#allocation6 + $0x674] ss:$8 sps:$4 sm:$0xff]   ;;  %v7135_v60 = vld [vmem:[#allocation6 + $0x2c4] ss:$8 sps:$4 sm:$0xff]  }
 0x18b   :  { %1353 = vmatpush1.bf16.msra.mxu0 %v7007_v8  ;;  %2251 = vmatpush1.bf16.msra.mxu1 %v7010_v9  ;;  %v7070_v8 = vld [vmem:[#allocation6 + $0x5d0] ss:$8 sps:$4 sm:$0xff]   ;;  %v8204_v7 = vpack.c.bf16 %v550_v14, %v550_v14  ;;  %v7075_v9 = vld [vmem:[#allocation6 + $0x224] ss:$8 sps:$4 sm:$0xff]   ;;  %v7141_v14 = vld [vmem:[#allocation6 + $0x2d4] ss:$8 sps:$4 sm:$0xff]  }
 0x18c   :  { %1354 = vmatprep.subr.bf16.mxu0 %v7015_v11  ;;  %2252 = vmatprep.subr.bf16.mxu1 %v7018_v16  ;;  %v7073_v11 = vld [vmem:[#allocation6 + $0x220] ss:$8 sps:$4 sm:$0xff]  }
 0x18d   :  { %v7076_v16 = vld [vmem:[#allocation6 + $0x5e0] ss:$8 sps:$4 sm:$0xff]  }
 0x18f   :  { %1355 = vmatpush1.bf16.msra.mxu0 %v7013_v18  ;;  %2253 = vmatpush1.bf16.msra.mxu1 %v7016_v19  ;;  %v7084_v18 = vld [vmem:[#allocation6 + $0x5f4] ss:$8 sps:$4 sm:$0xff]   ;;  %v7079_v19 = vld [vmem:[#allocation6 + $0x230] ss:$8 sps:$4 sm:$0xff]  }
 0x190   :  { %1356 = vmatprep.subr.bf16.mxu0 %v7021_v20  ;;  %2254 = vmatprep.subr.bf16.mxu1 %v7024_v21  ;;  %v7082_v20 = vld [vmem:[#allocation6 + $0x5f0] ss:$8 sps:$4 sm:$0xff]   ;;  %v7087_v21 = vld [vmem:[#allocation6 + $0x244] ss:$8 sps:$4 sm:$0xff]  }
 0x193   :  { %1357 = vmatpush1.bf16.msra.mxu0 %v7019_v22  ;;  %2255 = vmatpush1.bf16.msra.mxu1 %v7022_v23  ;;  %v7090_v22 = vld [vmem:[#allocation6 + $0x604] ss:$8 sps:$4 sm:$0xff]   ;;  %v7085_v23 = vld [vmem:[#allocation6 + $0x240] ss:$8 sps:$4 sm:$0xff]  }
 0x194   :  { %1358 = vmatprep.subr.bf16.mxu0 %v7027_v24  ;;  %2256 = vmatprep.subr.bf16.mxu1 %v7030_v25  ;;  %v7088_v24 = vld [vmem:[#allocation6 + $0x600] ss:$8 sps:$4 sm:$0xff]   ;;  %v7093_v25 = vld [vmem:[#allocation6 + $0x254] ss:$8 sps:$4 sm:$0xff]  }
 0x197   :  { %1359 = vmatpush1.bf16.msra.mxu0 %v7025_v26  ;;  %2257 = vmatpush1.bf16.msra.mxu1 %v7028_v27  ;;  %v7096_v26 = vld [vmem:[#allocation6 + $0x614] ss:$8 sps:$4 sm:$0xff]   ;;  %v7091_v27 = vld [vmem:[#allocation6 + $0x250] ss:$8 sps:$4 sm:$0xff]  }
 0x198   :  { %1360 = vmatprep.subr.bf16.mxu0 %v7033_v30  ;;  %2258 = vmatprep.subr.bf16.mxu1 %v7036_v31  ;;  %v7094_v30 = vld [vmem:[#allocation6 + $0x610] ss:$8 sps:$4 sm:$0xff]   ;;  %v7099_v31 = vld [vmem:[#allocation6 + $0x264] ss:$8 sps:$4 sm:$0xff]  }
 0x19b   :  { %1361 = vmatpush1.bf16.msra.mxu0 %v7031_v32  ;;  %2259 = vmatpush1.bf16.msra.mxu1 %v7034_v33  ;;  %v7102_v32 = vld [vmem:[#allocation6 + $0x624] ss:$8 sps:$4 sm:$0xff]   ;;  %v7097_v33 = vld [vmem:[#allocation6 + $0x260] ss:$8 sps:$4 sm:$0xff]  }
 0x19c   :  { %1362 = vmatprep.subr.bf16.mxu0 %v7039_v35  ;;  %2260 = vmatprep.subr.bf16.mxu1 %v7042_v37  ;;  %v7100_v35 = vld [vmem:[#allocation6 + $0x620] ss:$8 sps:$4 sm:$0xff]   ;;  %v7105_v37 = vld [vmem:[#allocation6 + $0x274] ss:$8 sps:$4 sm:$0xff]  }
 0x19f   :  { %1363 = vmatpush1.bf16.msra.mxu0 %v7037_v38  ;;  %2261 = vmatpush1.bf16.msra.mxu1 %v7040_v39  ;;  %v7108_v38 = vld [vmem:[#allocation6 + $0x634] ss:$8 sps:$4 sm:$0xff]   ;;  %v7103_v39 = vld [vmem:[#allocation6 + $0x270] ss:$8 sps:$4 sm:$0xff]  }
 0x1a0   :  { %1364 = vmatprep.subr.bf16.mxu0 %v7045_v40  ;;  %2262 = vmatprep.subr.bf16.mxu1 %v7048_v41  ;;  %v7106_v40 = vld [vmem:[#allocation6 + $0x630] ss:$8 sps:$4 sm:$0xff]   ;;  %v7111_v41 = vld [vmem:[#allocation6 + $0x284] ss:$8 sps:$4 sm:$0xff]  }
 0x1a3   :  { %1365 = vmatpush1.bf16.msra.mxu0 %v7043_v43  ;;  %2263 = vmatpush1.bf16.msra.mxu1 %v7046_v44  ;;  %v7114_v43 = vld [vmem:[#allocation6 + $0x644] ss:$8 sps:$4 sm:$0xff]   ;;  %v7109_v44 = vld [vmem:[#allocation6 + $0x280] ss:$8 sps:$4 sm:$0xff]  }
 0x1a4   :  { %1366 = vmatprep.subr.bf16.mxu0 %v7051_v47  ;;  %2264 = vmatprep.subr.bf16.mxu1 %v7054_v48  ;;  %v7120_v47 = vld [vmem:[#allocation6 + $0x654] ss:$8 sps:$4 sm:$0xff]   ;;  %v7115_v48 = vld [vmem:[#allocation6 + $0x290] ss:$8 sps:$4 sm:$0xff]  }
 0x1a7   :  { %1367 = vmatpush1.bf16.msra.mxu0 %v7049_v50  ;;  %2265 = vmatpush1.bf16.msra.mxu1 %v7052_v51  ;;  %v7123_v50 = vld [vmem:[#allocation6 + $0x2a4] ss:$8 sps:$4 sm:$0xff]  }
 0x1a8   :  { %1368 = vmatprep.subr.bf16.mxu0 %v7057_v53  ;;  %2266 = vmatprep.subr.bf16.mxu1 %v7060_v55  ;;  %v7126_v51 = vld [vmem:[#allocation6 + $0x664] ss:$8 sps:$4 sm:$0xff]   ;;  %v7124_v53 = vld [vmem:[#allocation6 + $0x660] ss:$8 sps:$4 sm:$0xff]   ;;  %v7129_v55 = vld [vmem:[#allocation6 + $0x2b4] ss:$8 sps:$4 sm:$0xff]  }
 0x1ab   :  { %1369 = vmatpush1.bf16.msra.mxu0 %v7055_v57  ;;  %2267 = vmatpush1.bf16.msra.mxu1 %v7058_v58  ;;  %v7127_v57 = vld [vmem:[#allocation6 + $0x2b0] ss:$8 sps:$4 sm:$0xff]  }
 0x1ac   :  { %1379 = vmatprep.subr.bf16.mxu0 %v7063_v42  ;;  %2277 = vmatprep.subr.bf16.mxu1 %v7066_v61  ;;  %v7130_v58 = vld [vmem:[#allocation6 + $0x670] ss:$8 sps:$4 sm:$0xff]   ;;  %v7138_v42 = vld [vmem:[#allocation6 + $0x684] ss:$8 sps:$4 sm:$0xff]   ;;  %v7133_v61 = vld [vmem:[#allocation6 + $0x2c0] ss:$8 sps:$4 sm:$0xff]  }
 0x1ae   :  { %1371 = vmatmul.mubr.bf16.vlgmr.msra.gmra.mrb[12].mxu0 %v8202_v2  ;;  %2269 = vmatmul.mubr.bf16.vlgmr.msra.gmra.mrb[4].mxu1 %v8202_v2 }
 0x1af   :  { %1380 = vmatpush1.bf16.msra.mxu0 %v7061_v63  ;;  %2278 = vmatpush1.bf16.msra.mxu1 %v7064_v1  ;;  %v7136_v63 = vld [vmem:[#allocation6 + $0x680] ss:$8 sps:$4 sm:$0xff]   ;;  %v178_v1 = vsub.s32 4, %v8154_v12 }
 0x1b0   :  { %1381 = vmatprep.subr.bf16.mxu0 %v7069_v3  ;;  %2279 = vmatprep.subr.bf16.mxu1 %v7072_v4  ;;  %v7144_v3 = vld [vmem:[#allocation6 + $0x694] ss:$8 sps:$4 sm:$0xff]   ;;  %v7139_v4 = vld [vmem:[#allocation6 + $0x2d0] ss:$8 sps:$4 sm:$0xff]  }
 0x1b1   :  { %1411 = vmatprep.mubr.bf16.mxu0 %v8204_v7  ;;  %2309 = vmatprep.mubr.bf16.mxu1 %v8204_v7 }
 0x1b3   :  { %1382 = vmatpush1.bf16.msra.mxu0 %v7067_v5  ;;  %2280 = vmatpush1.bf16.msra.mxu1 %v7070_v8  ;;  %v7142_v5 = vld [vmem:[#allocation6 + $0x690] ss:$8 sps:$4 sm:$0xff]  }
 0x1b4   :  { %1383 = vmatprep.subr.bf16.mxu0 %v7075_v9  ;;  %2281 = vmatprep.subr.bf16.mxu1 %v7078_v10  ;;  %v8211_v8 = vld [vmem:[#allocation4] sm:$0xff]  ;;  %v190_v10 = vsub.s32 7, %v8154_v12 }
 0x1b5   :  { %v179_v9 = vrot.slane %v8211_v8, %v178_v1  ;;  %v7204_v1 = vld [vmem:[#allocation6 + $0x734] ss:$8 sps:$4 sm:$0xff]  }
 0x1b7   :  { %1384 = vmatpush1.bf16.msra.mxu0 %v7073_v11  ;;  %2282 = vmatpush1.bf16.msra.mxu1 %v7076_v16  ;;  %v7147_v11 = vld [vmem:[#allocation6 + $0x2e4] ss:$8 sps:$4 sm:$0xff]  }
 0x1b8   :  { %1385 = vmatprep.subr.bf16.mxu0 %v7081_v17  ;;  %2283 = vmatprep.subr.bf16.mxu1 %v7084_v18  ;;  %v7150_v16 = vld [vmem:[#allocation6 + $0x6a4] ss:$8 sps:$4 sm:$0xff]   ;;  %v498_v17 = vadd.f32 %v8190_v6, %v179_v9  ;;  %v7145_v18 = vld [vmem:[#allocation6 + $0x2e0] ss:$8 sps:$4 sm:$0xff]  }
 0x1b9   :  { %v7159_v6 = vld [vmem:[#allocation6 + $0x304] ss:$8 sps:$4 sm:$0xff]   ;;  %v7205_v9 = vld [vmem:[#allocation6 + $0x380] ss:$8 sps:$4 sm:$0xff]  }
 0x1bb   :  { %1386 = vmatpush1.bf16.msra.mxu0 %v7079_v19  ;;  %2284 = vmatpush1.bf16.msra.mxu1 %v7082_v20  ;;  %v191_v19 = vrot.slane %v8211_v8, %v190_v10  ;;  %v7148_v20 = vld [vmem:[#allocation6 + $0x6a0] ss:$8 sps:$4 sm:$0xff]  }
 0x1bc   :  { %1387 = vmatprep.subr.bf16.mxu0 %v7087_v21  ;;  %2285 = vmatprep.subr.bf16.mxu1 %v7090_v22  ;;  %v7153_v21 = vld [vmem:[#allocation6 + $0x2f4] ss:$8 sps:$4 sm:$0xff]   ;;  %v7208_v10 = vld [vmem:[#allocation6 + $0x740] ss:$8 sps:$4 sm:$0xff]  }
 0x1bd   :  { %v7156_v22 = vld [vmem:[#allocation6 + $0x6b4] ss:$8 sps:$4 sm:$0xff]  }
 0x1bf   :  { %1388 = vmatpush1.bf16.msra.mxu0 %v7085_v23  ;;  %2286 = vmatpush1.bf16.msra.mxu1 %v7088_v24  ;;  %v549_v23 = vmax.f32 %v498_v17, 0.0  ;;  %v7151_v24 = vld [vmem:[#allocation6 + $0x2f0] ss:$8 sps:$4 sm:$0xff]   ;;  %v7216_v17 = vld [vmem:[#allocation6 + $0x754] ss:$8 sps:$4 sm:$0xff]  }
 0x1c0   :  { %1389 = vmatprep.subr.bf16.mxu0 %v7093_v25  ;;  %2287 = vmatprep.subr.bf16.mxu1 %v7096_v26  ;;  %v7154_v25 = vld [vmem:[#allocation6 + $0x6b0] ss:$8 sps:$4 sm:$0xff]   ;;  %v541_v26 = vadd.f32 %v8188_v62, %v191_v19 }
 0x1c1   :  { %v7214_v19 = vld [vmem:[#allocation6 + $0x750] ss:$8 sps:$4 sm:$0xff]  }
 0x1c3   :  { %1390 = vmatpush1.bf16.msra.mxu0 %v7091_v27  ;;  %2288 = vmatpush1.bf16.msra.mxu1 %v7094_v30  ;;  %v7162_v27 = vld [vmem:[#allocation6 + $0x6c4] ss:$8 sps:$4 sm:$0xff]   ;;  %v7157_v30 = vld [vmem:[#allocation6 + $0x300] ss:$8 sps:$4 sm:$0xff]  }
 0x1c4   :  { %1391 = vmatprep.subr.bf16.mxu0 %v7099_v31  ;;  %2289 = vmatprep.subr.bf16.mxu1 %v7102_v32  ;;  %v7160_v31 = vld [vmem:[#allocation6 + $0x6c0] ss:$8 sps:$4 sm:$0xff]   ;;  %v552_v32 = vmax.f32 %v541_v26, 0.0  ;;  %v7225_v26 = vld [vmem:[#allocation6 + $0x3b4] ss:$8 sps:$4 sm:$0xff]  }
 0x1c6   :  { %v8220_v62 = vpack.c.bf16 %v552_v32, %v552_v32  ;;  %v7234_v32 = vld [vmem:[#allocation6 + $0xb44] ss:$8 sps:$4 sm:$0xff]  }
 0x1c7   :  { %1392 = vmatpush1.bf16.msra.mxu0 %v7097_v33  ;;  %2290 = vmatpush1.bf16.msra.mxu1 %v7100_v35  ;;  %v8218_v33 = vpack.c.bf16 %v549_v23, %v549_v23  ;;  %v7165_v35 = vld [vmem:[#allocation6 + $0x314] ss:$8 sps:$4 sm:$0xff]   ;;  %v7217_v23 = vld [vmem:[#allocation6 + $0x3a0] ss:$8 sps:$4 sm:$0xff]  }
 0x1c8   :  { %1393 = vmatprep.subr.bf16.mxu0 %v7105_v37  ;;  %2291 = vmatprep.subr.bf16.mxu1 %v7108_v38  ;;  %v7168_v37 = vld [vmem:[#allocation6 + $0x6d4] ss:$8 sps:$4 sm:$0xff]   ;;  %v7163_v38 = vld [vmem:[#allocation6 + $0x310] ss:$8 sps:$4 sm:$0xff]  }
 0x1cb   :  { %1394 = vmatpush1.bf16.msra.mxu0 %v7103_v39  ;;  %2292 = vmatpush1.bf16.msra.mxu1 %v7106_v40  ;;  %v7166_v39 = vld [vmem:[#allocation6 + $0x6d0] ss:$8 sps:$4 sm:$0xff]   ;;  %v7171_v40 = vld [vmem:[#allocation6 + $0x324] ss:$8 sps:$4 sm:$0xff]  }
 0x1cc   :  { %1395 = vmatprep.subr.bf16.mxu0 %v7111_v41  ;;  %2293 = vmatprep.subr.bf16.mxu1 %v7114_v43  ;;  %v7174_v41 = vld [vmem:[#allocation6 + $0x6e4] ss:$8 sps:$4 sm:$0xff]   ;;  %v7169_v43 = vld [vmem:[#allocation6 + $0x320] ss:$8 sps:$4 sm:$0xff]  }
 0x1cf   :  { %1396 = vmatpush1.bf16.msra.mxu0 %v7109_v44  ;;  %2294 = vmatpush1.bf16.msra.mxu1 %v7112_v45  ;;  %v7172_v44 = vld [vmem:[#allocation6 + $0x6e0] ss:$8 sps:$4 sm:$0xff]   ;;  %v7177_v45 = vld [vmem:[#allocation6 + $0x334] ss:$8 sps:$4 sm:$0xff]  }
 0x1d0   :  { %1397 = vmatprep.subr.bf16.mxu0 %v7117_v46  ;;  %2295 = vmatprep.subr.bf16.mxu1 %v7120_v47  ;;  %v7180_v46 = vld [vmem:[#allocation6 + $0x6f4] ss:$8 sps:$4 sm:$0xff]   ;;  %v7175_v47 = vld [vmem:[#allocation6 + $0x330] ss:$8 sps:$4 sm:$0xff]  }
 0x1d3   :  { %1398 = vmatpush1.bf16.msra.mxu0 %v7115_v48  ;;  %2296 = vmatpush1.bf16.msra.mxu1 %v7118_v49  ;;  %v7178_v48 = vld [vmem:[#allocation6 + $0x6f0] ss:$8 sps:$4 sm:$0xff]   ;;  %v7183_v49 = vld [vmem:[#allocation6 + $0x344] ss:$8 sps:$4 sm:$0xff]  }
 0x1d4   :  { %1399 = vmatprep.subr.bf16.mxu0 %v7123_v50  ;;  %2297 = vmatprep.subr.bf16.mxu1 %v7126_v51  ;;  %v7186_v50 = vld [vmem:[#allocation6 + $0x704] ss:$8 sps:$4 sm:$0xff]   ;;  %v7181_v51 = vld [vmem:[#allocation6 + $0x340] ss:$8 sps:$4 sm:$0xff]  }
 0x1d7   :  { %1400 = vmatpush1.bf16.msra.mxu0 %v7121_v52  ;;  %2298 = vmatpush1.bf16.msra.mxu1 %v7124_v53  ;;  %v7184_v52 = vld [vmem:[#allocation6 + $0x700] ss:$8 sps:$4 sm:$0xff]   ;;  %v7189_v53 = vld [vmem:[#allocation6 + $0x354] ss:$8 sps:$4 sm:$0xff]  }
 0x1d8   :  { %1401 = vmatprep.subr.bf16.mxu0 %v7129_v55  ;;  %2299 = vmatprep.subr.bf16.mxu1 %v7132_v56  ;;  %v7192_v55 = vld [vmem:[#allocation6 + $0x714] ss:$8 sps:$4 sm:$0xff]   ;;  %v7187_v56 = vld [vmem:[#allocation6 + $0x350] ss:$8 sps:$4 sm:$0xff]  }
 0x1db   :  { %1402 = vmatpush1.bf16.msra.mxu0 %v7127_v57  ;;  %2300 = vmatpush1.bf16.msra.mxu1 %v7130_v58  ;;  %v7190_v57 = vld [vmem:[#allocation6 + $0x710] ss:$8 sps:$4 sm:$0xff]   ;;  %v7195_v58 = vld [vmem:[#allocation6 + $0x364] ss:$8 sps:$4 sm:$0xff]  }
 0x1dc   :  { %1403 = vmatprep.subr.bf16.mxu0 %v7135_v60  ;;  %2301 = vmatprep.subr.bf16.mxu1 %v7138_v42  ;;  %v7198_v60 = vld [vmem:[#allocation6 + $0x724] ss:$8 sps:$4 sm:$0xff]   ;;  %v7193_v42 = vld [vmem:[#allocation6 + $0x360] ss:$8 sps:$4 sm:$0xff]  }
 0x1df   :  { %1404 = vmatpush1.bf16.msra.mxu0 %v7133_v61  ;;  %2302 = vmatpush1.bf16.msra.mxu1 %v7136_v63  ;;  %v7196_v61 = vld [vmem:[#allocation6 + $0x720] ss:$8 sps:$4 sm:$0xff]   ;;  %v7201_v63 = vld [vmem:[#allocation6 + $0x374] ss:$8 sps:$4 sm:$0xff]  }
 0x1e0   :  { %1405 = vmatprep.subr.bf16.mxu0 %v7141_v14  ;;  %2303 = vmatprep.subr.bf16.mxu1 %v7144_v3  ;;  %v7199_v14 = vld [vmem:[#allocation6 + $0x370] ss:$8 sps:$4 sm:$0xff]  }
 0x1e1   :  { %v7202_v3 = vld [vmem:[#allocation6 + $0x730] ss:$8 sps:$4 sm:$0xff]  }
 0x1e3   :  { %1406 = vmatpush1.bf16.msra.mxu0 %v7139_v4  ;;  %2304 = vmatpush1.bf16.msra.mxu1 %v7142_v5  ;;  %v7207_v4 = vld [vmem:[#allocation6 + $0x384] ss:$8 sps:$4 sm:$0xff]  }
 0x1e4   :  { %1407 = vmatprep.subr.bf16.mxu0 %v7147_v11  ;;  %2305 = vmatprep.subr.bf16.mxu1 %v7150_v16  ;;  %v7210_v5 = vld [vmem:[#allocation6 + $0x744] ss:$8 sps:$4 sm:$0xff]   ;;  %v186_v11 = vsub.s32 6, %v8154_v12  ;;  %v7213_v16 = vld [vmem:[#allocation6 + $0x394] ss:$8 sps:$4 sm:$0xff]  }
 0x1e7   :  { %1408 = vmatpush1.bf16.msra.mxu0 %v7145_v18  ;;  %2306 = vmatpush1.bf16.msra.mxu1 %v7148_v20  ;;  %v7211_v18 = vld [vmem:[#allocation6 + $0x390] ss:$8 sps:$4 sm:$0xff]   ;;  %v187_v20 = vrot.slane %v8211_v8, %v186_v11  ;;  %v7231_v8 = vld [vmem:[#allocation6 + $0x784] ss:$8 sps:$4 sm:$0xff]   ;;  %v7280_v11 = vld [vmem:[#allocation6 + $0xbc0] ss:$8 sps:$4 sm:$0xff]  }
 0x1e8   :  { %1409 = vmatprep.subr.bf16.mxu0 %v7153_v21  ;;  %2307 = vmatprep.subr.bf16.mxu1 %v7156_v22  ;;  %v7219_v21 = vld [vmem:[#allocation6 + $0x3a4] ss:$8 sps:$4 sm:$0xff]  }
 0x1e9   :  { %v7222_v22 = vld [vmem:[#allocation6 + $0x764] ss:$8 sps:$4 sm:$0xff]  }
 0x1eb   :  { %1410 = vmatpush1.bf16.msra.mxu0 %v7151_v24  ;;  %2308 = vmatpush1.bf16.msra.mxu1 %v7154_v25  ;;  %v7220_v24 = vld [vmem:[#allocation6 + $0x760] ss:$8 sps:$4 sm:$0xff]   ;;  %v539_v25 = vadd.f32 %v8186_v59, %v187_v20  ;;  %v7291_v20 = vld [vmem:[#allocation6 + $0x824] ss:$8 sps:$4 sm:$0xff]  }
 0x1ec   :  { %1420 = vmatprep.subr.bf16.mxu0 %v7159_v6  ;;  %2318 = vmatprep.subr.bf16.mxu1 %v7162_v27  ;;  %v7228_v6 = vld [vmem:[#allocation6 + $0x774] ss:$8 sps:$4 sm:$0xff]   ;;  %v7223_v27 = vld [vmem:[#allocation6 + $0x3b0] ss:$8 sps:$4 sm:$0xff]   ;;  %v7232_v59 = vld [vmem:[#allocation6 + $0xb40] ss:$8 sps:$4 sm:$0xff]  }
 0x1ee   :  { %1412 = vmatmul.mubr.bf16.vlgmr.msra.gmra.mrb[12].mxu0 %v8218_v33  ;;  %2310 = vmatmul.mubr.bf16.vlgmr.msra.gmra.mrb[4].mxu1 %v8218_v33 }
 0x1ef   :  { %1421 = vmatpush1.bf16.msra.mxu0 %v7157_v30  ;;  %2319 = vmatpush1.bf16.msra.mxu1 %v7160_v31  ;;  %v7226_v30 = vld [vmem:[#allocation6 + $0x770] ss:$8 sps:$4 sm:$0xff]   ;;  %v551_v31 = vmax.f32 %v539_v25, 0.0  ;;  %v7300_v25 = vld [vmem:[#allocation6 + $0xbf4] ss:$8 sps:$4 sm:$0xff]  }
 0x1f0   :  { %1422 = vmatprep.subr.bf16.mxu0 %v7165_v35  ;;  %2320 = vmatprep.subr.bf16.mxu1 %v7168_v37  ;;  %v7229_v35 = vld [vmem:[#allocation6 + $0x780] ss:$8 sps:$4 sm:$0xff]  }
 0x1f1   :  { %6152 = vmatprep.mubr.msk.bf16.mxu0 %vm1293_vm2, %v8220_v62  ;;  %6273 = vmatprep.mubr.msk.bf16.mxu1 %vm1293_vm2, %v8220_v62  ;;  %v8231_v37 = vpack.c.bf16 %v551_v31, %v551_v31  ;;  %v7301_v31 = vld [vmem:[#allocation6 + $0x840] ss:$8 sps:$4 sm:$0xff]  }
 0x1f3   :  { %1423 = vmatpush1.bf16.msra.mxu0 %v7163_v38  ;;  %2321 = vmatpush1.bf16.msra.mxu1 %v7166_v39  ;;  %v7237_v38 = vld [vmem:[#allocation6 + $0x794] ss:$8 sps:$4 sm:$0xff]  }
 0x1f4   :  { %1424 = vmatprep.subr.bf16.mxu0 %v7171_v40  ;;  %2322 = vmatprep.subr.bf16.mxu1 %v7174_v41  ;;  %v7240_v39 = vld [vmem:[#allocation6 + $0xb54] ss:$8 sps:$4 sm:$0xff]   ;;  %v7235_v40 = vld [vmem:[#allocation6 + $0x790] ss:$8 sps:$4 sm:$0xff]  }
 0x1f5   :  { %v7238_v41 = vld [vmem:[#allocation6 + $0xb50] ss:$8 sps:$4 sm:$0xff]  }
 0x1f7   :  { %1425 = vmatpush1.bf16.msra.mxu0 %v7169_v43  ;;  %2323 = vmatpush1.bf16.msra.mxu1 %v7172_v44  ;;  %v7243_v43 = vld [vmem:[#allocation6 + $0x7a4] ss:$8 sps:$4 sm:$0xff]  }
 0x1f8   :  { %1426 = vmatprep.subr.bf16.mxu0 %v7177_v45  ;;  %2324 = vmatprep.subr.bf16.mxu1 %v7180_v46  ;;  %v7246_v44 = vld [vmem:[#allocation6 + $0xb64] ss:$8 sps:$4 sm:$0xff]   ;;  %v7241_v45 = vld [vmem:[#allocation6 + $0x7a0] ss:$8 sps:$4 sm:$0xff]  }
 0x1f9   :  { %v7244_v46 = vld [vmem:[#allocation6 + $0xb60] ss:$8 sps:$4 sm:$0xff]  }
 0x1fb   :  { %1427 = vmatpush1.bf16.msra.mxu0 %v7175_v47  ;;  %2325 = vmatpush1.bf16.msra.mxu1 %v7178_v48  ;;  %v7249_v47 = vld [vmem:[#allocation6 + $0x7b4] ss:$8 sps:$4 sm:$0xff]  }
 0x1fc   :  { %1428 = vmatprep.subr.bf16.mxu0 %v7183_v49  ;;  %2326 = vmatprep.subr.bf16.mxu1 %v7186_v50  ;;  %v7252_v48 = vld [vmem:[#allocation6 + $0xb74] ss:$8 sps:$4 sm:$0xff]   ;;  %v7247_v49 = vld [vmem:[#allocation6 + $0x7b0] ss:$8 sps:$4 sm:$0xff]  }
 0x1fd   :  { %v7250_v50 = vld [vmem:[#allocation6 + $0xb70] ss:$8 sps:$4 sm:$0xff]  }
 0x1ff   :  { %1429 = vmatpush1.bf16.msra.mxu0 %v7181_v51  ;;  %2327 = vmatpush1.bf16.msra.mxu1 %v7184_v52  ;;  %v7255_v51 = vld [vmem:[#allocation6 + $0x7c4] ss:$8 sps:$4 sm:$0xff]   ;;  %v7253_v52 = vld [vmem:[#allocation6 + $0x7c0] ss:$8 sps:$4 sm:$0xff]  }
 0x200   :  { %1430 = vmatprep.subr.bf16.mxu0 %v7189_v53  ;;  %2328 = vmatprep.subr.bf16.mxu1 %v7192_v55  ;;  %v7256_v53 = vld [vmem:[#allocation6 + $0xb80] ss:$8 sps:$4 sm:$0xff]   ;;  %v7261_v55 = vld [vmem:[#allocation6 + $0x7d4] ss:$8 sps:$4 sm:$0xff]  }
 0x203   :  { %1431 = vmatpush1.bf16.msra.mxu0 %v7187_v56  ;;  %2329 = vmatpush1.bf16.msra.mxu1 %v7190_v57  ;;  %v7264_v56 = vld [vmem:[#allocation6 + $0xb94] ss:$8 sps:$4 sm:$0xff]   ;;  %v7259_v57 = vld [vmem:[#allocation6 + $0x7d0] ss:$8 sps:$4 sm:$0xff]  }
 0x204   :  { %1432 = vmatprep.subr.bf16.mxu0 %v7195_v58  ;;  %2330 = vmatprep.subr.bf16.mxu1 %v7198_v60  ;;  %v7262_v58 = vld [vmem:[#allocation6 + $0xb90] ss:$8 sps:$4 sm:$0xff]   ;;  %v7267_v60 = vld [vmem:[#allocation6 + $0x7e4] ss:$8 sps:$4 sm:$0xff]  }
 0x207   :  { %1433 = vmatpush1.bf16.msra.mxu0 %v7193_v42  ;;  %2331 = vmatpush1.bf16.msra.mxu1 %v7196_v61  ;;  %v7270_v42 = vld [vmem:[#allocation6 + $0xba4] ss:$8 sps:$4 sm:$0xff]   ;;  %v7265_v61 = vld [vmem:[#allocation6 + $0x7e0] ss:$8 sps:$4 sm:$0xff]  }
 0x208   :  { %1434 = vmatprep.subr.bf16.mxu0 %v7201_v63  ;;  %2332 = vmatprep.subr.bf16.mxu1 %v7204_v1  ;;  %v7268_v63 = vld [vmem:[#allocation6 + $0xba0] ss:$8 sps:$4 sm:$0xff]   ;;  %v7273_v1 = vld [vmem:[#allocation6 + $0x7f4] ss:$8 sps:$4 sm:$0xff]  }
 0x20b   :  { %1435 = vmatpush1.bf16.msra.mxu0 %v7199_v14  ;;  %2333 = vmatpush1.bf16.msra.mxu1 %v7202_v3  ;;  %v7276_v14 = vld [vmem:[#allocation6 + $0xbb4] ss:$8 sps:$4 sm:$0xff]   ;;  %v7271_v3 = vld [vmem:[#allocation6 + $0x7f0] ss:$8 sps:$4 sm:$0xff]  }
 0x20c   :  { %1436 = vmatprep.subr.bf16.mxu0 %v7207_v4  ;;  %2334 = vmatprep.subr.bf16.mxu1 %v7210_v5  ;;  %v7274_v4 = vld [vmem:[#allocation6 + $0xbb0] ss:$8 sps:$4 sm:$0xff]   ;;  %v7279_v5 = vld [vmem:[#allocation6 + $0x804] ss:$8 sps:$4 sm:$0xff]  }
 0x20f   :  { %1437 = vmatpush1.bf16.msra.mxu0 %v7205_v9  ;;  %2335 = vmatpush1.bf16.msra.mxu1 %v7208_v10  ;;  %v7282_v9 = vld [vmem:[#allocation6 + $0xbc4] ss:$8 sps:$4 sm:$0xff]   ;;  %v7277_v10 = vld [vmem:[#allocation6 + $0x800] ss:$8 sps:$4 sm:$0xff]  }
 0x210   :  { %1438 = vmatprep.subr.bf16.mxu0 %v7213_v16  ;;  %2336 = vmatprep.subr.bf16.mxu1 %v7216_v17  ;;  %v7285_v16 = vld [vmem:[#allocation6 + $0x814] ss:$8 sps:$4 sm:$0xff]  }
 0x211   :  { %v7288_v17 = vld [vmem:[#allocation6 + $0xbd4] ss:$8 sps:$4 sm:$0xff]  }
 0x213   :  { %1439 = vmatpush1.bf16.msra.mxu0 %v7211_v18  ;;  %2337 = vmatpush1.bf16.msra.mxu1 %v7214_v19  ;;  %v7283_v18 = vld [vmem:[#allocation6 + $0x810] ss:$8 sps:$4 sm:$0xff]  }
 0x214   :  { %1440 = vmatprep.subr.bf16.mxu0 %v7219_v21  ;;  %2338 = vmatprep.subr.bf16.mxu1 %v7222_v22  ;;  %v7286_v19 = vld [vmem:[#allocation6 + $0xbd0] ss:$8 sps:$4 sm:$0xff]   ;;  %v7294_v21 = vld [vmem:[#allocation6 + $0xbe4] ss:$8 sps:$4 sm:$0xff]   ;;  %v7289_v22 = vld [vmem:[#allocation6 + $0x820] ss:$8 sps:$4 sm:$0xff]  }
 0x217   :  { %1441 = vmatpush1.bf16.msra.mxu0 %v7217_v23  ;;  %2339 = vmatpush1.bf16.msra.mxu1 %v7220_v24  ;;  %v7292_v23 = vld [vmem:[#allocation6 + $0xbe0] ss:$8 sps:$4 sm:$0xff]   ;;  %v7297_v24 = vld [vmem:[#allocation6 + $0x834] ss:$8 sps:$4 sm:$0xff]  }
 0x218   :  { %1442 = vmatprep.subr.bf16.mxu0 %v7225_v26  ;;  %2340 = vmatprep.subr.bf16.mxu1 %v7228_v6  ;;  %v7295_v26 = vld [vmem:[#allocation6 + $0x830] ss:$8 sps:$4 sm:$0xff]  }
 0x219   :  { %v7298_v6 = vld [vmem:[#allocation6 + $0xbf0] ss:$8 sps:$4 sm:$0xff]  }
 0x21b   :  { %1443 = vmatpush1.bf16.msra.mxu0 %v7223_v27  ;;  %2341 = vmatpush1.bf16.msra.mxu1 %v7226_v30  ;;  %v7303_v27 = vld [vmem:[#allocation6 + $0x844] ss:$8 sps:$4 sm:$0xff]  }
 0x21c   :  { %3095 = vmatprep.subr.bf16.mxu0 %v7231_v8  ;;  %3995 = vmatprep.subr.bf16.mxu1 %v7234_v32  ;;  %v7306_v30 = vld [vmem:[#allocation6 + $0xc04] ss:$8 sps:$4 sm:$0xff]   ;;  %v7304_v8 = vld [vmem:[#allocation6 + $0xc00] ss:$8 sps:$4 sm:$0xff]   ;;  %v7309_v32 = vld [vmem:[#allocation6 + $0x854] ss:$8 sps:$4 sm:$0xff]  }
 0x21e   :  { %1453 = vmatmul.mubr.bf16.vlgmr.msra.gmra.mrb[12].mxu0 %v8231_v37  ;;  %2351 = vmatmul.mubr.bf16.vlgmr.msra.gmra.mrb[4].mxu1 %v8231_v37 }
 0x21f   :  { %3096 = vmatpush1.bf16.msra.mxu0 %v7229_v35  ;;  %3127 = vmatprep.mubr.bf16.mxu0 %v8168_v28  ;;  %v7312_v35 = vld [vmem:[#allocation6 + $0xc14] ss:$8 sps:$4 sm:$0xff]  }
 0x220   :  { %3996 = vmatpush1.bf16.msra.mxu1 %v7232_v59  ;;  %4027 = vmatprep.mubr.bf16.mxu1 %v8168_v28  ;;  %v7258_v28 = vld [vmem:[#allocation6 + $0xb84] ss:$8 sps:$4 sm:$0xff]   ;;  %v7307_v59 = vld [vmem:[#allocation6 + $0x850] ss:$8 sps:$4 sm:$0xff]  }
 0x221   :  { %3097 = vmatprep.subr.bf16.mxu0 %v7237_v38  ;;  %3997 = vmatprep.subr.bf16.mxu1 %v7240_v39  ;;  %v7310_v38 = vld [vmem:[#allocation6 + $0xc10] ss:$8 sps:$4 sm:$0xff]   ;;  %v7315_v39 = vld [vmem:[#allocation6 + $0x864] ss:$8 sps:$4 sm:$0xff]  }
 0x223   :  { %3098 = vmatpush1.bf16.msra.mxu0 %v7235_v40  ;;  %v7318_v40 = vld [vmem:[#allocation6 + $0xc24] ss:$8 sps:$4 sm:$0xff]  }
 0x224   :  { %3998 = vmatpush1.bf16.msra.mxu1 %v7238_v41  ;;  %3099 = vmatprep.subr.bf16.mxu0 %v7243_v43  ;;  %v7313_v41 = vld [vmem:[#allocation6 + $0x860] ss:$8 sps:$4 sm:$0xff]  }
 0x225   :  { %3999 = vmatprep.subr.bf16.mxu1 %v7246_v44  ;;  %v7316_v43 = vld [vmem:[#allocation6 + $0xc20] ss:$8 sps:$4 sm:$0xff]   ;;  %v7321_v44 = vld [vmem:[#allocation6 + $0x874] ss:$8 sps:$4 sm:$0xff]  }
 0x227   :  { %3100 = vmatpush1.bf16.msra.mxu0 %v7241_v45  ;;  %v7324_v45 = vld [vmem:[#allocation6 + $0xc34] ss:$8 sps:$4 sm:$0xff]  }
 0x228   :  { %4000 = vmatpush1.bf16.msra.mxu1 %v7244_v46  ;;  %3101 = vmatprep.subr.bf16.mxu0 %v7249_v47  ;;  %v7319_v46 = vld [vmem:[#allocation6 + $0x870] ss:$8 sps:$4 sm:$0xff]  }
 0x229   :  { %4001 = vmatprep.subr.bf16.mxu1 %v7252_v48  ;;  %v7322_v47 = vld [vmem:[#allocation6 + $0xc30] ss:$8 sps:$4 sm:$0xff]   ;;  %v7327_v48 = vld [vmem:[#allocation6 + $0x884] ss:$8 sps:$4 sm:$0xff]  }
 0x22b   :  { %3102 = vmatpush1.bf16.msra.mxu0 %v7247_v49  ;;  %v7330_v49 = vld [vmem:[#allocation6 + $0xc44] ss:$8 sps:$4 sm:$0xff]  }
 0x22c   :  { %4002 = vmatpush1.bf16.msra.mxu1 %v7250_v50  ;;  %3103 = vmatprep.subr.bf16.mxu0 %v7255_v51  ;;  %v7325_v50 = vld [vmem:[#allocation6 + $0x880] ss:$8 sps:$4 sm:$0xff]  }
 0x22d   :  { %4003 = vmatprep.subr.bf16.mxu1 %v7258_v28  ;;  %v7328_v51 = vld [vmem:[#allocation6 + $0xc40] ss:$8 sps:$4 sm:$0xff]   ;;  %v7333_v28 = vld [vmem:[#allocation6 + $0x894] ss:$8 sps:$4 sm:$0xff]  }
 0x22f   :  { %3104 = vmatpush1.bf16.msra.mxu0 %v7253_v52  ;;  %v7336_v52 = vld [vmem:[#allocation6 + $0xc54] ss:$8 sps:$4 sm:$0xff]  }
 0x230   :  { %4004 = vmatpush1.bf16.msra.mxu1 %v7256_v53  ;;  %3105 = vmatprep.subr.bf16.mxu0 %v7261_v55  ;;  %v7331_v53 = vld [vmem:[#allocation6 + $0x890] ss:$8 sps:$4 sm:$0xff]  }
 0x231   :  { %4005 = vmatprep.subr.bf16.mxu1 %v7264_v56  ;;  %v7334_v55 = vld [vmem:[#allocation6 + $0xc50] ss:$8 sps:$4 sm:$0xff]   ;;  %v7339_v56 = vld [vmem:[#allocation6 + $0x8a4] ss:$8 sps:$4 sm:$0xff]  }
 0x233   :  { %3106 = vmatpush1.bf16.msra.mxu0 %v7259_v57  ;;  %v7342_v57 = vld [vmem:[#allocation6 + $0xc64] ss:$8 sps:$4 sm:$0xff]  }
 0x234   :  { %4006 = vmatpush1.bf16.msra.mxu1 %v7262_v58  ;;  %3107 = vmatprep.subr.bf16.mxu0 %v7267_v60  ;;  %v7337_v58 = vld [vmem:[#allocation6 + $0x8a0] ss:$8 sps:$4 sm:$0xff]  }
 0x235   :  { %4007 = vmatprep.subr.bf16.mxu1 %v7270_v42  ;;  %v7340_v60 = vld [vmem:[#allocation6 + $0xc60] ss:$8 sps:$4 sm:$0xff]   ;;  %v7345_v42 = vld [vmem:[#allocation6 + $0x8b4] ss:$8 sps:$4 sm:$0xff]  }
 0x237   :  { %3108 = vmatpush1.bf16.msra.mxu0 %v7265_v61  ;;  %v7343_v61 = vld [vmem:[#allocation6 + $0x8b0] ss:$8 sps:$4 sm:$0xff]  }
 0x238   :  { %4008 = vmatpush1.bf16.msra.mxu1 %v7268_v63  ;;  %3109 = vmatprep.subr.bf16.mxu0 %v7273_v1  ;;  %v7346_v63 = vld [vmem:[#allocation6 + $0xc70] ss:$8 sps:$4 sm:$0xff]   ;;  %v7351_v1 = vld [vmem:[#allocation6 + $0x8c4] ss:$8 sps:$4 sm:$0xff]  }
 0x239   :  { %4009 = vmatprep.subr.bf16.mxu1 %v7276_v14  ;;  %v7354_v14 = vld [vmem:[#allocation6 + $0xc84] ss:$8 sps:$4 sm:$0xff]  }
 0x23b   :  { %3110 = vmatpush1.bf16.msra.mxu0 %v7271_v3  ;;  %v7352_v3 = vld [vmem:[#allocation6 + $0xc80] ss:$8 sps:$4 sm:$0xff]  }
 0x23c   :  { %4010 = vmatpush1.bf16.msra.mxu1 %v7274_v4  ;;  %3111 = vmatprep.subr.bf16.mxu0 %v7279_v5  ;;  %v7357_v4 = vld [vmem:[#allocation6 + $0x8d4] ss:$8 sps:$4 sm:$0xff]  }
 0x23d   :  { %4011 = vmatprep.subr.bf16.mxu1 %v7282_v9  ;;  %v7360_v5 = vld [vmem:[#allocation6 + $0xc94] ss:$8 sps:$4 sm:$0xff]   ;;  %v7355_v9 = vld [vmem:[#allocation6 + $0x8d0] ss:$8 sps:$4 sm:$0xff]  }
 0x23f   :  { %3112 = vmatpush1.bf16.msra.mxu0 %v7277_v10  ;;  %v7358_v10 = vld [vmem:[#allocation6 + $0xc90] ss:$8 sps:$4 sm:$0xff]  }
 0x240   :  { %4012 = vmatpush1.bf16.msra.mxu1 %v7280_v11  ;;  %3113 = vmatprep.subr.bf16.mxu0 %v7285_v16  ;;  %v7363_v11 = vld [vmem:[#allocation6 + $0x8e4] ss:$8 sps:$4 sm:$0xff]  }
 0x241   :  { %4013 = vmatprep.subr.bf16.mxu1 %v7288_v17  ;;  %v7366_v16 = vld [vmem:[#allocation6 + $0xca4] ss:$8 sps:$4 sm:$0xff]   ;;  %v7361_v17 = vld [vmem:[#allocation6 + $0x8e0] ss:$8 sps:$4 sm:$0xff]  }
 0x243   :  { %3114 = vmatpush1.bf16.msra.mxu0 %v7283_v18  ;;  %v7364_v18 = vld [vmem:[#allocation6 + $0xca0] ss:$8 sps:$4 sm:$0xff]  }
 0x244   :  { %4014 = vmatpush1.bf16.msra.mxu1 %v7286_v19  ;;  %3115 = vmatprep.subr.bf16.mxu0 %v7291_v20  ;;  %v7369_v19 = vld [vmem:[#allocation6 + $0x8f4] ss:$8 sps:$4 sm:$0xff]  }
 0x245   :  { %4015 = vmatprep.subr.bf16.mxu1 %v7294_v21  ;;  %v7372_v20 = vld [vmem:[#allocation6 + $0xcb4] ss:$8 sps:$4 sm:$0xff]   ;;  %v7367_v21 = vld [vmem:[#allocation6 + $0x8f0] ss:$8 sps:$4 sm:$0xff]  }
 0x247   :  { %3116 = vmatpush1.bf16.msra.mxu0 %v7289_v22  ;;  %v7370_v22 = vld [vmem:[#allocation6 + $0xcb0] ss:$8 sps:$4 sm:$0xff]  }
 0x248   :  { %4016 = vmatpush1.bf16.msra.mxu1 %v7292_v23  ;;  %3117 = vmatprep.subr.bf16.mxu0 %v7297_v24  ;;  %v7375_v23 = vld [vmem:[#allocation6 + $0x904] ss:$8 sps:$4 sm:$0xff]  }
 0x249   :  { %4017 = vmatprep.subr.bf16.mxu1 %v7300_v25  ;;  %v7378_v24 = vld [vmem:[#allocation6 + $0xcc4] ss:$8 sps:$4 sm:$0xff]   ;;  %v7373_v25 = vld [vmem:[#allocation6 + $0x900] ss:$8 sps:$4 sm:$0xff]  }
 0x24b   :  { %3118 = vmatpush1.bf16.msra.mxu0 %v7295_v26  ;;  %v7376_v26 = vld [vmem:[#allocation6 + $0xcc0] ss:$8 sps:$4 sm:$0xff]  }
 0x24c   :  { %4018 = vmatpush1.bf16.msra.mxu1 %v7298_v6  ;;  %3119 = vmatprep.subr.bf16.mxu0 %v7303_v27  ;;  %v7381_v6 = vld [vmem:[#allocation6 + $0x914] ss:$8 sps:$4 sm:$0xff]  }
 0x24d   :  { %4019 = vmatprep.subr.bf16.mxu1 %v7306_v30  ;;  %v7384_v27 = vld [vmem:[#allocation6 + $0xcd4] ss:$8 sps:$4 sm:$0xff]   ;;  %v7379_v30 = vld [vmem:[#allocation6 + $0x910] ss:$8 sps:$4 sm:$0xff]  }
 0x24f   :  { %3120 = vmatpush1.bf16.msra.mxu0 %v7301_v31  ;;  %v7382_v31 = vld [vmem:[#allocation6 + $0xcd0] ss:$8 sps:$4 sm:$0xff]  }
 0x250   :  { %4020 = vmatpush1.bf16.msra.mxu1 %v7304_v8  ;;  %3121 = vmatprep.subr.bf16.mxu0 %v7309_v32  ;;  %v7387_v8 = vld [vmem:[#allocation6 + $0x924] ss:$8 sps:$4 sm:$0xff]  }
 0x251   :  { %4021 = vmatprep.subr.bf16.mxu1 %v7312_v35  ;;  %v7390_v32 = vld [vmem:[#allocation6 + $0xce4] ss:$8 sps:$4 sm:$0xff]   ;;  %v7385_v35 = vld [vmem:[#allocation6 + $0x920] ss:$8 sps:$4 sm:$0xff]  }
 0x253   :  { %3122 = vmatpush1.bf16.msra.mxu0 %v7307_v59  ;;  %v7388_v59 = vld [vmem:[#allocation6 + $0xce0] ss:$8 sps:$4 sm:$0xff]  }
 0x254   :  { %4022 = vmatpush1.bf16.msra.mxu1 %v7310_v38  ;;  %3123 = vmatprep.subr.bf16.mxu0 %v7315_v39  ;;  %v7393_v38 = vld [vmem:[#allocation6 + $0x934] ss:$8 sps:$4 sm:$0xff]  }
 0x255   :  { %4023 = vmatprep.subr.bf16.mxu1 %v7318_v40  ;;  %v7396_v39 = vld [vmem:[#allocation6 + $0xcf4] ss:$8 sps:$4 sm:$0xff]   ;;  %v7391_v40 = vld [vmem:[#allocation6 + $0x930] ss:$8 sps:$4 sm:$0xff]  }
 0x257   :  { %3124 = vmatpush1.bf16.msra.mxu0 %v7313_v41  ;;  %v7394_v41 = vld [vmem:[#allocation6 + $0xcf0] ss:$8 sps:$4 sm:$0xff]  }
 0x258   :  { %4024 = vmatpush1.bf16.msra.mxu1 %v7316_v43  ;;  %3125 = vmatprep.subr.bf16.mxu0 %v7321_v44  ;;  %v7399_v43 = vld [vmem:[#allocation6 + $0x944] ss:$8 sps:$4 sm:$0xff]  }
 0x259   :  { %4025 = vmatprep.subr.bf16.mxu1 %v7324_v45  ;;  %v7402_v44 = vld [vmem:[#allocation6 + $0xd04] ss:$8 sps:$4 sm:$0xff]   ;;  %v7397_v45 = vld [vmem:[#allocation6 + $0x940] ss:$8 sps:$4 sm:$0xff]  }
 0x25b   :  { %3126 = vmatpush1.bf16.msra.mxu0 %v7319_v46  ;;  %v7400_v46 = vld [vmem:[#allocation6 + $0xd00] ss:$8 sps:$4 sm:$0xff]  }
 0x25c   :  { %4026 = vmatpush1.bf16.msra.mxu1 %v7322_v47  ;;  %3136 = vmatprep.subr.bf16.mxu0 %v7327_v48  ;;  %v7405_v47 = vld [vmem:[#allocation6 + $0x954] ss:$8 sps:$4 sm:$0xff]  }
 0x25d   :  { %4036 = vmatprep.subr.bf16.mxu1 %v7330_v49  ;;  %v7408_v48 = vld [vmem:[#allocation6 + $0xd14] ss:$8 sps:$4 sm:$0xff]   ;;  %v7403_v49 = vld [vmem:[#allocation6 + $0x950] ss:$8 sps:$4 sm:$0xff]  }
 0x25e   :  { %3128 = vmatmul.mubr.bf16.vlgmr.msra.gmra.mrb[16].mxu0 %v8170_v29 }
 0x25f   :  { %4028 = vmatmul.mubr.bf16.vlgmr.msra.gmra.mrb[8].mxu1 %v8170_v29  ;;  %3137 = vmatpush1.bf16.msra.mxu0 %v7325_v50  ;;  %v7348_v29 = vld [vmem:[#allocation6 + $0xc74] ss:$8 sps:$4 sm:$0xff]   ;;  %v7406_v50 = vld [vmem:[#allocation6 + $0xd10] ss:$8 sps:$4 sm:$0xff]  }
 0x260   :  { %3168 = vmatprep.mubr.bf16.mxu0 %v8182_v54  ;;  %4037 = vmatpush1.bf16.msra.mxu1 %v7328_v51  ;;  %v7411_v51 = vld [vmem:[#allocation6 + $0x964] ss:$8 sps:$4 sm:$0xff]  }
 0x261   :  { %4068 = vmatprep.mubr.bf16.mxu1 %v8182_v54  ;;  %3138 = vmatprep.subr.bf16.mxu0 %v7333_v28  ;;  %v7349_v54 = vld [vmem:[#allocation6 + $0x8c0] ss:$8 sps:$4 sm:$0xff]   ;;  %v7414_v28 = vld [vmem:[#allocation6 + $0xd24] ss:$8 sps:$4 sm:$0xff]  }
 0x262   :  { %4038 = vmatprep.subr.bf16.mxu1 %v7336_v52  ;;  %v7409_v52 = vld [vmem:[#allocation6 + $0x960] ss:$8 sps:$4 sm:$0xff]  }
 0x263   :  { %3139 = vmatpush1.bf16.msra.mxu0 %v7331_v53  ;;  %v7412_v53 = vld [vmem:[#allocation6 + $0xd20] ss:$8 sps:$4 sm:$0xff]  }
 0x264   :  { %4039 = vmatpush1.bf16.msra.mxu1 %v7334_v55  ;;  %3140 = vmatprep.subr.bf16.mxu0 %v7339_v56  ;;  %v7417_v55 = vld [vmem:[#allocation6 + $0x974] ss:$8 sps:$4 sm:$0xff]  }
 0x265   :  { %4040 = vmatprep.subr.bf16.mxu1 %v7342_v57  ;;  %v7420_v56 = vld [vmem:[#allocation6 + $0xd34] ss:$8 sps:$4 sm:$0xff]   ;;  %v7415_v57 = vld [vmem:[#allocation6 + $0x970] ss:$8 sps:$4 sm:$0xff]  }
 0x267   :  { %3141 = vmatpush1.bf16.msra.mxu0 %v7337_v58  ;;  %v7418_v58 = vld [vmem:[#allocation6 + $0xd30] ss:$8 sps:$4 sm:$0xff]  }
 0x268   :  { %4041 = vmatpush1.bf16.msra.mxu1 %v7340_v60  ;;  %3142 = vmatprep.subr.bf16.mxu0 %v7345_v42  ;;  %v7423_v60 = vld [vmem:[#allocation6 + $0x984] ss:$8 sps:$4 sm:$0xff]  }
 0x269   :  { %4042 = vmatprep.subr.bf16.mxu1 %v7348_v29  ;;  %v7426_v42 = vld [vmem:[#allocation6 + $0xd44] ss:$8 sps:$4 sm:$0xff]   ;;  %v7421_v29 = vld [vmem:[#allocation6 + $0x980] ss:$8 sps:$4 sm:$0xff]  }
 0x26b   :  { %3143 = vmatpush1.bf16.msra.mxu0 %v7343_v61  ;;  %v7424_v61 = vld [vmem:[#allocation6 + $0xd40] ss:$8 sps:$4 sm:$0xff]  }
 0x26c   :  { %4043 = vmatpush1.bf16.msra.mxu1 %v7346_v63  ;;  %3144 = vmatprep.subr.bf16.mxu0 %v7351_v1  ;;  %v7429_v63 = vld [vmem:[#allocation6 + $0x994] ss:$8 sps:$4 sm:$0xff]  }
 0x26d   :  { %4044 = vmatprep.subr.bf16.mxu1 %v7354_v14  ;;  %v7432_v1 = vld [vmem:[#allocation6 + $0xd54] ss:$8 sps:$4 sm:$0xff]   ;;  %v7427_v14 = vld [vmem:[#allocation6 + $0x990] ss:$8 sps:$4 sm:$0xff]  }
 0x26f   :  { %3145 = vmatpush1.bf16.msra.mxu0 %v7349_v54  ;;  %v7430_v54 = vld [vmem:[#allocation6 + $0xd50] ss:$8 sps:$4 sm:$0xff]  }
 0x270   :  { %4045 = vmatpush1.bf16.msra.mxu1 %v7352_v3  ;;  %3146 = vmatprep.subr.bf16.mxu0 %v7357_v4  ;;  %v7435_v3 = vld [vmem:[#allocation6 + $0x9a4] ss:$8 sps:$4 sm:$0xff]  }
 0x271   :  { %4046 = vmatprep.subr.bf16.mxu1 %v7360_v5  ;;  %v7438_v4 = vld [vmem:[#allocation6 + $0xd64] ss:$8 sps:$4 sm:$0xff]   ;;  %v7433_v5 = vld [vmem:[#allocation6 + $0x9a0] ss:$8 sps:$4 sm:$0xff]  }
 0x273   :  { %3147 = vmatpush1.bf16.msra.mxu0 %v7355_v9  ;;  %v7436_v9 = vld [vmem:[#allocation6 + $0xd60] ss:$8 sps:$4 sm:$0xff]  }
 0x274   :  { %4047 = vmatpush1.bf16.msra.mxu1 %v7358_v10  ;;  %3148 = vmatprep.subr.bf16.mxu0 %v7363_v11  ;;  %v7441_v10 = vld [vmem:[#allocation6 + $0x9b4] ss:$8 sps:$4 sm:$0xff]   ;;  %v7439_v11 = vld [vmem:[#allocation6 + $0x9b0] ss:$8 sps:$4 sm:$0xff]  }
 0x275   :  { %4048 = vmatprep.subr.bf16.mxu1 %v7366_v16  ;;  %v7442_v16 = vld [vmem:[#allocation6 + $0xd70] ss:$8 sps:$4 sm:$0xff]  }
 0x277   :  { %3149 = vmatpush1.bf16.msra.mxu0 %v7361_v17  ;;  %v7447_v17 = vld [vmem:[#allocation6 + $0x9c4] ss:$8 sps:$4 sm:$0xff]  }
 0x278   :  { %4049 = vmatpush1.bf16.msra.mxu1 %v7364_v18  ;;  %3150 = vmatprep.subr.bf16.mxu0 %v7369_v19  ;;  %v7450_v18 = vld [vmem:[#allocation6 + $0xd84] ss:$8 sps:$4 sm:$0xff]   ;;  %v7448_v19 = vld [vmem:[#allocation6 + $0xd80] ss:$8 sps:$4 sm:$0xff]  }
 0x279   :  { %4050 = vmatprep.subr.bf16.mxu1 %v7372_v20  ;;  %v7453_v20 = vld [vmem:[#allocation6 + $0x9d4] ss:$8 sps:$4 sm:$0xff]  }
 0x27b   :  { %3151 = vmatpush1.bf16.msra.mxu0 %v7367_v21  ;;  %v7456_v21 = vld [vmem:[#allocation6 + $0xd94] ss:$8 sps:$4 sm:$0xff]  }
 0x27c   :  { %4051 = vmatpush1.bf16.msra.mxu1 %v7370_v22  ;;  %3152 = vmatprep.subr.bf16.mxu0 %v7375_v23  ;;  %v7451_v22 = vld [vmem:[#allocation6 + $0x9d0] ss:$8 sps:$4 sm:$0xff]  }
 0x27d   :  { %4052 = vmatprep.subr.bf16.mxu1 %v7378_v24  ;;  %v7454_v23 = vld [vmem:[#allocation6 + $0xd90] ss:$8 sps:$4 sm:$0xff]   ;;  %v7459_v24 = vld [vmem:[#allocation6 + $0x9e4] ss:$8 sps:$4 sm:$0xff]  }
 0x27f   :  { %3153 = vmatpush1.bf16.msra.mxu0 %v7373_v25  ;;  %v7462_v25 = vld [vmem:[#allocation6 + $0xda4] ss:$8 sps:$4 sm:$0xff]  }
 0x280   :  { %4053 = vmatpush1.bf16.msra.mxu1 %v7376_v26  ;;  %3154 = vmatprep.subr.bf16.mxu0 %v7381_v6  ;;  %v7457_v26 = vld [vmem:[#allocation6 + $0x9e0] ss:$8 sps:$4 sm:$0xff]  }
 0x281   :  { %4054 = vmatprep.subr.bf16.mxu1 %v7384_v27  ;;  %v7460_v6 = vld [vmem:[#allocation6 + $0xda0] ss:$8 sps:$4 sm:$0xff]   ;;  %v7465_v27 = vld [vmem:[#allocation6 + $0x9f4] ss:$8 sps:$4 sm:$0xff]  }
 0x283   :  { %3155 = vmatpush1.bf16.msra.mxu0 %v7379_v30  ;;  %v7468_v30 = vld [vmem:[#allocation6 + $0xdb4] ss:$8 sps:$4 sm:$0xff]  }
 0x284   :  { %4055 = vmatpush1.bf16.msra.mxu1 %v7382_v31  ;;  %3156 = vmatprep.subr.bf16.mxu0 %v7387_v8  ;;  %v7463_v31 = vld [vmem:[#allocation6 + $0x9f0] ss:$8 sps:$4 sm:$0xff]  }
 0x285   :  { %4056 = vmatprep.subr.bf16.mxu1 %v7390_v32  ;;  %v7466_v8 = vld [vmem:[#allocation6 + $0xdb0] ss:$8 sps:$4 sm:$0xff]   ;;  %v7471_v32 = vld [vmem:[#allocation6 + $0xa04] ss:$8 sps:$4 sm:$0xff]  }
 0x287   :  { %3157 = vmatpush1.bf16.msra.mxu0 %v7385_v35  ;;  %v7474_v35 = vld [vmem:[#allocation6 + $0xdc4] ss:$8 sps:$4 sm:$0xff]  }
 0x288   :  { %4057 = vmatpush1.bf16.msra.mxu1 %v7388_v59  ;;  %3158 = vmatprep.subr.bf16.mxu0 %v7393_v38  ;;  %v7469_v59 = vld [vmem:[#allocation6 + $0xa00] ss:$8 sps:$4 sm:$0xff]  }
 0x289   :  { %4058 = vmatprep.subr.bf16.mxu1 %v7396_v39  ;;  %v7472_v38 = vld [vmem:[#allocation6 + $0xdc0] ss:$8 sps:$4 sm:$0xff]   ;;  %v7477_v39 = vld [vmem:[#allocation6 + $0xa14] ss:$8 sps:$4 sm:$0xff]  }
 0x28b   :  { %3159 = vmatpush1.bf16.msra.mxu0 %v7391_v40  ;;  %v7480_v40 = vld [vmem:[#allocation6 + $0xdd4] ss:$8 sps:$4 sm:$0xff]  }
 0x28c   :  { %4059 = vmatpush1.bf16.msra.mxu1 %v7394_v41  ;;  %3160 = vmatprep.subr.bf16.mxu0 %v7399_v43  ;;  %v7475_v41 = vld [vmem:[#allocation6 + $0xa10] ss:$8 sps:$4 sm:$0xff]  }
 0x28d   :  { %4060 = vmatprep.subr.bf16.mxu1 %v7402_v44  ;;  %v7478_v43 = vld [vmem:[#allocation6 + $0xdd0] ss:$8 sps:$4 sm:$0xff]   ;;  %v7483_v44 = vld [vmem:[#allocation6 + $0xa24] ss:$8 sps:$4 sm:$0xff]  }
 0x28f   :  { %3161 = vmatpush1.bf16.msra.mxu0 %v7397_v45  ;;  %v7486_v45 = vld [vmem:[#allocation6 + $0xde4] ss:$8 sps:$4 sm:$0xff]  }
 0x290   :  { %4061 = vmatpush1.bf16.msra.mxu1 %v7400_v46  ;;  %3162 = vmatprep.subr.bf16.mxu0 %v7405_v47  ;;  %v7481_v46 = vld [vmem:[#allocation6 + $0xa20] ss:$8 sps:$4 sm:$0xff]  }
 0x291   :  { %4062 = vmatprep.subr.bf16.mxu1 %v7408_v48  ;;  %v7484_v47 = vld [vmem:[#allocation6 + $0xde0] ss:$8 sps:$4 sm:$0xff]   ;;  %v7489_v48 = vld [vmem:[#allocation6 + $0xa34] ss:$8 sps:$4 sm:$0xff]  }
 0x293   :  { %3163 = vmatpush1.bf16.msra.mxu0 %v7403_v49  ;;  %v7492_v49 = vld [vmem:[#allocation6 + $0xdf4] ss:$8 sps:$4 sm:$0xff]  }
 0x294   :  { %4063 = vmatpush1.bf16.msra.mxu1 %v7406_v50  ;;  %3164 = vmatprep.subr.bf16.mxu0 %v7411_v51  ;;  %v7487_v50 = vld [vmem:[#allocation6 + $0xa30] ss:$8 sps:$4 sm:$0xff]  }
 0x295   :  { %4064 = vmatprep.subr.bf16.mxu1 %v7414_v28  ;;  %v7490_v51 = vld [vmem:[#allocation6 + $0xdf0] ss:$8 sps:$4 sm:$0xff]   ;;  %v7495_v28 = vld [vmem:[#allocation6 + $0xa44] ss:$8 sps:$4 sm:$0xff]  }
 0x297   :  { %3165 = vmatpush1.bf16.msra.mxu0 %v7409_v52  ;;  %v7498_v52 = vld [vmem:[#allocation6 + $0xe04] ss:$8 sps:$4 sm:$0xff]  }
 0x298   :  { %4065 = vmatpush1.bf16.msra.mxu1 %v7412_v53  ;;  %3166 = vmatprep.subr.bf16.mxu0 %v7417_v55  ;;  %v7493_v53 = vld [vmem:[#allocation6 + $0xa40] ss:$8 sps:$4 sm:$0xff]  }
 0x299   :  { %4066 = vmatprep.subr.bf16.mxu1 %v7420_v56  ;;  %v7496_v55 = vld [vmem:[#allocation6 + $0xe00] ss:$8 sps:$4 sm:$0xff]   ;;  %v7501_v56 = vld [vmem:[#allocation6 + $0xa54] ss:$8 sps:$4 sm:$0xff]  }
 0x29b   :  { %3167 = vmatpush1.bf16.msra.mxu0 %v7415_v57  ;;  %v7504_v57 = vld [vmem:[#allocation6 + $0xe14] ss:$8 sps:$4 sm:$0xff]  }
 0x29c   :  { %4067 = vmatpush1.bf16.msra.mxu1 %v7418_v58  ;;  %3177 = vmatprep.subr.bf16.mxu0 %v7423_v60  ;;  %v7499_v58 = vld [vmem:[#allocation6 + $0xa50] ss:$8 sps:$4 sm:$0xff]  }
 0x29d   :  { %4077 = vmatprep.subr.bf16.mxu1 %v7426_v42  ;;  %v7502_v60 = vld [vmem:[#allocation6 + $0xe10] ss:$8 sps:$4 sm:$0xff]   ;;  %v7507_v42 = vld [vmem:[#allocation6 + $0xa64] ss:$8 sps:$4 sm:$0xff]  }
 0x29e   :  { %3169 = vmatmul.mubr.bf16.vlgmr.msra.gmra.mrb[16].mxu0 %v8202_v2 }
 0x29f   :  { %4069 = vmatmul.mubr.bf16.vlgmr.msra.gmra.mrb[8].mxu1 %v8202_v2  ;;  %3178 = vmatpush1.bf16.msra.mxu0 %v7421_v29  ;;  %v7444_v2 = vld [vmem:[#allocation6 + $0xd74] ss:$8 sps:$4 sm:$0xff]   ;;  %v7510_v29 = vld [vmem:[#allocation6 + $0xe24] ss:$8 sps:$4 sm:$0xff]  }
 0x2a0   :  { %3209 = vmatprep.mubr.bf16.mxu0 %v8204_v7  ;;  %4078 = vmatpush1.bf16.msra.mxu1 %v7424_v61  ;;  %v7505_v61 = vld [vmem:[#allocation6 + $0xa60] ss:$8 sps:$4 sm:$0xff]  }
 0x2a1   :  { %4109 = vmatprep.mubr.bf16.mxu1 %v8204_v7  ;;  %3179 = vmatprep.subr.bf16.mxu0 %v7429_v63  ;;  %v7445_v7 = vld [vmem:[#allocation6 + $0x9c0] ss:$8 sps:$4 sm:$0xff]  }
 0x2a2   :  { %4079 = vmatprep.subr.bf16.mxu1 %v7432_v1  ;;  %v7508_v63 = vld [vmem:[#allocation6 + $0xe20] ss:$8 sps:$4 sm:$0xff]   ;;  %v7513_v1 = vld [vmem:[#allocation6 + $0xa74] ss:$8 sps:$4 sm:$0xff]  }
 0x2a3   :  { %3180 = vmatpush1.bf16.msra.mxu0 %v7427_v14  ;;  %v7516_v14 = vld [vmem:[#allocation6 + $0xe34] ss:$8 sps:$4 sm:$0xff]  }
 0x2a4   :  { %4080 = vmatpush1.bf16.msra.mxu1 %v7430_v54  ;;  %3181 = vmatprep.subr.bf16.mxu0 %v7435_v3  ;;  %v7511_v54 = vld [vmem:[#allocation6 + $0xa70] ss:$8 sps:$4 sm:$0xff]  }
 0x2a5   :  { %4081 = vmatprep.subr.bf16.mxu1 %v7438_v4  ;;  %v7514_v3 = vld [vmem:[#allocation6 + $0xe30] ss:$8 sps:$4 sm:$0xff]   ;;  %v7519_v4 = vld [vmem:[#allocation6 + $0xa84] ss:$8 sps:$4 sm:$0xff]  }
 0x2a7   :  { %3182 = vmatpush1.bf16.msra.mxu0 %v7433_v5  ;;  %v7522_v5 = vld [vmem:[#allocation6 + $0xe44] ss:$8 sps:$4 sm:$0xff]  }
 0x2a8   :  { %4082 = vmatpush1.bf16.msra.mxu1 %v7436_v9  ;;  %3183 = vmatprep.subr.bf16.mxu0 %v7441_v10  ;;  %v7517_v9 = vld [vmem:[#allocation6 + $0xa80] ss:$8 sps:$4 sm:$0xff]  }
 0x2a9   :  { %4083 = vmatprep.subr.bf16.mxu1 %v7444_v2  ;;  %v7520_v10 = vld [vmem:[#allocation6 + $0xe40] ss:$8 sps:$4 sm:$0xff]   ;;  %v7525_v2 = vld [vmem:[#allocation6 + $0xa94] ss:$8 sps:$4 sm:$0xff]  }
 0x2ab   :  { %3184 = vmatpush1.bf16.msra.mxu0 %v7439_v11  ;;  %v7528_v11 = vld [vmem:[#allocation6 + $0xe54] ss:$8 sps:$4 sm:$0xff]  }
 0x2ac   :  { %4084 = vmatpush1.bf16.msra.mxu1 %v7442_v16  ;;  %3185 = vmatprep.subr.bf16.mxu0 %v7447_v17  ;;  %v7523_v16 = vld [vmem:[#allocation6 + $0xa90] ss:$8 sps:$4 sm:$0xff]  }
 0x2ad   :  { %4085 = vmatprep.subr.bf16.mxu1 %v7450_v18  ;;  %v7526_v17 = vld [vmem:[#allocation6 + $0xe50] ss:$8 sps:$4 sm:$0xff]   ;;  %v7531_v18 = vld [vmem:[#allocation6 + $0xaa4] ss:$8 sps:$4 sm:$0xff]  }
 0x2af   :  { %3186 = vmatpush1.bf16.msra.mxu0 %v7445_v7  ;;  %v7534_v7 = vld [vmem:[#allocation6 + $0xe64] ss:$8 sps:$4 sm:$0xff]  }
 0x2b0   :  { %4086 = vmatpush1.bf16.msra.mxu1 %v7448_v19  ;;  %3187 = vmatprep.subr.bf16.mxu0 %v7453_v20  ;;  %v7529_v19 = vld [vmem:[#allocation6 + $0xaa0] ss:$8 sps:$4 sm:$0xff]  }
 0x2b1   :  { %4087 = vmatprep.subr.bf16.mxu1 %v7456_v21  ;;  %v7532_v20 = vld [vmem:[#allocation6 + $0xe60] ss:$8 sps:$4 sm:$0xff]   ;;  %v7540_v21 = vld [vmem:[#allocation6 + $0xe74] ss:$8 sps:$4 sm:$0xff]  }
 0x2b3   :  { %3188 = vmatpush1.bf16.msra.mxu0 %v7451_v22  ;;  %v7535_v22 = vld [vmem:[#allocation6 + $0xab0] ss:$8 sps:$4 sm:$0xff]  }
 0x2b4   :  { %4088 = vmatpush1.bf16.msra.mxu1 %v7454_v23  ;;  %3189 = vmatprep.subr.bf16.mxu0 %v7459_v24  ;;  %v7538_v23 = vld [vmem:[#allocation6 + $0xe70] ss:$8 sps:$4 sm:$0xff]   ;;  %v7543_v24 = vld [vmem:[#allocation6 + $0xac4] ss:$8 sps:$4 sm:$0xff]  }
 0x2b5   :  { %4089 = vmatprep.subr.bf16.mxu1 %v7462_v25  ;;  %v7546_v25 = vld [vmem:[#allocation6 + $0xe84] ss:$8 sps:$4 sm:$0xff]  }
 0x2b7   :  { %3190 = vmatpush1.bf16.msra.mxu0 %v7457_v26  ;;  %v681_v26 = vld [vmem:[#allocation7] sm:$0x3] }
 0x2b8   :  { %4090 = vmatpush1.bf16.msra.mxu1 %v7460_v6  ;;  %3191 = vmatprep.subr.bf16.mxu0 %v7465_v27  ;;  %v1583_v6 = vld [vmem:[#allocation7 + $0x2] sm:$0x3] }
 0x2b9   :  { %4091 = vmatprep.subr.bf16.mxu1 %v7468_v30  ;;  %v7544_v27 = vld [vmem:[#allocation6 + $0xe80] ss:$8 sps:$4 sm:$0xff]   ;;  %v7549_v30 = vld [vmem:[#allocation6 + $0xad4] ss:$8 sps:$4 sm:$0xff]  }
 0x2bb   :  { %3192 = vmatpush1.bf16.msra.mxu0 %v7463_v31  ;;  %v7552_v31 = vld [vmem:[#allocation6 + $0xe94] ss:$8 sps:$4 sm:$0xff]  }
 0x2bc   :  { %4092 = vmatpush1.bf16.msra.mxu1 %v7466_v8  ;;  %3193 = vmatprep.subr.bf16.mxu0 %v7471_v32  ;;  %v686_v8 = vrot.slane %v681_v26, %v8157_v13  ;;  %v1588_v32 = vrot.slane %v1583_v6, %v8157_v13 }
 0x2bd   :  { %4093 = vmatprep.subr.bf16.mxu1 %v7474_v35  ;;  %v690_v35 = vrot.slane %v681_v26, %v8162_v15  ;;  %v7603_v26 = vld [vmem:[%s8569_s5 + $0x44] ss:$16 sps:$4 sm:$0xff]  }
 0x2bf   :  { %3194 = vmatpush1.bf16.msra.mxu0 %v7469_v59  ;;  %v1592_v59 = vrot.slane %v1583_v6, %v8162_v15  ;;  %v7601_v6 = vld [vmem:[%s8569_s5 + $0x40] ss:$16 sps:$4 sm:$0xff]  }
 0x2c0   :  { %4094 = vmatpush1.bf16.msra.mxu1 %v7472_v38  ;;  %3195 = vmatprep.subr.bf16.mxu0 %v7477_v39  ;;  %v7547_v38 = vld [vmem:[#allocation6 + $0xad0] ss:$8 sps:$4 sm:$0xff]  }
 0x2c1   :  { %4095 = vmatprep.subr.bf16.mxu1 %v7480_v40  ;;  %v7550_v39 = vld [vmem:[#allocation6 + $0xe90] ss:$8 sps:$4 sm:$0xff]   ;;  %v7555_v40 = vld [vmem:[#allocation6 + $0xae4] ss:$8 sps:$4 sm:$0xff]  }
 0x2c3   :  { %3196 = vmatpush1.bf16.msra.mxu0 %v7475_v41 }
 0x2c4   :  { %4096 = vmatpush1.bf16.msra.mxu1 %v7478_v43  ;;  %3197 = vmatprep.subr.bf16.mxu0 %v7483_v44  ;;  %v7558_v44 = vld [vmem:[#allocation6 + $0xea4] ss:$8 sps:$4 sm:$0xff]  }
 0x2c5   :  { %4097 = vmatprep.subr.bf16.mxu1 %v7486_v45 }
 0x2c7   :  { %3198 = vmatpush1.bf16.msra.mxu0 %v7481_v46 }
 0x2c8   :  { %4098 = vmatpush1.bf16.msra.mxu1 %v7484_v47  ;;  %3199 = vmatprep.subr.bf16.mxu0 %v7489_v48 }
 0x2c9   :  { %4099 = vmatprep.subr.bf16.mxu1 %v7492_v49 }
 0x2cb   :  { %3200 = vmatpush1.bf16.msra.mxu0 %v7487_v50 }
 0x2cc   :  { %4100 = vmatpush1.bf16.msra.mxu1 %v7490_v51  ;;  %3201 = vmatprep.subr.bf16.mxu0 %v7495_v28 }
 0x2cd   :  { %4101 = vmatprep.subr.bf16.mxu1 %v7498_v52  ;;  %v7553_v52 = vld [vmem:[#allocation6 + $0xae0] ss:$8 sps:$4 sm:$0xff]  }
 0x2cf   :  { %3202 = vmatpush1.bf16.msra.mxu0 %v7493_v53 }
 0x2d0   :  { %4102 = vmatpush1.bf16.msra.mxu1 %v7496_v55  ;;  %3203 = vmatprep.subr.bf16.mxu0 %v7501_v56 }
 0x2d1   :  { %4103 = vmatprep.subr.bf16.mxu1 %v7504_v57  ;;  %v7556_v57 = vld [vmem:[#allocation6 + $0xea0] ss:$8 sps:$4 sm:$0xff]  }
 0x2d3   :  { %3204 = vmatpush1.bf16.msra.mxu0 %v7499_v58  ;;  %v7561_v58 = vld [vmem:[#allocation6 + $0xaf4] ss:$8 sps:$4 sm:$0xff]  }
 0x2d4   :  { %4104 = vmatpush1.bf16.msra.mxu1 %v7502_v60  ;;  %3205 = vmatprep.subr.bf16.mxu0 %v7507_v42  ;;  %v7564_v42 = vld [vmem:[#allocation6 + $0xeb4] ss:$8 sps:$4 sm:$0xff]  }
 0x2d5   :  { %4105 = vmatprep.subr.bf16.mxu1 %v7510_v29  ;;  %v7559_v29 = vld [vmem:[#allocation6 + $0xaf0] ss:$8 sps:$4 sm:$0xff]  }
 0x2d7   :  { %3206 = vmatpush1.bf16.msra.mxu0 %v7505_v61  ;;  %v7562_v61 = vld [vmem:[#allocation6 + $0xeb0] ss:$8 sps:$4 sm:$0xff]  }
 0x2d8   :  { %4106 = vmatpush1.bf16.msra.mxu1 %v7508_v63  ;;  %3207 = vmatprep.subr.bf16.mxu0 %v7513_v1  ;;  %v7567_v63 = vld [vmem:[#allocation6 + $0xb04] ss:$8 sps:$4 sm:$0xff]  }
 0x2d9   :  { %4107 = vmatprep.subr.bf16.mxu1 %v7516_v14  ;;  %v7570_v1 = vld [vmem:[#allocation6 + $0xec4] ss:$8 sps:$4 sm:$0xff]   ;;  %v7565_v14 = vld [vmem:[#allocation6 + $0xb00] ss:$8 sps:$4 sm:$0xff]  }
 0x2db   :  { %3208 = vmatpush1.bf16.msra.mxu0 %v7511_v54  ;;  %v7568_v54 = vld [vmem:[#allocation6 + $0xec0] ss:$8 sps:$4 sm:$0xff]  }
 0x2dc   :  { %4108 = vmatpush1.bf16.msra.mxu1 %v7514_v3  ;;  %3218 = vmatprep.subr.bf16.mxu0 %v7519_v4  ;;  %v7573_v3 = vld [vmem:[#allocation6 + $0xb14] ss:$8 sps:$4 sm:$0xff]  }
 0x2dd   :  { %4118 = vmatprep.subr.bf16.mxu1 %v7522_v5  ;;  %v7576_v4 = vld [vmem:[#allocation6 + $0xed4] ss:$8 sps:$4 sm:$0xff]   ;;  %v7571_v5 = vld [vmem:[#allocation6 + $0xb10] ss:$8 sps:$4 sm:$0xff]  }
 0x2de   :  { %3210 = vmatmul.mubr.bf16.vlgmr.msra.gmra.mrb[16].mxu0 %v8218_v33 }
 0x2df   :  { %4110 = vmatmul.mubr.bf16.vlgmr.msra.gmra.mrb[8].mxu1 %v8218_v33  ;;  %3219 = vmatpush1.bf16.msra.mxu0 %v7517_v9  ;;  %v7537_v33 = vld [vmem:[#allocation6 + $0xab4] ss:$8 sps:$4 sm:$0xff]   ;;  %v7574_v9 = vld [vmem:[#allocation6 + $0xed0] ss:$8 sps:$4 sm:$0xff]  }
 0x2e0   :  { %6394 = vmatprep.mubr.msk.bf16.mxu0 %vm1293_vm2, %v8220_v62  ;;  %4119 = vmatpush1.bf16.msra.mxu1 %v7520_v10  ;;  %v7579_v10 = vld [vmem:[#allocation6 + $0xb24] ss:$8 sps:$4 sm:$0xff]  }
 0x2e1   :  { %6515 = vmatprep.mubr.msk.bf16.mxu1 %vm1293_vm2, %v8220_v62  ;;  %3220 = vmatprep.subr.bf16.mxu0 %v7525_v2  ;;  %v7541_v62 = vld [vmem:[#allocation6 + $0xac0] ss:$8 sps:$4 sm:$0xff]   ;;  %v7582_v2 = vld [vmem:[#allocation6 + $0xee4] ss:$8 sps:$4 sm:$0xff]  }
 0x2e2   :  { %4120 = vmatprep.subr.bf16.mxu1 %v7528_v11  ;;  %v7577_v11 = vld [vmem:[#allocation6 + $0xb20] ss:$8 sps:$4 sm:$0xff]  }
 0x2e3   :  { %3221 = vmatpush1.bf16.msra.mxu0 %v7523_v16  ;;  %v7580_v16 = vld [vmem:[#allocation6 + $0xee0] ss:$8 sps:$4 sm:$0xff]  }
 0x2e4   :  { %4121 = vmatpush1.bf16.msra.mxu1 %v7526_v17  ;;  %3222 = vmatprep.subr.bf16.mxu0 %v7531_v18  ;;  %v7585_v17 = vld [vmem:[#allocation6 + $0xb34] ss:$8 sps:$4 sm:$0xff]  }
 0x2e5   :  { %4122 = vmatprep.subr.bf16.mxu1 %v7534_v7  ;;  %v7588_v18 = vld [vmem:[#allocation6 + $0xef4] ss:$8 sps:$4 sm:$0xff]   ;;  %v7583_v7 = vld [vmem:[#allocation6 + $0xb30] ss:$8 sps:$4 sm:$0xff]  }
 0x2e7   :  { %3223 = vmatpush1.bf16.msra.mxu0 %v7529_v19  ;;  %v7586_v19 = vld [vmem:[#allocation6 + $0xef0] ss:$8 sps:$4 sm:$0xff]  }
 0x2e8   :  { %4123 = vmatpush1.bf16.msra.mxu1 %v7532_v20  ;;  %3224 = vmatprep.subr.bf16.mxu0 %v7537_v33  ;;  %v7591_v20 = vld [vmem:[%s8569_s5 + $0x4] ss:$16 sps:$4 sm:$0xff]   ;;  %v7594_v33 = vld [vmem:[%s8569_s5 + $0xc] ss:$16 sps:$4 sm:$0xff]  }
 0x2e9   :  { %4124 = vmatprep.subr.bf16.mxu1 %v7540_v21  ;;  %v7589_v21 = vld [vmem:[%s8569_s5] ss:$16 sps:$4 sm:$0xff]  }
 0x2eb   :  { %3225 = vmatpush1.bf16.msra.mxu0 %v7535_v22  ;;  %v7592_v22 = vld [vmem:[%s8569_s5 + $0x8] ss:$16 sps:$4 sm:$0xff]  }
 0x2ec   :  { %4125 = vmatpush1.bf16.msra.mxu1 %v7538_v23  ;;  %3226 = vmatprep.subr.bf16.mxu0 %v7543_v24  ;;  %v7597_v23 = vld [vmem:[%s8569_s5 + $0x24] ss:$16 sps:$4 sm:$0xff]   ;;  %v7600_v24 = vld [vmem:[%s8569_s5 + $0x2c] ss:$16 sps:$4 sm:$0xff]  }
 0x2ed   :  { %4126 = vmatprep.subr.bf16.mxu1 %v7546_v25  ;;  %v7595_v25 = vld [vmem:[%s8569_s5 + $0x20] ss:$16 sps:$4 sm:$0xff]  }
 0x2ef   :  { %3227 = vmatpush1.bf16.msra.mxu0 %v7541_v62  ;;  %v7598_v62 = vld [vmem:[%s8569_s5 + $0x28] ss:$16 sps:$4 sm:$0xff]  }
 0x2f0   :  { %4127 = vmatpush1.bf16.msra.mxu1 %v7544_v27  ;;  %3228 = vmatprep.subr.bf16.mxu0 %v7549_v30  ;;  %v7604_v27 = vld [vmem:[%s8569_s5 + $0x48] ss:$16 sps:$4 sm:$0xff]   ;;  %v7609_v30 = vld [vmem:[%s8569_s5 + $0x64] ss:$16 sps:$4 sm:$0xff]  }
 0x2f1   :  { %v1454_v41 = vpop.f32.mrb[12].mxu0  ;;  %v2352_v43 = vpop.f32.mrb[4].mxu1  ;;  %4128 = vmatprep.subr.bf16.mxu1 %v7552_v31  ;;  %v7612_v31 = vld [vmem:[%s8569_s5 + $0x6c] ss:$16 sps:$4 sm:$0xff]  }
 0x2f2   :  { %v8255_v45 = vadd.f32 %v1454_v41, %v686_v8  ;;  %v8257_v46 = vadd.f32 %v2352_v43, %v1588_v32  ;;  %v1456_v47 = vpop.f32.mrb[13].mxu0  ;;  %v2354_v48 = vpop.f32.mrb[5].mxu1  ;;  %v7607_v8 = vld [vmem:[%s8569_s5 + $0x60] ss:$16 sps:$4 sm:$0xff]   ;;  %v7610_v32 = vld [vmem:[%s8569_s5 + $0x68] ss:$16 sps:$4 sm:$0xff]  }
 0x2f3   :  { %v8259_v49 = vadd.f32 %v1456_v47, %v690_v35  ;;  %v8261_v50 = vadd.f32 %v2354_v48, %v1592_v59  ;;  %v1458_v51 = vpop.f32.mrb[14].mxu0  ;;  %v2356_v28 = vpop.f32.mrb[6].mxu1  ;;  %3229 = vmatpush1.bf16.msra.mxu0 %v7547_v38  ;;  %v7615_v35 = vld [vmem:[%s8569_s5 + $0x84] ss:$16 sps:$4 sm:$0xff]   ;;  %v7618_v59 = vld [vmem:[%s8569_s5 + $0x8c] ss:$16 sps:$4 sm:$0xff]  }
 0x2f4   :  { %v2359_v53 = vmax.f32 %v8255_v45, %v8257_v46  ;;  %4129 = vmatpush1.bf16.msra.mxu1 %v7550_v39  ;;  %v1459_v55 = vpop.f32.mrb[15].mxu0  ;;  %v2357_v56 = vpop.f32.mrb[7].mxu1  ;;  %3230 = vmatprep.subr.bf16.mxu0 %v7555_v40  ;;  %v7613_v38 = vld [vmem:[%s8569_s5 + $0x80] ss:$16 sps:$4 sm:$0xff]   ;;  %v7616_v39 = vld [vmem:[%s8569_s5 + $0x88] ss:$16 sps:$4 sm:$0xff]  }
 0x2f5   :  { %v2360_v60 = vmax.f32 %v8259_v49, %v8261_v50  ;;  %4130 = vmatprep.subr.bf16.mxu1 %v7558_v44  ;;  %v7621_v40 = vld [vmem:[%s8569_s5 + $0xa4] ss:$16 sps:$4 sm:$0xff]   ;;  %v7624_v41 = vld [vmem:[%s8569_s5 + $0xac] ss:$16 sps:$4 sm:$0xff]   ;;  %v7619_v43 = vld [vmem:[%s8569_s5 + $0xa0] ss:$16 sps:$4 sm:$0xff]  }
 0x2f6   :  { %v7622_v44 = vld [vmem:[%s8569_s5 + $0xa8] ss:$16 sps:$4 sm:$0xff]   ;;  %v7627_v47 = vld [vmem:[%s8569_s5 + $0xc4] ss:$16 sps:$4 sm:$0xff]   ;;  %v7630_v48 = vld [vmem:[%s8569_s5 + $0xcc] ss:$16 sps:$4 sm:$0xff]  }
 0x2f7   :  { %3231 = vmatpush1.bf16.msra.mxu0 %v7553_v52  ;;  %v7625_v51 = vld [vmem:[%s8569_s5 + $0xc0] ss:$16 sps:$4 sm:$0xff]   ;;  %v7628_v28 = vld [vmem:[%s8569_s5 + $0xc8] ss:$16 sps:$4 sm:$0xff]   ;;  %v7633_v52 = vld [vmem:[%s8569_s5 + $0xe4] ss:$16 sps:$4 sm:$0xff]  }
 0x2f8   :  { %4131 = vmatpush1.bf16.msra.mxu1 %v7556_v57  ;;  %3232 = vmatprep.subr.bf16.mxu0 %v7561_v58  ;;  %v7636_v55 = vld [vmem:[%s8569_s5 + $0xec] ss:$16 sps:$4 sm:$0xff]   ;;  %v7631_v56 = vld [vmem:[%s8569_s5 + $0xe0] ss:$16 sps:$4 sm:$0xff]   ;;  %v7634_v57 = vld [vmem:[%s8569_s5 + $0xe8] ss:$16 sps:$4 sm:$0xff]  }
 0x2f9   :  { %4132 = vmatprep.subr.bf16.mxu1 %v7564_v42  ;;  %v7639_v58 = vld [vmem:[%s8569_s5 + $0x104] ss:$16 sps:$4 sm:$0xff]   ;;  %v7642_v42 = vld [vmem:[%s8569_s5 + $0x10c] ss:$16 sps:$4 sm:$0xff]  }
 0x2fa   :  { %v7686_v45 = vld [vmem:[#allocation10 + $0x88] sm:$0xff]   ;;  %v7697_v49 = vld [vmem:[#allocation10 + $0x50] sm:$0xff]  }
 0x2fb   :  { %3233 = vmatpush1.bf16.msra.mxu0 %v7559_v29  ;;  %v7637_v29 = vld [vmem:[%s8569_s5 + $0x100] ss:$16 sps:$4 sm:$0xff]   ;;  %v7687_v50 = vld [vmem:[#allocation10 + $0x90] sm:$0xff]  }
 0x2fc   :  { %4133 = vmatpush1.bf16.msra.mxu1 %v7562_v61  ;;  %3234 = vmatprep.subr.bf16.mxu0 %v7567_v63  ;;  %v7640_v61 = vld [vmem:[%s8569_s5 + $0x108] ss:$16 sps:$4 sm:$0xff]   ;;  %v7645_v63 = vld [vmem:[%s8569_s5 + $0x124] ss:$16 sps:$4 sm:$0xff]   ;;  %v7695_v46 = vld [vmem:[#allocation10 + $0x8] sm:$0xff]  }
 0x2fd   :  { %4134 = vmatprep.subr.bf16.mxu1 %v7570_v1  ;;  %v7648_v1 = vld [vmem:[%s8569_s5 + $0x12c] ss:$16 sps:$4 sm:$0xff]  }
 0x2ff   :  { %3235 = vmatpush1.bf16.msra.mxu0 %v7565_v14  ;;  %v7643_v14 = vld [vmem:[%s8569_s5 + $0x120] ss:$16 sps:$4 sm:$0xff]  }
 0x300   :  { %4135 = vmatpush1.bf16.msra.mxu1 %v7568_v54  ;;  %3236 = vmatprep.subr.bf16.mxu0 %v7573_v3  ;;  %v7646_v54 = vld [vmem:[%s8569_s5 + $0x128] ss:$16 sps:$4 sm:$0xff]   ;;  %v7651_v3 = vld [vmem:[%s8569_s5 + $0x144] ss:$16 sps:$4 sm:$0xff]  }
 0x301   :  { %4136 = vmatprep.subr.bf16.mxu1 %v7576_v4  ;;  %v7654_v4 = vld [vmem:[%s8569_s5 + $0x14c] ss:$16 sps:$4 sm:$0xff]  }
 0x303   :  { %3237 = vmatpush1.bf16.msra.mxu0 %v7571_v5  ;;  %v7649_v5 = vld [vmem:[%s8569_s5 + $0x140] ss:$16 sps:$4 sm:$0xff]  }
 0x304   :  { %4137 = vmatpush1.bf16.msra.mxu1 %v7574_v9  ;;  %3238 = vmatprep.subr.bf16.mxu0 %v7579_v10  ;;  %v7652_v9 = vld [vmem:[%s8569_s5 + $0x148] ss:$16 sps:$4 sm:$0xff]   ;;  %v7657_v10 = vld [vmem:[%s8569_s5 + $0x164] ss:$16 sps:$4 sm:$0xff]  }
 0x305   :  { %4138 = vmatprep.subr.bf16.mxu1 %v7582_v2  ;;  %v7660_v2 = vld [vmem:[%s8569_s5 + $0x16c] ss:$16 sps:$4 sm:$0xff]  }
 0x307   :  { %3239 = vmatpush1.bf16.msra.mxu0 %v7577_v11  ;;  %v7655_v11 = vld [vmem:[%s8569_s5 + $0x160] ss:$16 sps:$4 sm:$0xff]  }
 0x308   :  { %4139 = vmatpush1.bf16.msra.mxu1 %v7580_v16  ;;  %3240 = vmatprep.subr.bf16.mxu0 %v7585_v17  ;;  %v7658_v16 = vld [vmem:[%s8569_s5 + $0x168] ss:$16 sps:$4 sm:$0xff]   ;;  %v7663_v17 = vld [vmem:[%s8569_s5 + $0x184] ss:$16 sps:$4 sm:$0xff]  }
 0x309   :  { %4140 = vmatprep.subr.bf16.mxu1 %v7588_v18  ;;  %v7666_v18 = vld [vmem:[%s8569_s5 + $0x18c] ss:$16 sps:$4 sm:$0xff]  }
 0x30b   :  { %3241 = vmatpush1.bf16.msra.mxu0 %v7583_v7  ;;  %v7661_v7 = vld [vmem:[%s8569_s5 + $0x180] ss:$16 sps:$4 sm:$0xff]  }
 0x30c   :  { %4141 = vmatpush1.bf16.msra.mxu1 %v7586_v19  ;;  %4571 = vmatprep.subr.bf16.mxu0 %v7591_v20  ;;  %v7664_v19 = vld [vmem:[%s8569_s5 + $0x188] ss:$16 sps:$4 sm:$0xff]   ;;  %v7669_v20 = vld [vmem:[%s8569_s5 + $0x1a4] ss:$16 sps:$4 sm:$0xff]  }
 0x30d   :  { %4612 = vmatprep.subr.bf16.mxu1 %v7594_v33  ;;  %v7672_v33 = vld [vmem:[%s8569_s5 + $0x1ac] ss:$16 sps:$4 sm:$0xff]  }
 0x30e   :  { %3251 = vmatmul.mubr.bf16.vlgmr.msra.gmra.mrb[16].mxu0 %v8231_v37 }
 0x30f   :  { %4151 = vmatmul.mubr.bf16.vlgmr.msra.gmra.mrb[8].mxu1 %v8231_v37  ;;  %4572 = vmatpush1.bf16.msra.mxu0 %v7589_v21  ;;  %v7606_v37 = vld [vmem:[%s8569_s5 + $0x4c] ss:$16 sps:$4 sm:$0xff]   ;;  %v7667_v21 = vld [vmem:[%s8569_s5 + $0x1a0] ss:$16 sps:$4 sm:$0xff]  }
 0x310   :  { %4613 = vmatpush1.bf16.msra.mxu1 %v7592_v22  ;;  %4573 = vmatprep.subr.bf16.mxu0 %v7597_v23  ;;  %v7670_v22 = vld [vmem:[%s8569_s5 + $0x1a8] ss:$16 sps:$4 sm:$0xff]   ;;  %v7675_v23 = vld [vmem:[%s8569_s5 + $0x1c4] ss:$16 sps:$4 sm:$0xff]  }
 0x311   :  { %4614 = vmatprep.subr.bf16.mxu1 %v7600_v24  ;;  %v7678_v24 = vld [vmem:[%s8569_s5 + $0x1cc] ss:$16 sps:$4 sm:$0xff]  }
 0x313   :  { %4574 = vmatpush1.bf16.msra.mxu0 %v7595_v25  ;;  %v7673_v25 = vld [vmem:[%s8569_s5 + $0x1c0] ss:$16 sps:$4 sm:$0xff]  }
 0x314   :  { %4615 = vmatpush1.bf16.msra.mxu1 %v7598_v62  ;;  %4575 = vmatprep.subr.bf16.mxu0 %v7603_v26  ;;  %v7676_v62 = vld [vmem:[%s8569_s5 + $0x1c8] ss:$16 sps:$4 sm:$0xff]   ;;  %v7681_v26 = vld [vmem:[%s8569_s5 + $0x1e4] ss:$16 sps:$4 sm:$0xff]  }
 0x315   :  { %4616 = vmatprep.subr.bf16.mxu1 %v7606_v37  ;;  %v7684_v37 = vld [vmem:[%s8569_s5 + $0x1ec] ss:$16 sps:$4 sm:$0xff]  }
 0x317   :  { %4576 = vmatpush1.bf16.msra.mxu0 %v7601_v6  ;;  %v7679_v6 = vld [vmem:[%s8569_s5 + $0x1e0] ss:$16 sps:$4 sm:$0xff]  }
 0x318   :  { %4617 = vmatpush1.bf16.msra.mxu1 %v7604_v27  ;;  %4577 = vmatprep.subr.bf16.mxu0 %v7609_v30  ;;  %v7682_v27 = vld [vmem:[%s8569_s5 + $0x1e8] ss:$16 sps:$4 sm:$0xff]  }
 0x319   :  { %4618 = vmatprep.subr.bf16.mxu1 %v7612_v31  ;;  %v7691_v30 = vld [vmem:[#allocation10 + $0x40] sm:$0xff]   ;;  %v2483_v31 = vld [vmem:[#allocation7 + $0x4] sm:$0x3] }
 0x31b   :  { %4578 = vmatpush1.bf16.msra.mxu0 %v7607_v8  ;;  %v3383_v8 = vld [vmem:[#allocation7 + $0x6] sm:$0x3] }
 0x31c   :  { %4619 = vmatpush1.bf16.msra.mxu1 %v7610_v32  ;;  %4579 = vmatprep.subr.bf16.mxu0 %v7615_v35  ;;  %v2488_v32 = vrot.slane %v2483_v31, %v8157_v13  ;;  %v2492_v35 = vrot.slane %v2483_v31, %v8162_v15 }
 0x31d   :  { %4620 = vmatprep.subr.bf16.mxu1 %v7618_v59  ;;  %v3388_v59 = vrot.slane %v3383_v8, %v8157_v13 }
 0x31f   :  { %4580 = vmatpush1.bf16.msra.mxu0 %v7613_v38 }
 0x320   :  { %4621 = vmatpush1.bf16.msra.mxu1 %v7616_v39  ;;  %4581 = vmatprep.subr.bf16.mxu0 %v7621_v40  ;;  %v3392_v39 = vrot.slane %v3383_v8, %v8162_v15 }
 0x321   :  { %4622 = vmatprep.subr.bf16.mxu1 %v7624_v41 }
 0x323   :  { %4582 = vmatpush1.bf16.msra.mxu0 %v7619_v43 }
 0x324   :  { %4623 = vmatpush1.bf16.msra.mxu1 %v7622_v44  ;;  %4583 = vmatprep.subr.bf16.mxu0 %v7627_v47 }
 0x325   :  { %4624 = vmatprep.subr.bf16.mxu1 %v7630_v48 }
 0x327   :  { %4584 = vmatpush1.bf16.msra.mxu0 %v7625_v51 }
 0x328   :  { %4625 = vmatpush1.bf16.msra.mxu1 %v7628_v28  ;;  %4585 = vmatprep.subr.bf16.mxu0 %v7633_v52 }
 0x329   :  { %4626 = vmatprep.subr.bf16.mxu1 %v7636_v55 }
 0x32b   :  { %4586 = vmatpush1.bf16.msra.mxu0 %v7631_v56 }
 0x32c   :  { %4627 = vmatpush1.bf16.msra.mxu1 %v7634_v57  ;;  %4587 = vmatprep.subr.bf16.mxu0 %v7639_v58 }
 0x32d   :  { %4628 = vmatprep.subr.bf16.mxu1 %v7642_v42 }
 0x32f   :  { %4588 = vmatpush1.bf16.msra.mxu0 %v7637_v29 }
 0x330   :  { %4629 = vmatpush1.bf16.msra.mxu1 %v7640_v61  ;;  %4589 = vmatprep.subr.bf16.mxu0 %v7645_v63 }
 0x331   :  { %4630 = vmatprep.subr.bf16.mxu1 %v7648_v1 }
 0x333   :  { %4590 = vmatpush1.bf16.msra.mxu0 %v7643_v14  ;;  %v7685_v14 = vld [vmem:[#allocation10 + $0x80] sm:$0xff]  }
 0x334   :  { %4631 = vmatpush1.bf16.msra.mxu1 %v7646_v54  ;;  %4591 = vmatprep.subr.bf16.mxu0 %v7651_v3  ;;  %v7692_v54 = vld [vmem:[#allocation10] sm:$0xff]  }
 0x335   :  { %4632 = vmatprep.subr.bf16.mxu1 %v7654_v4  ;;  %v7694_v4 = vld [vmem:[#allocation10 + $0x48] sm:$0xff]  }
 0x337   :  { %4592 = vmatpush1.bf16.msra.mxu0 %v7649_v5  ;;  %v7688_v5 = vld [vmem:[#allocation10 + $0x98] sm:$0xff]  }
 0x338   :  { %4633 = vmatpush1.bf16.msra.mxu1 %v7652_v9  ;;  %4593 = vmatprep.subr.bf16.mxu0 %v7657_v10  ;;  %v7701_v9 = vld [vmem:[#allocation10 + $0x18] sm:$0xff]   ;;  %v7703_v10 = vld [vmem:[#allocation10 + $0x60] sm:$0xff]  }
 0x339   :  { %4634 = vmatprep.subr.bf16.mxu1 %v7660_v2  ;;  %v7689_v2 = vld [vmem:[#allocation10 + $0xa0] sm:$0xff]  }
 0x33b   :  { %4594 = vmatpush1.bf16.msra.mxu0 %v7655_v11  ;;  %v7704_v11 = vld [vmem:[#allocation10 + $0x20] sm:$0xff]  }
 0x33c   :  { %4635 = vmatpush1.bf16.msra.mxu1 %v7658_v16  ;;  %4595 = vmatprep.subr.bf16.mxu0 %v7663_v17  ;;  %v7706_v16 = vld [vmem:[#allocation10 + $0x68] sm:$0xff]  }
 0x33d   :  { %4636 = vmatprep.subr.bf16.mxu1 %v7666_v18  ;;  %v7690_v17 = vld [vmem:[#allocation10 + $0xa8] sm:$0xff]  }
 0x33e   :  { %v7707_v18 = vld [vmem:[#allocation10 + $0x28] sm:$0xff]  }
 0x33f   :  { %4596 = vmatpush1.bf16.msra.mxu0 %v7661_v7  ;;  %v7693_v7 = vld [vmem:[#allocation10 + $0xb0] sm:$0xff]  }
 0x340   :  { %4637 = vmatpush1.bf16.msra.mxu1 %v7664_v19  ;;  %4597 = vmatprep.subr.bf16.mxu0 %v7669_v20  ;;  %v7696_v19 = vld [vmem:[#allocation10 + $0xb8] sm:$0xff]   ;;  %v7699_v20 = vld [vmem:[#allocation10 + $0xc0] sm:$0xff]  }
 0x341   :  { %4638 = vmatprep.subr.bf16.mxu1 %v7672_v33  ;;  %v7702_v33 = vld [vmem:[#allocation10 + $0xc8] sm:$0xff]  }
 0x343   :  { %4598 = vmatpush1.bf16.msra.mxu0 %v7667_v21  ;;  %v7705_v21 = vld [vmem:[#allocation10 + $0xd0] sm:$0xff]  }
 0x344   :  { %4639 = vmatpush1.bf16.msra.mxu1 %v7670_v22  ;;  %4599 = vmatprep.subr.bf16.mxu0 %v7675_v23  ;;  %v7708_v22 = vld [vmem:[#allocation10 + $0xd8] sm:$0xff]   ;;  %v7709_v23 = vld [vmem:[#allocation10 + $0x70] sm:$0xff]  }
 0x345   :  { %4640 = vmatprep.subr.bf16.mxu1 %v7678_v24  ;;  %v7710_v24 = vld [vmem:[#allocation10 + $0x30] sm:$0xff]  }
 0x347   :  { %4600 = vmatpush1.bf16.msra.mxu0 %v7673_v25  ;;  %v7711_v25 = vld [vmem:[#allocation10 + $0xe0] sm:$0xff]  }
 0x348   :  { %4641 = vmatpush1.bf16.msra.mxu1 %v7676_v62  ;;  %4601 = vmatprep.subr.bf16.mxu0 %v7681_v26  ;;  %v7712_v62 = vld [vmem:[#allocation10 + $0x78] sm:$0xff]  }
 0x349   :  { %4642 = vmatprep.subr.bf16.mxu1 %v7684_v37  ;;  %v7713_v26 = vld [vmem:[#allocation10 + $0x38] sm:$0xff]   ;;  %v7714_v37 = vld [vmem:[#allocation10 + $0xe8] sm:$0xff]  }
 0x34b   :  { %4602 = vmatpush1.bf16.msra.mxu0 %v7679_v6  ;;  %v7715_v6 = vld [vmem:[#allocation10 + $0x130] sm:$0xff]  }
 0x34c   :  { %4643 = vmatpush1.bf16.msra.mxu1 %v7682_v27  ;;  %6708 = vmatprep.subr.bf16.mxu0 %v7691_v30  ;;  %v4229_v27 = vld [vmem:[#allocation9] sm:$0xf] }
 0x34d   :  { %4952 = vmatprep.subr.bf16.mxu1 %v7984_v0  ;;  %v4234_v30 = vrot.slane %v4229_v27, %v8157_v13  ;;  %v4242_v31 = vrot.slane %v4229_v27, %v170_v36  ;;  %v4238_v8 = vrot.slane %v4229_v27, %v8162_v15 }
 0x3e1   :  { %v3252_v38 = vpop.f32.mrb[16].mxu0 }
 0x3e2   :  { %v6800_v40 = vadd.f32 %v3252_v38, %v2488_v32  ;;  %v4152_v41 = vpop.f32.mrb[8].mxu1  ;;  %v3254_v43 = vpop.f32.mrb[17].mxu0  ;;  %v4246_v32 = vrot.slane %v4229_v27, %v174_v34  ;;  %v7716_v34 = vld [vmem:[#allocation10 + $0xf0] sm:$0xff]   ;;  %v7754_v27 = vld [vmem:[#allocation10 + $0x248] sm:$0xff]  }
 0x3e3   :  { %v6801_v44 = vadd.f32 %v3254_v43, %v2492_v35  ;;  %v4154_v47 = vpop.f32.mrb[9].mxu1  ;;  %v3256_v48 = vpop.f32.mrb[18].mxu0  ;;  %v6802_v28 = vadd.f32 %v4152_v41, %v3388_v59 }
 0x3e4   :  { %v3259_v51 = vmax.f32 %v2359_v53, %v6800_v40  ;;  %v4156_v52 = vpop.f32.mrb[10].mxu1  ;;  %v3257_v55 = vpop.f32.mrb[19].mxu0  ;;  %v6803_v57 = vadd.f32 %v4154_v47, %v3392_v39  ;;  %v7698_v53 = vld [vmem:[#allocation10 + $0x10] sm:$0xff]  }
 0x3e5   :  { %v3260_v56 = vmax.f32 %v2360_v60, %v6801_v44  ;;  %v4157_v58 = vpop.f32.mrb[11].mxu1  ;;  %v7700_v60 = vld [vmem:[#allocation10 + $0x58] sm:$0xff]  }
 0x3e6   :  { %v4159_v42 = vmax.f32 %v3259_v51, %v6802_v28 }
 0x3e7   :  { %v4160_v29 = vmax.f32 %v3260_v56, %v6803_v57  ;;  %v7717_v56 = vld [vmem:[#allocation10 + $0x170] sm:$0xff]  }
 0x3e8   :  { %v4161_v61 = vmax.f32 %v4159_v42, 0.0  ;;  %v7718_v42 = vld [vmem:[#allocation10 + $0x138] sm:$0xff]  }
 0x3e9   :  { %v4162_v63 = vmax.f32 %v4160_v29, 0.0  ;;  %v7719_v29 = vld [vmem:[#allocation10 + $0xf8] sm:$0xff]  }
 0x3ea   :  { %v4163_v3 = vpack.c.bf16 %v4161_v61, %v4161_v61  ;;  %v7720_v61 = vld [vmem:[#allocation10 + $0x178] sm:$0xff]  }
 0x3eb   :  { %v4164_v1 = vpack.c.bf16 %v4162_v63, %v4162_v63  ;;  %v7721_v63 = vld [vmem:[#allocation10 + $0x140] sm:$0xff]  }
 0x3ed   :  { %4603 = vmatprep.mubr.bf16.mxu0 %v4164_v1  ;;  %4644 = vmatprep.mubr.bf16.mxu1 %v4164_v1  ;;  %v7722_v1 = vld [vmem:[#allocation10 + $0x100] sm:$0xff]  }
 0x3ee   :  { %4604 = vmatmul.mubr.bf16.vlgmr.msra.gmra.mrb[20].mxu0 %v4163_v3  ;;  %4645 = vmatmul.mubr.bf16.vlgmr.msra.gmra.mrb[12].mxu1 %v4163_v3  ;;  %v7725_v3 = vld [vmem:[#allocation10 + $0x108] sm:$0xff]  }
 0x3ef   :  { %4953 = vmatpush1.bf16.msra.mxu1 %v7685_v14  ;;  %6709 = vmatpush3.bf16.msra.mxu0 %v7692_v54  ;;  %v7723_v14 = vld [vmem:[#allocation10 + $0x180] sm:$0xff]   ;;  %v7724_v54 = vld [vmem:[#allocation10 + $0x148] sm:$0xff]  }
 0x3f0   :  { %4954 = vmatprep.subr.bf16.mxu1 %v7984_v0  ;;  %6710 = vmatprep.subr.bf16.mxu0 %v7694_v4  ;;  %v7726_v4 = vld [vmem:[#allocation10 + $0x188] sm:$0xff]  }
 0x3f3   :  { %4955 = vmatpush1.bf16.msra.mxu1 %v7686_v45  ;;  %6711 = vmatpush3.bf16.msra.mxu0 %v7695_v46  ;;  %v7727_v45 = vld [vmem:[#allocation10 + $0x150] sm:$0xff]  }
 0x3f4   :  { %4956 = vmatprep.subr.bf16.mxu1 %v7984_v0  ;;  %6712 = vmatprep.subr.bf16.mxu0 %v7697_v49  ;;  %v7728_v46 = vld [vmem:[#allocation10 + $0x110] sm:$0xff]  }
 0x3f5   :  { %v7729_v49 = vld [vmem:[#allocation10 + $0x190] sm:$0xff]  }
 0x3f7   :  { %4957 = vmatpush1.bf16.msra.mxu1 %v7687_v50  ;;  %6713 = vmatpush3.bf16.msra.mxu0 %v7698_v53  ;;  %v7730_v50 = vld [vmem:[#allocation10 + $0x158] sm:$0xff]  }
 0x3f8   :  { %4958 = vmatprep.subr.bf16.mxu1 %v7984_v0  ;;  %6714 = vmatprep.subr.bf16.mxu0 %v7700_v60  ;;  %v7731_v53 = vld [vmem:[#allocation10 + $0x118] sm:$0xff]  }
 0x3f9   :  { %v7732_v60 = vld [vmem:[#allocation10 + $0x198] sm:$0xff]  }
 0x3fb   :  { %4959 = vmatpush1.bf16.msra.mxu1 %v7688_v5  ;;  %6715 = vmatpush3.bf16.msra.mxu0 %v7701_v9  ;;  %v7733_v5 = vld [vmem:[#allocation10 + $0x160] sm:$0xff]  }
 0x3fc   :  { %4960 = vmatprep.subr.bf16.mxu1 %v7984_v0  ;;  %6716 = vmatprep.subr.bf16.mxu0 %v7703_v10  ;;  %v7734_v9 = vld [vmem:[#allocation10 + $0x120] sm:$0xff]  }
 0x3fd   :  { %v7735_v10 = vld [vmem:[#allocation10 + $0x1a0] sm:$0xff]  }
 0x3ff   :  { %4961 = vmatpush1.bf16.msra.mxu1 %v7689_v2  ;;  %6717 = vmatpush3.bf16.msra.mxu0 %v7704_v11  ;;  %v7736_v2 = vld [vmem:[#allocation10 + $0x168] sm:$0xff]  }
 0x400   :  { %4962 = vmatprep.subr.bf16.mxu1 %v7984_v0  ;;  %6718 = vmatprep.subr.bf16.mxu0 %v7706_v16  ;;  %v7737_v11 = vld [vmem:[#allocation10 + $0x128] sm:$0xff]  }
 0x401   :  { %v7738_v16 = vld [vmem:[#allocation10 + $0x1a8] sm:$0xff]  }
 0x403   :  { %4963 = vmatpush1.bf16.msra.mxu1 %v7690_v17  ;;  %6719 = vmatpush3.bf16.msra.mxu0 %v7707_v18  ;;  %v7739_v17 = vld [vmem:[#allocation10 + $0x220] sm:$0xff]   ;;  %v7740_v18 = vld [vmem:[#allocation10 + $0x1b0] sm:$0xff]  }
 0x404   :  { %4964 = vmatprep.subr.bf16.mxu1 %v7984_v0  ;;  %6720 = vmatprep.subr.bf16.mxu0 %v7709_v23  ;;  %v7747_v23 = vld [vmem:[#allocation10 + $0x1f0] sm:$0xff]  }
 0x407   :  { %4965 = vmatpush1.bf16.msra.mxu1 %v7693_v7  ;;  %6721 = vmatpush3.bf16.msra.mxu0 %v7710_v24  ;;  %v7741_v7 = vld [vmem:[#allocation10 + $0x1e0] sm:$0xff]   ;;  %v7748_v24 = vld [vmem:[#allocation10 + $0x238] sm:$0xff]  }
 0x408   :  { %4966 = vmatprep.subr.bf16.mxu1 %v7984_v0  ;;  %6722 = vmatprep.subr.bf16.mxu0 %v7712_v62  ;;  %v7750_v62 = vld [vmem:[#allocation10 + $0x1f8] sm:$0xff]  }
 0x40b   :  { %4967 = vmatpush1.bf16.msra.mxu1 %v7696_v19  ;;  %6723 = vmatpush3.bf16.msra.mxu0 %v7713_v26  ;;  %v7742_v19 = vld [vmem:[#allocation10 + $0x228] sm:$0xff]   ;;  %v7751_v26 = vld [vmem:[#allocation10 + $0x240] sm:$0xff]  }
 0x40c   :  { %4968 = vmatprep.subr.bf16.mxu1 %v7984_v0  ;;  %6730 = vmatprep.subr.bf16.mxu0 %v7715_v6  ;;  %v7753_v6 = vld [vmem:[#allocation10 + $0x200] sm:$0xff]  }
 0x40f   :  { %4969 = vmatpush1.bf16.msra.mxu1 %v7699_v20  ;;  %v7743_v20 = vld [vmem:[#allocation10 + $0x1b8] sm:$0xff]  }
 0x410   :  { %4970 = vmatprep.subr.bf16.mxu1 %v7984_v0 }
 0x413   :  { %4971 = vmatpush1.bf16.msra.mxu1 %v7702_v33  ;;  %v7744_v33 = vld [vmem:[#allocation10 + $0x1e8] sm:$0xff]  }
 0x414   :  { %4972 = vmatprep.subr.bf16.mxu1 %v7984_v0 }
 0x417   :  { %4973 = vmatpush1.bf16.msra.mxu1 %v7705_v21  ;;  %v7745_v21 = vld [vmem:[#allocation10 + $0x230] sm:$0xff]  }
 0x418   :  { %4974 = vmatprep.subr.bf16.mxu1 %v7984_v0 }
 0x41b   :  { %4975 = vmatpush1.bf16.msra.mxu1 %v7708_v22  ;;  %v7746_v22 = vld [vmem:[#allocation10 + $0x1c0] sm:$0xff]  }
 0x41c   :  { %4976 = vmatprep.subr.bf16.mxu1 %v7984_v0 }
 0x41f   :  { %4977 = vmatpush1.bf16.msra.mxu1 %v7711_v25  ;;  %v7749_v25 = vld [vmem:[#allocation10 + $0x1c8] sm:$0xff]  }
 0x420   :  { %4978 = vmatprep.subr.bf16.mxu1 %v7984_v0 }
 0x423   :  { %4979 = vmatpush1.bf16.msra.mxu1 %v7714_v37  ;;  %v7752_v37 = vld [vmem:[#allocation10 + $0x1d0] sm:$0xff]  }
 0x424   :  { %5281 = vmatprep.subr.bf16.mxu1 %v7984_v0 }
 0x4c1   :  { %v4605_v35 = vpop.f32.mrb[20].mxu0  ;;  %v4646_v59 = vpop.f32.mrb[12].mxu1 }
 0x4c2   :  { %v4606_v38 = vadd.f32 %v4605_v35, %v4234_v30  ;;  %v4647_v39 = vadd.f32 %v4646_v59, %v4242_v31  ;;  %v4607_v40 = vpop.f32.mrb[21].mxu0  ;;  %v4648_v41 = vpop.f32.mrb[13].mxu1  ;;  %v7755_v30 = vld [vmem:[#allocation10 + $0x1d8] sm:$0xff]   ;;  %v7756_v31 = vld [vmem:[#allocation10 + $0x208] sm:$0xff]   ;;  %v7759_v35 = vld [vmem:[#allocation10 + $0x210] sm:$0xff]  }
 0x4c3   :  { %v4608_v43 = vadd.f32 %v4607_v40, %v4238_v8  ;;  %v4649_v44 = vadd.f32 %v4648_v41, %v4246_v32  ;;  %v4609_v47 = vpop.f32.mrb[22].mxu0  ;;  %v4650_v48 = vpop.f32.mrb[14].mxu1  ;;  %v7757_v8 = vld [vmem:[#allocation10 + $0x250] sm:$0xff]   ;;  %v7763_v40 = vld [vmem:[#allocation10 + $0x218] sm:$0xff]  }
 0x4c4   :  { %v4653_v51 = vmax.f32 %v4606_v38, 0.0  ;;  %v4655_v13 = vmax.f32 %v4647_v39, 0.0  ;;  %v4610_v28 = vpop.f32.mrb[23].mxu0  ;;  %v4651_v52 = vpop.f32.mrb[15].mxu1  ;;  %v7758_v32 = vld [vmem:[#allocation10 + $0x310] sm:$0xff]   ;;  %v7761_v38 = vld [vmem:[#allocation10 + $0x258] sm:$0xff]  }
 0x4c5   :  { %v4654_v36 = vmax.f32 %v4608_v43, 0.0  ;;  %v4656_v55 = vmax.f32 %v4649_v44, 0.0  ;;  %v7760_v59 = vld [vmem:[#allocation10 + $0x2d0] sm:$0xff]   ;;  %v7762_v39 = vld [vmem:[#allocation10 + $0x318] sm:$0xff]   ;;  %v7765_v43 = vld [vmem:[#allocation10 + $0x320] sm:$0xff]  }
 0x4c6   :  { %v8496_v57 = vpack.c.bf16 %v4653_v51, %v4653_v51  ;;  %v8498_v58 = vpack.c.bf16 %v4655_v13, %v4655_v13  ;;  %v7764_v41 = vld [vmem:[#allocation10 + $0x2d8] sm:$0xff]   ;;  %v7766_v44 = vld [vmem:[#allocation10 + $0x260] sm:$0xff]   ;;  %v7768_v48 = vld [vmem:[#allocation10 + $0x328] sm:$0xff]  }
 0x4c7   :  { %v8492_v15 = vpack.c.bf16 %v4654_v36, %v4654_v36  ;;  %v8494_v12 = vpack.c.bf16 %v4656_v55, %v4656_v55  ;;  %v7767_v47 = vld [vmem:[#allocation10 + $0x2e0] sm:$0xff]   ;;  %v7769_v51 = vld [vmem:[#allocation10 + $0x268] sm:$0xff]   ;;  %v7771_v28 = vld [vmem:[#allocation10 + $0x330] sm:$0xff]  }
 0x4c8   :  { %v7770_v13 = vld [vmem:[#allocation10 + $0x2e8] sm:$0xff]   ;;  %v7772_v52 = vld [vmem:[#allocation10 + $0x270] sm:$0xff]   ;;  %v7774_v55 = vld [vmem:[#allocation10 + $0x338] sm:$0xff]  }
 0x4c9   :  { %4944 = vmatprep.mubr.bf16.mxu0 %v8492_v15  ;;  %6611 = vmatprep.mubr.msk.bf16.mxu1 %vm4908_vm3, %v8494_v12  ;;  %v7773_v36 = vld [vmem:[#allocation10 + $0x2f0] sm:$0xff]  }
 0x4ca   :  { %4945 = vmatmul.mubr.bf16.vlgmr.msra.gmra.mrb[24].mxu0 %v8496_v57  ;;  %4985 = vmatmul.mubr.bf16.vlgmr.msra.gmra.mrb[16].mxu1 %v8498_v58 }
 0x4cb   :  { %6731 = vmatpush3.bf16.msra.mxu0 %v7716_v34  ;;  %5282 = vmatpush1.bf16.msra.mxu1 %v7717_v56  ;;  %v7776_v34 = vld [vmem:[#allocation10 + $0x2f8] sm:$0xff]   ;;  %v7777_v56 = vld [vmem:[#allocation10 + $0x340] sm:$0xff]  }
 0x4cc   :  { %5273 = vmatprep.mubr.bf16.mxu0 %v8492_v15  ;;  %6643 = vmatprep.mubr.msk.bf16.mxu1 %vm4908_vm3, %v8494_v12 }
 0x4cd   :  { %6732 = vmatprep.subr.bf16.mxu0 %v7718_v42  ;;  %5283 = vmatprep.subr.bf16.mxu1 %v7984_v0  ;;  %v7778_v42 = vld [vmem:[#allocation10 + $0x280] sm:$0xff]  }
 0x4cf   :  { %6733 = vmatpush3.bf16.msra.mxu0 %v7719_v29  ;;  %5284 = vmatpush1.bf16.msra.mxu1 %v7720_v61  ;;  %v7779_v29 = vld [vmem:[#allocation10 + $0x300] sm:$0xff]   ;;  %v7780_v61 = vld [vmem:[#allocation10 + $0x348] sm:$0xff]  }
 0x4d0   :  { %6734 = vmatprep.subr.bf16.mxu0 %v7721_v63  ;;  %5285 = vmatprep.subr.bf16.mxu1 %v7984_v0  ;;  %v7781_v63 = vld [vmem:[#allocation10 + $0x288] sm:$0xff]  }
 0x4d3   :  { %6735 = vmatpush3.bf16.msra.mxu0 %v7722_v1  ;;  %5286 = vmatpush1.bf16.msra.mxu1 %v7723_v14  ;;  %v7782_v1 = vld [vmem:[#allocation10 + $0x308] sm:$0xff]   ;;  %v7783_v14 = vld [vmem:[#allocation10 + $0x290] sm:$0xff]  }
 0x4d4   :  { %6736 = vmatprep.subr.bf16.mxu0 %v7724_v54  ;;  %5287 = vmatprep.subr.bf16.mxu1 %v7984_v0  ;;  %v7784_v54 = vld [vmem:[#allocation10 + $0x350] sm:$0xff]  }
 0x4d7   :  { %6737 = vmatpush3.bf16.msra.mxu0 %v7725_v3  ;;  %5288 = vmatpush1.bf16.msra.mxu1 %v7726_v4  ;;  %v7785_v3 = vld [vmem:[#allocation10 + $0x298] sm:$0xff]  }
 0x4d8   :  { %6738 = vmatprep.subr.bf16.mxu0 %v7727_v45  ;;  %5289 = vmatprep.subr.bf16.mxu1 %v7984_v0  ;;  %v7786_v4 = vld [vmem:[#allocation10 + $0x358] sm:$0xff]   ;;  %v7787_v45 = vld [vmem:[#allocation10 + $0x2a0] sm:$0xff]  }
 0x4db   :  { %6739 = vmatpush3.bf16.msra.mxu0 %v7728_v46  ;;  %5290 = vmatpush1.bf16.msra.mxu1 %v7729_v49  ;;  %v7788_v46 = vld [vmem:[#allocation10 + $0x360] sm:$0xff]   ;;  %v7790_v49 = vld [vmem:[#allocation10 + $0x368] sm:$0xff]  }
 0x4dc   :  { %6740 = vmatprep.subr.bf16.mxu0 %v7730_v50  ;;  %5291 = vmatprep.subr.bf16.mxu1 %v7984_v0  ;;  %v7792_v50 = vld [vmem:[#allocation10 + $0x370] sm:$0xff]  }
 0x4df   :  { %6741 = vmatpush3.bf16.msra.mxu0 %v7731_v53  ;;  %5292 = vmatpush1.bf16.msra.mxu1 %v7732_v60  ;;  %v7793_v53 = vld [vmem:[#allocation10 + $0x2b8] sm:$0xff]  }
 0x4e0   :  { %6742 = vmatprep.subr.bf16.mxu0 %v7733_v5  ;;  %5293 = vmatprep.subr.bf16.mxu1 %v7984_v0  ;;  %v7794_v60 = vld [vmem:[#allocation10 + $0x378] sm:$0xff]   ;;  %v7795_v5 = vld [vmem:[#allocation10 + $0x2c0] sm:$0xff]  }
 0x4e3   :  { %6743 = vmatpush3.bf16.msra.mxu0 %v7734_v9  ;;  %5294 = vmatpush1.bf16.msra.mxu1 %v7735_v10  ;;  %v7796_v9 = vld [vmem:[#allocation10 + $0x380] sm:$0xff]   ;;  %v7797_v10 = vld [vmem:[#allocation10 + $0x2c8] sm:$0xff]  }
 0x4e4   :  { %6744 = vmatprep.subr.bf16.mxu0 %v7736_v2  ;;  %5295 = vmatprep.subr.bf16.mxu1 %v7984_v0  ;;  %v7798_v2 = vld [vmem:[#allocation10 + $0x388] sm:$0xff]  }
 0x4e7   :  { %6745 = vmatpush3.bf16.msra.mxu0 %v7737_v11  ;;  %5296 = vmatpush1.bf16.msra.mxu1 %v7738_v16  ;;  %v7799_v11 = vld [vmem:[#allocation10 + $0x390] sm:$0xff]   ;;  %v7800_v16 = vld [vmem:[#allocation10 + $0x398] sm:$0xff]  }
 0x4e8   :  { %5297 = vmatprep.subr.bf16.mxu1 %v7984_v0  ;;  %6752 = vmatprep.subr.bf16.mxu0 %v7739_v17  ;;  %v7801_v17 = vld [vmem:[#allocation10 + $0x3a0] sm:$0xff]  }
 0x4ea   :  { %5274 = vmatmul.mubr.bf16.vlgmr.msra.gmra.mrb[28].mxu0 %v8496_v57 }
 0x4eb   :  { %5298 = vmatpush1.bf16.msra.mxu1 %v7740_v18  ;;  %6753 = vmatpush3.bf16.msra.mxu0 %v7741_v7  ;;  %v7802_v18 = vld [vmem:[#allocation10 + $0x3a8] sm:$0xff]   ;;  %v7803_v7 = vld [vmem:[#allocation10 + $0x3b0] sm:$0xff]  }
 0x4ec   :  { %5603 = vmatprep.mubr.bf16.mxu0 %v8492_v15  ;;  %5299 = vmatprep.subr.bf16.mxu1 %v7984_v0 }
 0x4ed   :  { %6754 = vmatprep.subr.bf16.mxu0 %v7742_v19  ;;  %v7804_v19 = vld [vmem:[#allocation10 + $0x3b8] sm:$0xff]  }
 0x4ef   :  { %5300 = vmatpush1.bf16.msra.mxu1 %v7743_v20  ;;  %6755 = vmatpush3.bf16.msra.mxu0 %v7744_v33 }
 0x4f0   :  { %5301 = vmatprep.subr.bf16.mxu1 %v7984_v0  ;;  %6756 = vmatprep.subr.bf16.mxu0 %v7745_v21  ;;  %v6580_v21 = vld [vmem:[#allocation12] ss:$0 sm:$0xff] }
 0x4f3   :  { %5302 = vmatpush1.bf16.msra.mxu1 %v7746_v22  ;;  %6757 = vmatpush3.bf16.msra.mxu0 %v7747_v23 }
 0x4f4   :  { %5303 = vmatprep.subr.bf16.mxu1 %v7984_v0  ;;  %6758 = vmatprep.subr.bf16.mxu0 %v7748_v24 }
 0x4f7   :  { %5304 = vmatpush1.bf16.msra.mxu1 %v7749_v25  ;;  %6759 = vmatpush3.bf16.msra.mxu0 %v7750_v62 }
 0x4f8   :  { %5305 = vmatprep.subr.bf16.mxu1 %v7984_v0  ;;  %6760 = vmatprep.subr.bf16.mxu0 %v7751_v26 }
 0x4fb   :  { %5306 = vmatpush1.bf16.msra.mxu1 %v7752_v37  ;;  %6761 = vmatpush3.bf16.msra.mxu0 %v7753_v6 }
 0x4fc   :  { %5307 = vmatprep.subr.bf16.mxu1 %v7984_v0  ;;  %6762 = vmatprep.subr.bf16.mxu0 %v7754_v27 }
 0x4ff   :  { %5308 = vmatpush1.bf16.msra.mxu1 %v7755_v30  ;;  %6763 = vmatpush3.bf16.msra.mxu0 %v7756_v31 }
 0x500   :  { %6764 = vmatprep.subr.bf16.mxu0 %v7757_v8  ;;  %6774 = vmatprep.subr.bf16.mxu1 %v7758_v32 }
 0x502   :  { %5314 = vmatmul.mubr.bf16.vlgmr.msra.gmra.mrb[20].mxu1 %v8498_v58 }
 0x503   :  { %6765 = vmatpush3.bf16.msra.mxu0 %v7759_v35  ;;  %6775 = vmatpush3.bf16.msra.mxu1 %v7760_v59  ;;  %v6612_v35 = vld [vmem:[#allocation12 + $0x1] ss:$0 sm:$0xff] }
 0x504   :  { %5933 = vmatprep.mubr.bf16.mxu1 %v8492_v15  ;;  %6766 = vmatprep.subr.bf16.mxu0 %v7761_v38  ;;  %v7775_v15 = vld [vmem:[#allocation10 + $0x278] sm:$0xff]  }
 0x505   :  { %6776 = vmatprep.subr.bf16.mxu1 %v7762_v39 }
 0x507   :  { %6767 = vmatpush3.bf16.msra.mxu0 %v7763_v40  ;;  %6777 = vmatpush3.bf16.msra.mxu1 %v7764_v41 }
 0x508   :  { %5611 = vmatprep.subr.bf16.mxu0 %v7984_v0  ;;  %6778 = vmatprep.subr.bf16.mxu1 %v7765_v43 }
 0x50a   :  { %5604 = vmatmul.mubr.bf16.vlgmr.msra.gmra.mrb[32].mxu0 %v8496_v57 }
 0x50b   :  { %5612 = vmatpush1.bf16.msra.mxu0 %v7766_v44  ;;  %6675 = vmatprep.mubr.msk.bf16.mxu0 %vm4908_vm3, %v8494_v12 }
 0x50c   :  { %6779 = vmatpush3.bf16.msra.mxu1 %v7767_v47  ;;  %5613 = vmatprep.subr.bf16.mxu0 %v7984_v0 }
 0x50d   :  { %6780 = vmatprep.subr.bf16.mxu1 %v7768_v48 }
 0x50f   :  { %5614 = vmatpush1.bf16.msra.mxu0 %v7769_v51 }
 0x510   :  { %6781 = vmatpush3.bf16.msra.mxu1 %v7770_v13  ;;  %5615 = vmatprep.subr.bf16.mxu0 %v7984_v0 }
 0x511   :  { %6782 = vmatprep.subr.bf16.mxu1 %v7771_v28 }
 0x513   :  { %5616 = vmatpush1.bf16.msra.mxu0 %v7772_v52 }
 0x514   :  { %6783 = vmatpush3.bf16.msra.mxu1 %v7773_v36  ;;  %5617 = vmatprep.subr.bf16.mxu0 %v7984_v0 }
 0x515   :  { %6784 = vmatprep.subr.bf16.mxu1 %v7774_v55 }
 0x517   :  { %5618 = vmatpush1.bf16.msra.mxu0 %v7775_v15 }
 0x518   :  { %6785 = vmatpush3.bf16.msra.mxu1 %v7776_v34  ;;  %5619 = vmatprep.subr.bf16.mxu0 %v7984_v0  ;;  %v6644_v34 = vld [vmem:[#allocation12 + $0x2] ss:$0 sm:$0xff] }
 0x519   :  { %6786 = vmatprep.subr.bf16.mxu1 %v7777_v56 }
 0x51b   :  { %5620 = vmatpush1.bf16.msra.mxu0 %v7778_v42 }
 0x51c   :  { %6787 = vmatpush3.bf16.msra.mxu1 %v7779_v29  ;;  %5621 = vmatprep.subr.bf16.mxu0 %v7984_v0 }
 0x51d   :  { %6788 = vmatprep.subr.bf16.mxu1 %v7780_v61 }
 0x51f   :  { %5622 = vmatpush1.bf16.msra.mxu0 %v7781_v63 }
 0x520   :  { %6789 = vmatpush3.bf16.msra.mxu1 %v7782_v1  ;;  %5623 = vmatprep.subr.bf16.mxu0 %v7984_v0 }
 0x521   :  { %5941 = vmatprep.subr.bf16.mxu1 %v7984_v0 }
 0x523   :  { %5934 = vmatmul.mubr.bf16.vlgmr.msra.gmra.mrb[24].mxu1 %v8496_v57  ;;  %5624 = vmatpush1.bf16.msra.mxu0 %v7783_v14  ;;  %v7789_v57 = vld [vmem:[#allocation10 + $0x2a8] sm:$0xff]  }
 0x524   :  { %5942 = vmatpush1.bf16.msra.mxu1 %v7784_v54  ;;  %6707 = vmatprep.mubr.msk.bf16.mxu1 %vm4908_vm3, %v8494_v12  ;;  %v7791_v12 = vld [vmem:[#allocation10 + $0x2b0] sm:$0xff]   ;;  %v6676_v54 = vld [vmem:[#allocation12 + $0x3] ss:$0 sm:$0xff] }
 0x525   :  { %5625 = vmatprep.subr.bf16.mxu0 %v7984_v0  ;;  %5943 = vmatprep.subr.bf16.mxu1 %v7984_v0 }
 0x527   :  { %5626 = vmatpush1.bf16.msra.mxu0 %v7785_v3 }
 0x528   :  { %5944 = vmatpush1.bf16.msra.mxu1 %v7786_v4  ;;  %5627 = vmatprep.subr.bf16.mxu0 %v7984_v0 }
 0x529   :  { %5945 = vmatprep.subr.bf16.mxu1 %v7984_v0 }
 0x52b   :  { %5628 = vmatpush1.bf16.msra.mxu0 %v7787_v45 }
 0x52c   :  { %5946 = vmatpush1.bf16.msra.mxu1 %v7788_v46  ;;  %5629 = vmatprep.subr.bf16.mxu0 %v7984_v0 }
 0x52d   :  { %5947 = vmatprep.subr.bf16.mxu1 %v7984_v0 }
 0x52f   :  { %5630 = vmatpush1.bf16.msra.mxu0 %v7789_v57 }
 0x530   :  { %5948 = vmatpush1.bf16.msra.mxu1 %v7790_v49  ;;  %5631 = vmatprep.subr.bf16.mxu0 %v7984_v0 }
 0x531   :  { %5949 = vmatprep.subr.bf16.mxu1 %v7984_v0 }
 0x533   :  { %5632 = vmatpush1.bf16.msra.mxu0 %v7791_v12 }
 0x534   :  { %5950 = vmatpush1.bf16.msra.mxu1 %v7792_v50  ;;  %5633 = vmatprep.subr.bf16.mxu0 %v7984_v0 }
 0x535   :  { %5951 = vmatprep.subr.bf16.mxu1 %v7984_v0 }
 0x537   :  { %5634 = vmatpush1.bf16.msra.mxu0 %v7793_v53 }
 0x538   :  { %5952 = vmatpush1.bf16.msra.mxu1 %v7794_v60  ;;  %5635 = vmatprep.subr.bf16.mxu0 %v7984_v0 }
 0x539   :  { %5953 = vmatprep.subr.bf16.mxu1 %v7984_v0 }
 0x53b   :  { %5636 = vmatpush1.bf16.msra.mxu0 %v7795_v5 }
 0x53c   :  { %5954 = vmatpush1.bf16.msra.mxu1 %v7796_v9  ;;  %5637 = vmatprep.subr.bf16.mxu0 %v7984_v0 }
 0x53d   :  { %5955 = vmatprep.subr.bf16.mxu1 %v7984_v0 }
 0x53f   :  { %5638 = vmatpush1.bf16.msra.mxu0 %v7797_v10 }
 0x540   :  { %5956 = vmatpush1.bf16.msra.mxu1 %v7798_v2 }
 0x541   :  { %5957 = vmatprep.subr.bf16.mxu1 %v7984_v0 }
 0x542   :  { %5644 = vmatmul.mubr.bf16.vlgmr.msra.gmra.mrb[36].mxu0 %v8498_v58 }
 0x544   :  { %5958 = vmatpush1.bf16.msra.mxu1 %v7799_v11 }
 0x545   :  { %5959 = vmatprep.subr.bf16.mxu1 %v7984_v0 }
 0x548   :  { %5960 = vmatpush1.bf16.msra.mxu1 %v7800_v16 }
 0x549   :  { %5961 = vmatprep.subr.bf16.mxu1 %v7984_v0 }
 0x54c   :  { %5962 = vmatpush1.bf16.msra.mxu1 %v7801_v17 }
 0x54d   :  { %5963 = vmatprep.subr.bf16.mxu1 %v7984_v0 }
 0x550   :  { %5964 = vmatpush1.bf16.msra.mxu1 %v7802_v18 }
 0x551   :  { %5965 = vmatprep.subr.bf16.mxu1 %v7984_v0 }
 0x554   :  { %5966 = vmatpush1.bf16.msra.mxu1 %v7803_v7 }
 0x555   :  { %5967 = vmatprep.subr.bf16.mxu1 %v7984_v0 }
 0x558   :  { %5968 = vmatpush1.bf16.msra.mxu1 %v7804_v19 }
 0x55b   :  { %5974 = vmatmul.mubr.bf16.vlgmr.msra.gmra.mrb[28].mxu1 %v8498_v58 }
 0x59d   :  { %v6724_v20 = vpop.f32.mrb[24].mxu0  ;;  %v4986_v33 = vpop.f32.mrb[16].mxu1 }
 0x59e   :  { %v6725_v22 = vpop.f32.mrb[25].mxu0  ;;  %v4988_v23 = vpop.f32.mrb[17].mxu1 }
 0x59f   :  { %v6726_v24 = vadd.f32 %v6725_v22, %v6724_v20  ;;  %v6727_v25 = vpop.f32.mrb[26].mxu0  ;;  %v4989_v62 = vpop.f32.mrb[18].mxu1 }
 0x5a0   :  { %v6728_v26 = vpop.f32.mrb[27].mxu0  ;;  %v4990_v37 = vpop.f32.mrb[19].mxu1 }
 0x5a1   :  { %v4947_v6 = vadd.f32 %v6726_v24, %v6580_v21 }
 0x5a3   :  { %v4987_v27 = vadd.f32 %v4986_v33, %v4947_v6 }
 0x5bd   :  { %v6746_v30 = vpop.f32.mrb[28].mxu0 }
 0x5be   :  { %v6747_v31 = vpop.f32.mrb[29].mxu0 }
 0x5bf   :  { %v6748_v8 = vadd.f32 %v6747_v31, %v6746_v30  ;;  %v6749_v32 = vpop.f32.mrb[30].mxu0 }
 0x5c0   :  { %v6750_v0 = vpop.f32.mrb[31].mxu0 }
 0x5c1   :  { %v5276_v59 = vadd.f32 %v6748_v8, %v6612_v35 }
 0x5d5   :  { %v5315_v58 = vpop.f32.mrb[20].mxu1 }
 0x5d6   :  { %v5316_v38 = vadd.f32 %v5315_v58, %v5276_v59  ;;  %v5317_v39 = vpop.f32.mrb[21].mxu1 }
 0x5d7   :  { %v5318_v40 = vpop.f32.mrb[22].mxu1 }
 0x5d8   :  { %v5321_v41 = vmax.f32 %v4987_v27, %v5316_v38  ;;  %v5319_v43 = vpop.f32.mrb[23].mxu1 }
 0x5dd   :  { %v6768_v44 = vpop.f32.mrb[32].mxu0 }
 0x5de   :  { %v6769_v47 = vpop.f32.mrb[33].mxu0 }
 0x5df   :  { %v6770_v48 = vadd.f32 %v6769_v47, %v6768_v44  ;;  %v6771_v51 = vpop.f32.mrb[34].mxu0 }
 0x5e0   :  { %v6772_v13 = vpop.f32.mrb[35].mxu0 }
 0x5e1   :  { %v5606_v56 = vadd.f32 %v6770_v48, %v6644_v34 }
 0x5f6   :  { %v6790_v28 = vpop.f32.mrb[24].mxu1 }
 0x5f7   :  { %v6791_v52 = vpop.f32.mrb[25].mxu1 }
 0x5f8   :  { %v6792_v36 = vadd.f32 %v6791_v52, %v6790_v28  ;;  %v6793_v55 = vpop.f32.mrb[26].mxu1 }
 0x5f9   :  { %v6794_v15 = vpop.f32.mrb[27].mxu1 }
 0x5fa   :  { %v5936_v3 = vadd.f32 %v6792_v36, %v6676_v54 }
 0x615   :  { %v5645_v42 = vpop.f32.mrb[36].mxu0 }
 0x616   :  { %v5646_v29 = vadd.f32 %v5645_v42, %v5606_v56  ;;  %v5647_v61 = vpop.f32.mrb[37].mxu0 }
 0x617   :  { %v5648_v63 = vpop.f32.mrb[38].mxu0 }
 0x618   :  { %v5651_v1 = vmax.f32 %v5321_v41, %v5646_v29  ;;  %v5649_v14 = vpop.f32.mrb[39].mxu0 }
 0x62e   :  { %v5975_v4 = vpop.f32.mrb[28].mxu1 }
 0x62f   :  { %v5976_v45 = vadd.f32 %v5975_v4, %v5936_v3  ;;  %v5977_v46 = vpop.f32.mrb[29].mxu1 }
 0x630   :  { %v5978_v57 = vpop.f32.mrb[30].mxu1 }
 0x631   :  { %v5981_v49 = vmax.f32 %v5651_v1, %v5976_v45  ;;  %v5979_v12 = vpop.f32.mrb[31].mxu1 }
 0x633   :  { %v5982_v50 = vmax.f32 %v5981_v49, 0.0 }
 0x635   :  { %5983 = vst [vmem:[%s8573_s9] sm:$0xff] %v5982_v50 }
 0x636   :  { %5988 = vsyncpa [#allocation3], 1 }
 0x637   :  { %5989 = vsyncpa [#allocation5], 1 }
 0x638   :  { %5990 = vsyncpa [#allocation8], 1 }
 0x639   :  { %5991 = vsyncpa [#allocation11], 1 }

</bundles_post_ra>
